<compile_context>
chip_gen: v7x
topology: tpu7x:2x2x1
jax: 0.10.0
libtpu: 0.0.40
codegen_flags: <defaults>
</compile_context>

<pallas_src>
import math

import jax
import jax.numpy as jnp
from jax.experimental import pallas as pl
from jax.experimental.pallas import tpu as pltpu

# ---------------- config (small, valid, consistent with the module) ----------
SEQ = 8            # sequence length (src was a short token list)
EMB = 48           # d_model  (original: 100 — invalid with nhead=3)
NHEAD = 3          # original: 3
HEAD_DIM = EMB // NHEAD
FFN = 64           # dim_feedforward (PyTorch default would be 2048)
NUM_LAYERS = 4
LN_EPS = 1e-5

# lane-padded sizes (everything padded with zeros to a full 128-lane vreg row)
EP = 128           # padded embedding width
HDP = 128          # padded head width
FP = 128           # padded FFN width


# ----------------------------- fused Pallas kernel ---------------------------
def _fused_encoder_kernel(
    x_ref,        # (S, EP)  f32   padded src embeddings
    pe_ref,       # (S, EP)  f32   padded positional encoding
    w_attn_ref,   # (L, H, EP, 3*HDP)  bf16   per-head [Wq | Wk | Wv]
    b_attn_ref,   # (L, H, 1, 3*HDP)   f32    per-head [bq | bk | bv]
    w_out_ref,    # (L, H, HDP, EP)    bf16   per-head out-proj slice
    w_ff1_ref,    # (L, EP, FP)        bf16
    w_ff2_ref,    # (L, FP, EP)        bf16
    vecs_ref,     # (L, 8, EP)         f32    [b_out, g1, be1, b1, b2, g2, be2, 0]
    o_ref,        # (S, EP)  f32
):
    scale = 1.0 / math.sqrt(HEAD_DIM)
    inv_e = 1.0 / EMB

    def layer_norm(z, gamma, beta):
        # z is zero on padded lanes, so sum/EMB and sum(z*z)/EMB are exact over
        # the true EMB dims; gamma/beta are zero-padded so the output stays
        # zero on padded lanes.
        mu = jnp.sum(z, axis=-1, keepdims=True) * inv_e
        var = jnp.sum(z * z, axis=-1, keepdims=True) * inv_e - mu * mu
        return (z - mu) * jax.lax.rsqrt(var + LN_EPS) * gamma + beta

    # fused positional-encoding add (dropout is identity at inference)
    x = x_ref[...] + pe_ref[...]                       # (S, EP) f32, zero-padded

    for l in range(NUM_LAYERS):                        # static unroll, weights VMEM-resident
        vl = vecs_ref[l]                               # (8, EP) f32
        b_out = vl[0:1, :]
        g1, be1 = vl[1:2, :], vl[2:3, :]
        b1, b2 = vl[3:4, :], vl[4:5, :]
        g2, be2 = vl[5:6, :], vl[6:7, :]

        xb = x.astype(jnp.bfloat16)

        # ---- multi-head self-attention, out-projection folded into head loop ----
        attn = jnp.zeros((SEQ, EP), jnp.float32)
        for h in range(NHEAD):                         # static, nhead is tiny
            qkv = jnp.dot(xb, w_attn_ref[l, h],
                          preferred_element_type=jnp.float32) + b_attn_ref[l, h]
            qh = qkv[:, 0 * HDP:1 * HDP].astype(jnp.bfloat16)   # 128-aligned slices
            kh = qkv[:, 1 * HDP:2 * HDP].astype(jnp.bfloat16)
            vh = qkv[:, 2 * HDP:3 * HDP].astype(jnp.bfloat16)

            s = jax.lax.dot_general(qh, kh, (((1,), (1,)), ((), ())),
                                    preferred_element_type=jnp.float32) * scale
            s = s - jnp.max(s, axis=-1, keepdims=True)
            p = jnp.exp(s)
            p = p * pl.reciprocal(jnp.sum(p, axis=-1, keepdims=True), approx=True)

            pv = jnp.dot(p.astype(jnp.bfloat16), vh,
                         preferred_element_type=jnp.float32)
            attn = attn + jnp.dot(pv.astype(jnp.bfloat16), w_out_ref[l, h],
                                  preferred_element_type=jnp.float32)
        attn = attn + b_out

        # post-norm (norm_first=False): h1 = LN1(x + attn)
        h1 = layer_norm(x + attn, g1, be1)

        # feed-forward: relu(h1 @ W1 + b1) @ W2 + b2
        t = jnp.dot(h1.astype(jnp.bfloat16), w_ff1_ref[l],
                    preferred_element_type=jnp.float32) + b1
        t = jnp.maximum(t, 0.0)
        ff = jnp.dot(t.astype(jnp.bfloat16), w_ff2_ref[l],
                     preferred_element_type=jnp.float32) + b2

        # x = LN2(h1 + ff)
        x = layer_norm(h1 + ff, g2, be2)

    o_ref[...] = x                                     # lane-dense unmasked store


# ------------------------------ glue / params --------------------------------
def make_positional_encoding(seq_len, emb):
    pos = jnp.arange(seq_len, dtype=jnp.float32)[:, None]                 # (S, 1)
    den = jnp.exp(-jnp.arange(0, emb, 2, dtype=jnp.float32)
                  * (math.log(10000.0) / emb))                            # (E/2,)
    pe = jnp.zeros((seq_len, emb), dtype=jnp.float32)
    pe = pe.at[:, 0::2].set(jnp.sin(pos * den))
    pe = pe.at[:, 1::2].set(jnp.cos(pos * den))
    return pe


def init_layer_raw(key, emb, ffn):
    """Per-layer parameters in PyTorch TransformerEncoderLayer layout."""
    ks = jax.random.split(key, 6)
    s = 0.02
    return dict(
        in_proj_w=jax.random.normal(ks[0], (3 * emb, emb), jnp.float32) * s,
        in_proj_b=jax.random.normal(ks[1], (3 * emb,), jnp.float32) * s,
        out_w=jax.random.normal(ks[2], (emb, emb), jnp.float32) * s,
        out_b=jnp.zeros((emb,), jnp.float32),
        w1=jax.random.normal(ks[3], (ffn, emb), jnp.float32) * s,
        b1=jax.random.normal(ks[4], (ffn,), jnp.float32) * s,
        w2=jax.random.normal(ks[5], (emb, ffn), jnp.float32) * s,
        b2=jnp.zeros((emb,), jnp.float32),
        g1=jnp.ones((emb,), jnp.float32), be1=jnp.zeros((emb,), jnp.float32),
        g2=jnp.ones((emb,), jnp.float32), be2=jnp.zeros((emb,), jnp.float32),
    )


def pack_params(raw_layers):
    """Pad to 128 lanes, split QKV/out-proj per head, stack across layers."""
    W_ATTN, B_ATTN, W_OUT, W_FF1, W_FF2, VECS = [], [], [], [], [], []
    for r in raw_layers:
        ipw, ipb = r["in_proj_w"], r["in_proj_b"]
        wa_h, ba_h, wo_h = [], [], []
        for h in range(NHEAD):
            lo, hi = h * HEAD_DIM, (h + 1) * HEAD_DIM
            wa = jnp.zeros((EP, 3 * HDP), jnp.float32)
            ba = jnp.zeros((1, 3 * HDP), jnp.float32)
            for c in range(3):  # 0=q, 1=k, 2=v
                w_c = ipw[c * EMB + lo:c * EMB + hi, :].T          # (E, hd)
                b_c = ipb[c * EMB + lo:c * EMB + hi]               # (hd,)
                wa = wa.at[:EMB, c * HDP:c * HDP + HEAD_DIM].set(w_c)
                ba = ba.at[0, c * HDP:c * HDP + HEAD_DIM].set(b_c)
            wo = jnp.zeros((HDP, EP), jnp.float32)
            wo = wo.at[:HEAD_DIM, :EMB].set(r["out_w"][:, lo:hi].T)
            wa_h.append(wa); ba_h.append(ba); wo_h.append(wo)
        W_ATTN.append(jnp.stack(wa_h))
        B_ATTN.append(jnp.stack(ba_h))
        W_OUT.append(jnp.stack(wo_h))

        wf1 = jnp.zeros((EP, FP), jnp.float32).at[:EMB, :FFN].set(r["w1"].T)
        wf2 = jnp.zeros((FP, EP), jnp.float32).at[:FFN, :EMB].set(r["w2"].T)
        W_FF1.append(wf1); W_FF2.append(wf2)

        vecs = jnp.zeros((8, EP), jnp.float32)
        vecs = vecs.at[0, :EMB].set(r["out_b"])
        vecs = vecs.at[1, :EMB].set(r["g1"])
        vecs = vecs.at[2, :EMB].set(r["be1"])
        vecs = vecs.at[3, :FFN].set(r["b1"])
        vecs = vecs.at[4, :EMB].set(r["b2"])
        vecs = vecs.at[5, :EMB].set(r["g2"])
        vecs = vecs.at[6, :EMB].set(r["be2"])
        VECS.append(vecs)

    return (
        jnp.stack(W_ATTN).astype(jnp.bfloat16),   # (L, H, EP, 3*HDP)
        jnp.stack(B_ATTN),                        # (L, H, 1, 3*HDP) f32
        jnp.stack(W_OUT).astype(jnp.bfloat16),    # (L, H, HDP, EP)
        jnp.stack(W_FF1).astype(jnp.bfloat16),    # (L, EP, FP)
        jnp.stack(W_FF2).astype(jnp.bfloat16),    # (L, FP, EP)
        jnp.stack(VECS),                          # (L, 8, EP) f32
    )


def modelo_forward(src_emb, packed, pe_pad):
    """PE add + NUM_LAYERS encoder layers in a single fused pallas_call."""
    x_pad = jnp.pad(src_emb, ((0, 0), (0, EP - EMB)))
    out_pad = pl.pallas_call(
        _fused_encoder_kernel,
        out_shape=jax.ShapeDtypeStruct((SEQ, EP), jnp.float32),
        in_specs=[pl.BlockSpec(memory_space=pltpu.MemorySpace.VMEM)] * (2 + len(packed)),
        out_specs=pl.BlockSpec(memory_space=pltpu.MemorySpace.VMEM),
    )(x_pad, pe_pad, *packed)
    # output.view(-1): strip lane padding, then flatten
    return out_pad[:, :EMB].reshape(-1)


# ----------------------------------- main -------------------------------------
if __name__ == "__main__":
    key = jax.random.PRNGKey(0)
    k_x, k_p = jax.random.split(key)

    # src_emb ~ token embeddings for a short sequence: (SEQ, EMB)
    src_emb = jax.random.normal(k_x, (SEQ, EMB), jnp.float32)

    layer_keys = jax.random.split(k_p, NUM_LAYERS)
    packed = pack_params([init_layer_raw(k, EMB, FFN) for k in layer_keys])
    pe_pad = jnp.pad(make_positional_encoding(SEQ, EMB), ((0, 0), (0, EP - EMB)))

    fwd = jax.jit(modelo_forward)
    out = jax.block_until_ready(fwd(src_emb, packed, pe_pad))

    assert out.shape == (SEQ * EMB,), out.shape
    assert bool(jnp.all(jnp.isfinite(out)))
    print("KERNEL_OK")
</pallas_src>

<mosaic_0001>
module attributes {stable_mosaic.version = 11 : i64} {
  func.func @_fused_encoder_kernel(%arg0: memref<8x128xf32, #tpu.memory_space<vmem>>, %arg1: memref<8x128xf32, #tpu.memory_space<vmem>>, %arg2: memref<4x3x128x384xbf16, #tpu.memory_space<vmem>>, %arg3: memref<4x3x1x384xf32, #tpu.memory_space<vmem>>, %arg4: memref<4x3x128x128xbf16, #tpu.memory_space<vmem>>, %arg5: memref<4x128x128xbf16, #tpu.memory_space<vmem>>, %arg6: memref<4x128x128xbf16, #tpu.memory_space<vmem>>, %arg7: memref<4x8x128xf32, #tpu.memory_space<vmem>>, %arg8: memref<8x128xf32, #tpu.memory_space<vmem>>) attributes {dimension_semantics = [], scalar_prefetch = 0 : i64, scratch_operands = 0 : i64, tpu.core_type = #tpu.core_type<tc>} {
    %c0 = arith.constant 0 : index
    %c0_0 = arith.constant 0 : index
    %0 = vector.load %arg0[%c0, %c0_0] : memref<8x128xf32, #tpu.memory_space<vmem>>, vector<8x128xf32>
    %c0_1 = arith.constant 0 : index
    %c0_2 = arith.constant 0 : index
    %1 = vector.load %arg1[%c0_1, %c0_2] : memref<8x128xf32, #tpu.memory_space<vmem>>, vector<8x128xf32>
    %2 = arith.addf %0, %1 : vector<8x128xf32>
    %c0_3 = arith.constant 0 : index
    %c0_4 = arith.constant 0 : index
    %c0_5 = arith.constant 0 : index
    %3 = vector.load %arg7[%c0_3, %c0_4, %c0_5] : memref<4x8x128xf32, #tpu.memory_space<vmem>>, vector<1x8x128xf32>
    %4 = vector.shape_cast %3 : vector<1x8x128xf32> to vector<8x128xf32>
    %5 = vector.extract_strided_slice %4 {offsets = [0, 0], sizes = [1, 128], strides = [1, 1]} : vector<8x128xf32> to vector<1x128xf32>
    %6 = vector.extract_strided_slice %4 {offsets = [1, 0], sizes = [1, 128], strides = [1, 1]} : vector<8x128xf32> to vector<1x128xf32>
    %7 = vector.extract_strided_slice %4 {offsets = [2, 0], sizes = [1, 128], strides = [1, 1]} : vector<8x128xf32> to vector<1x128xf32>
    %8 = vector.extract_strided_slice %4 {offsets = [3, 0], sizes = [1, 128], strides = [1, 1]} : vector<8x128xf32> to vector<1x128xf32>
    %9 = vector.extract_strided_slice %4 {offsets = [4, 0], sizes = [1, 128], strides = [1, 1]} : vector<8x128xf32> to vector<1x128xf32>
    %10 = vector.extract_strided_slice %4 {offsets = [5, 0], sizes = [1, 128], strides = [1, 1]} : vector<8x128xf32> to vector<1x128xf32>
    %11 = vector.extract_strided_slice %4 {offsets = [6, 0], sizes = [1, 128], strides = [1, 1]} : vector<8x128xf32> to vector<1x128xf32>
    %12 = arith.truncf %2 : vector<8x128xf32> to vector<8x128xbf16>
    %cst = arith.constant 0.000000e+00 : f32
    %13 = vector.broadcast %cst : f32 to vector<8x128xf32>
    %c0_6 = arith.constant 0 : index
    %c0_7 = arith.constant 0 : index
    %c0_8 = arith.constant 0 : index
    %c0_9 = arith.constant 0 : index
    %14 = vector.load %arg2[%c0_6, %c0_7, %c0_8, %c0_9] : memref<4x3x128x384xbf16, #tpu.memory_space<vmem>>, vector<1x1x128x384xbf16>
    %15 = vector.shape_cast %14 : vector<1x1x128x384xbf16> to vector<128x384xbf16>
    %cst_10 = arith.constant dense<0.000000e+00> : vector<8x384xf32>
    %16 = tpu.matmul %12, %15, %cst_10 {dimension_numbers = #tpu.dot_dimension_numbers<[1], [0], [0], [1], [0, 0, 1, 1], [], []>} : vector<8x128xbf16>, vector<128x384xbf16>, vector<8x384xf32> -> vector<8x384xf32>
    %c0_11 = arith.constant 0 : index
    %c0_12 = arith.constant 0 : index
    %c0_13 = arith.constant 0 : index
    %c0_14 = arith.constant 0 : index
    %17 = vector.load %arg3[%c0_11, %c0_12, %c0_13, %c0_14] : memref<4x3x1x384xf32, #tpu.memory_space<vmem>>, vector<1x1x1x384xf32>
    %18 = vector.shape_cast %17 : vector<1x1x1x384xf32> to vector<1x384xf32>
    %19 = vector.broadcast %18 : vector<1x384xf32> to vector<8x384xf32>
    %20 = arith.addf %16, %19 : vector<8x384xf32>
    %21 = vector.extract_strided_slice %20 {offsets = [0, 0], sizes = [8, 128], strides = [1, 1]} : vector<8x384xf32> to vector<8x128xf32>
    %22 = arith.truncf %21 : vector<8x128xf32> to vector<8x128xbf16>
    %23 = vector.extract_strided_slice %20 {offsets = [0, 128], sizes = [8, 128], strides = [1, 1]} : vector<8x384xf32> to vector<8x128xf32>
    %24 = arith.truncf %23 : vector<8x128xf32> to vector<8x128xbf16>
    %25 = vector.extract_strided_slice %20 {offsets = [0, 256], sizes = [8, 128], strides = [1, 1]} : vector<8x384xf32> to vector<8x128xf32>
    %26 = arith.truncf %25 : vector<8x128xf32> to vector<8x128xbf16>
    %cst_15 = arith.constant dense<0.000000e+00> : vector<8x8xf32>
    %27 = tpu.matmul %22, %24, %cst_15 {dimension_numbers = #tpu.dot_dimension_numbers<[1], [1], [0], [0], [0, 0, 1, 0], [], []>} : vector<8x128xbf16>, vector<8x128xbf16>, vector<8x8xf32> -> vector<8x8xf32>
    %cst_16 = arith.constant 2.500000e-01 : f32
    %28 = vector.broadcast %cst_16 : f32 to vector<8x8xf32>
    %29 = arith.mulf %27, %28 : vector<8x8xf32>
    %cst_17 = arith.constant dense<0xFF800000> : vector<8xf32>
    %30 = vector.multi_reduction <maximumf>, %29, %cst_17 [1] : vector<8x8xf32> to vector<8xf32>
    %31 = vector.shape_cast %30 : vector<8xf32> to vector<8x1xf32>
    %32 = vector.broadcast %31 : vector<8x1xf32> to vector<8x8xf32>
    %33 = arith.subf %29, %32 : vector<8x8xf32>
    %34 = math.exp %33 : vector<8x8xf32>
    %cst_18 = arith.constant dense<0.000000e+00> : vector<8xf32>
    %35 = vector.multi_reduction <add>, %34, %cst_18 [1] : vector<8x8xf32> to vector<8xf32>
    %36 = vector.shape_cast %35 : vector<8xf32> to vector<8x1xf32>
    %37 = tpu.reciprocal %36 {approx = true} : vector<8x1xf32> -> vector<8x1xf32>
    %38 = vector.broadcast %37 : vector<8x1xf32> to vector<8x8xf32>
    %39 = arith.mulf %34, %38 : vector<8x8xf32>
    %40 = arith.truncf %39 : vector<8x8xf32> to vector<8x8xbf16>
    %cst_19 = arith.constant dense<0.000000e+00> : vector<8x128xf32>
    %41 = tpu.matmul %40, %26, %cst_19 {dimension_numbers = #tpu.dot_dimension_numbers<[1], [0], [0], [1], [0, 0, 1, 1], [], []>} : vector<8x8xbf16>, vector<8x128xbf16>, vector<8x128xf32> -> vector<8x128xf32>
    %42 = arith.truncf %41 : vector<8x128xf32> to vector<8x128xbf16>
    %c0_20 = arith.constant 0 : index
    %c0_21 = arith.constant 0 : index
    %c0_22 = arith.constant 0 : index
    %c0_23 = arith.constant 0 : index
    %43 = vector.load %arg4[%c0_20, %c0_21, %c0_22, %c0_23] : memref<4x3x128x128xbf16, #tpu.memory_space<vmem>>, vector<1x1x128x128xbf16>
    %44 = vector.shape_cast %43 : vector<1x1x128x128xbf16> to vector<128x128xbf16>
    %cst_24 = arith.constant dense<0.000000e+00> : vector<8x128xf32>
    %45 = tpu.matmul %42, %44, %cst_24 {dimension_numbers = #tpu.dot_dimension_numbers<[1], [0], [0], [1], [0, 0, 1, 1], [], []>} : vector<8x128xbf16>, vector<128x128xbf16>, vector<8x128xf32> -> vector<8x128xf32>
    %46 = arith.addf %13, %45 : vector<8x128xf32>
    %c0_25 = arith.constant 0 : index
    %c1 = arith.constant 1 : index
    %c0_26 = arith.constant 0 : index
    %c0_27 = arith.constant 0 : index
    %47 = vector.load %arg2[%c0_25, %c1, %c0_26, %c0_27] : memref<4x3x128x384xbf16, #tpu.memory_space<vmem>>, vector<1x1x128x384xbf16>
    %48 = vector.shape_cast %47 : vector<1x1x128x384xbf16> to vector<128x384xbf16>
    %cst_28 = arith.constant dense<0.000000e+00> : vector<8x384xf32>
    %49 = tpu.matmul %12, %48, %cst_28 {dimension_numbers = #tpu.dot_dimension_numbers<[1], [0], [0], [1], [0, 0, 1, 1], [], []>} : vector<8x128xbf16>, vector<128x384xbf16>, vector<8x384xf32> -> vector<8x384xf32>
    %c0_29 = arith.constant 0 : index
    %c1_30 = arith.constant 1 : index
    %c0_31 = arith.constant 0 : index
    %c0_32 = arith.constant 0 : index
    %50 = vector.load %arg3[%c0_29, %c1_30, %c0_31, %c0_32] : memref<4x3x1x384xf32, #tpu.memory_space<vmem>>, vector<1x1x1x384xf32>
    %51 = vector.shape_cast %50 : vector<1x1x1x384xf32> to vector<1x384xf32>
    %52 = vector.broadcast %51 : vector<1x384xf32> to vector<8x384xf32>
    %53 = arith.addf %49, %52 : vector<8x384xf32>
    %54 = vector.extract_strided_slice %53 {offsets = [0, 0], sizes = [8, 128], strides = [1, 1]} : vector<8x384xf32> to vector<8x128xf32>
    %55 = arith.truncf %54 : vector<8x128xf32> to vector<8x128xbf16>
    %56 = vector.extract_strided_slice %53 {offsets = [0, 128], sizes = [8, 128], strides = [1, 1]} : vector<8x384xf32> to vector<8x128xf32>
    %57 = arith.truncf %56 : vector<8x128xf32> to vector<8x128xbf16>
    %58 = vector.extract_strided_slice %53 {offsets = [0, 256], sizes = [8, 128], strides = [1, 1]} : vector<8x384xf32> to vector<8x128xf32>
    %59 = arith.truncf %58 : vector<8x128xf32> to vector<8x128xbf16>
    %cst_33 = arith.constant dense<0.000000e+00> : vector<8x8xf32>
    %60 = tpu.matmul %55, %57, %cst_33 {dimension_numbers = #tpu.dot_dimension_numbers<[1], [1], [0], [0], [0, 0, 1, 0], [], []>} : vector<8x128xbf16>, vector<8x128xbf16>, vector<8x8xf32> -> vector<8x8xf32>
    %cst_34 = arith.constant 2.500000e-01 : f32
    %61 = vector.broadcast %cst_34 : f32 to vector<8x8xf32>
    %62 = arith.mulf %60, %61 : vector<8x8xf32>
    %cst_35 = arith.constant dense<0xFF800000> : vector<8xf32>
    %63 = vector.multi_reduction <maximumf>, %62, %cst_35 [1] : vector<8x8xf32> to vector<8xf32>
    %64 = vector.shape_cast %63 : vector<8xf32> to vector<8x1xf32>
    %65 = vector.broadcast %64 : vector<8x1xf32> to vector<8x8xf32>
    %66 = arith.subf %62, %65 : vector<8x8xf32>
    %67 = math.exp %66 : vector<8x8xf32>
    %cst_36 = arith.constant dense<0.000000e+00> : vector<8xf32>
    %68 = vector.multi_reduction <add>, %67, %cst_36 [1] : vector<8x8xf32> to vector<8xf32>
    %69 = vector.shape_cast %68 : vector<8xf32> to vector<8x1xf32>
    %70 = tpu.reciprocal %69 {approx = true} : vector<8x1xf32> -> vector<8x1xf32>
    %71 = vector.broadcast %70 : vector<8x1xf32> to vector<8x8xf32>
    %72 = arith.mulf %67, %71 : vector<8x8xf32>
    %73 = arith.truncf %72 : vector<8x8xf32> to vector<8x8xbf16>
    %cst_37 = arith.constant dense<0.000000e+00> : vector<8x128xf32>
    %74 = tpu.matmul %73, %59, %cst_37 {dimension_numbers = #tpu.dot_dimension_numbers<[1], [0], [0], [1], [0, 0, 1, 1], [], []>} : vector<8x8xbf16>, vector<8x128xbf16>, vector<8x128xf32> -> vector<8x128xf32>
    %75 = arith.truncf %74 : vector<8x128xf32> to vector<8x128xbf16>
    %c0_38 = arith.constant 0 : index
    %c1_39 = arith.constant 1 : index
    %c0_40 = arith.constant 0 : index
    %c0_41 = arith.constant 0 : index
    %76 = vector.load %arg4[%c0_38, %c1_39, %c0_40, %c0_41] : memref<4x3x128x128xbf16, #tpu.memory_space<vmem>>, vector<1x1x128x128xbf16>
    %77 = vector.shape_cast %76 : vector<1x1x128x128xbf16> to vector<128x128xbf16>
    %cst_42 = arith.constant dense<0.000000e+00> : vector<8x128xf32>
    %78 = tpu.matmul %75, %77, %cst_42 {dimension_numbers = #tpu.dot_dimension_numbers<[1], [0], [0], [1], [0, 0, 1, 1], [], []>} : vector<8x128xbf16>, vector<128x128xbf16>, vector<8x128xf32> -> vector<8x128xf32>
    %79 = arith.addf %46, %78 : vector<8x128xf32>
    %c0_43 = arith.constant 0 : index
    %c2 = arith.constant 2 : index
    %c0_44 = arith.constant 0 : index
    %c0_45 = arith.constant 0 : index
    %80 = vector.load %arg2[%c0_43, %c2, %c0_44, %c0_45] : memref<4x3x128x384xbf16, #tpu.memory_space<vmem>>, vector<1x1x128x384xbf16>
    %81 = vector.shape_cast %80 : vector<1x1x128x384xbf16> to vector<128x384xbf16>
    %cst_46 = arith.constant dense<0.000000e+00> : vector<8x384xf32>
    %82 = tpu.matmul %12, %81, %cst_46 {dimension_numbers = #tpu.dot_dimension_numbers<[1], [0], [0], [1], [0, 0, 1, 1], [], []>} : vector<8x128xbf16>, vector<128x384xbf16>, vector<8x384xf32> -> vector<8x384xf32>
    %c0_47 = arith.constant 0 : index
    %c2_48 = arith.constant 2 : index
    %c0_49 = arith.constant 0 : index
    %c0_50 = arith.constant 0 : index
    %83 = vector.load %arg3[%c0_47, %c2_48, %c0_49, %c0_50] : memref<4x3x1x384xf32, #tpu.memory_space<vmem>>, vector<1x1x1x384xf32>
    %84 = vector.shape_cast %83 : vector<1x1x1x384xf32> to vector<1x384xf32>
    %85 = vector.broadcast %84 : vector<1x384xf32> to vector<8x384xf32>
    %86 = arith.addf %82, %85 : vector<8x384xf32>
    %87 = vector.extract_strided_slice %86 {offsets = [0, 0], sizes = [8, 128], strides = [1, 1]} : vector<8x384xf32> to vector<8x128xf32>
    %88 = arith.truncf %87 : vector<8x128xf32> to vector<8x128xbf16>
    %89 = vector.extract_strided_slice %86 {offsets = [0, 128], sizes = [8, 128], strides = [1, 1]} : vector<8x384xf32> to vector<8x128xf32>
    %90 = arith.truncf %89 : vector<8x128xf32> to vector<8x128xbf16>
    %91 = vector.extract_strided_slice %86 {offsets = [0, 256], sizes = [8, 128], strides = [1, 1]} : vector<8x384xf32> to vector<8x128xf32>
    %92 = arith.truncf %91 : vector<8x128xf32> to vector<8x128xbf16>
    %cst_51 = arith.constant dense<0.000000e+00> : vector<8x8xf32>
    %93 = tpu.matmul %88, %90, %cst_51 {dimension_numbers = #tpu.dot_dimension_numbers<[1], [1], [0], [0], [0, 0, 1, 0], [], []>} : vector<8x128xbf16>, vector<8x128xbf16>, vector<8x8xf32> -> vector<8x8xf32>
    %cst_52 = arith.constant 2.500000e-01 : f32
    %94 = vector.broadcast %cst_52 : f32 to vector<8x8xf32>
    %95 = arith.mulf %93, %94 : vector<8x8xf32>
    %cst_53 = arith.constant dense<0xFF800000> : vector<8xf32>
    %96 = vector.multi_reduction <maximumf>, %95, %cst_53 [1] : vector<8x8xf32> to vector<8xf32>
    %97 = vector.shape_cast %96 : vector<8xf32> to vector<8x1xf32>
    %98 = vector.broadcast %97 : vector<8x1xf32> to vector<8x8xf32>
    %99 = arith.subf %95, %98 : vector<8x8xf32>
    %100 = math.exp %99 : vector<8x8xf32>
    %cst_54 = arith.constant dense<0.000000e+00> : vector<8xf32>
    %101 = vector.multi_reduction <add>, %100, %cst_54 [1] : vector<8x8xf32> to vector<8xf32>
    %102 = vector.shape_cast %101 : vector<8xf32> to vector<8x1xf32>
    %103 = tpu.reciprocal %102 {approx = true} : vector<8x1xf32> -> vector<8x1xf32>
    %104 = vector.broadcast %103 : vector<8x1xf32> to vector<8x8xf32>
    %105 = arith.mulf %100, %104 : vector<8x8xf32>
    %106 = arith.truncf %105 : vector<8x8xf32> to vector<8x8xbf16>
    %cst_55 = arith.constant dense<0.000000e+00> : vector<8x128xf32>
    %107 = tpu.matmul %106, %92, %cst_55 {dimension_numbers = #tpu.dot_dimension_numbers<[1], [0], [0], [1], [0, 0, 1, 1], [], []>} : vector<8x8xbf16>, vector<8x128xbf16>, vector<8x128xf32> -> vector<8x128xf32>
    %108 = arith.truncf %107 : vector<8x128xf32> to vector<8x128xbf16>
    %c0_56 = arith.constant 0 : index
    %c2_57 = arith.constant 2 : index
    %c0_58 = arith.constant 0 : index
    %c0_59 = arith.constant 0 : index
    %109 = vector.load %arg4[%c0_56, %c2_57, %c0_58, %c0_59] : memref<4x3x128x128xbf16, #tpu.memory_space<vmem>>, vector<1x1x128x128xbf16>
    %110 = vector.shape_cast %109 : vector<1x1x128x128xbf16> to vector<128x128xbf16>
    %cst_60 = arith.constant dense<0.000000e+00> : vector<8x128xf32>
    %111 = tpu.matmul %108, %110, %cst_60 {dimension_numbers = #tpu.dot_dimension_numbers<[1], [0], [0], [1], [0, 0, 1, 1], [], []>} : vector<8x128xbf16>, vector<128x128xbf16>, vector<8x128xf32> -> vector<8x128xf32>
    %112 = arith.addf %79, %111 : vector<8x128xf32>
    %113 = vector.broadcast %5 : vector<1x128xf32> to vector<8x128xf32>
    %114 = arith.addf %112, %113 : vector<8x128xf32>
    %115 = arith.addf %2, %114 : vector<8x128xf32>
    %cst_61 = arith.constant dense<0.000000e+00> : vector<8xf32>
    %116 = vector.multi_reduction <add>, %115, %cst_61 [1] : vector<8x128xf32> to vector<8xf32>
    %117 = vector.shape_cast %116 : vector<8xf32> to vector<8x1xf32>
    %cst_62 = arith.constant 0.020833334 : f32
    %118 = vector.broadcast %cst_62 : f32 to vector<8x1xf32>
    %119 = arith.mulf %117, %118 : vector<8x1xf32>
    %120 = arith.mulf %115, %115 : vector<8x128xf32>
    %cst_63 = arith.constant dense<0.000000e+00> : vector<8xf32>
    %121 = vector.multi_reduction <add>, %120, %cst_63 [1] : vector<8x128xf32> to vector<8xf32>
    %122 = vector.shape_cast %121 : vector<8xf32> to vector<8x1xf32>
    %cst_64 = arith.constant 0.020833334 : f32
    %123 = vector.broadcast %cst_64 : f32 to vector<8x1xf32>
    %124 = arith.mulf %122, %123 : vector<8x1xf32>
    %125 = arith.mulf %119, %119 : vector<8x1xf32>
    %126 = arith.subf %124, %125 : vector<8x1xf32>
    %127 = vector.broadcast %119 : vector<8x1xf32> to vector<8x128xf32>
    %128 = arith.subf %115, %127 : vector<8x128xf32>
    %cst_65 = arith.constant 9.99999974E-6 : f32
    %129 = vector.broadcast %cst_65 : f32 to vector<8x1xf32>
    %130 = arith.addf %126, %129 : vector<8x1xf32>
    %131 = math.rsqrt %130 : vector<8x1xf32>
    %132 = vector.broadcast %131 : vector<8x1xf32> to vector<8x128xf32>
    %133 = arith.mulf %128, %132 : vector<8x128xf32>
    %134 = vector.broadcast %6 : vector<1x128xf32> to vector<8x128xf32>
    %135 = arith.mulf %133, %134 : vector<8x128xf32>
    %136 = vector.broadcast %7 : vector<1x128xf32> to vector<8x128xf32>
    %137 = arith.addf %135, %136 : vector<8x128xf32>
    %138 = arith.truncf %137 : vector<8x128xf32> to vector<8x128xbf16>
    %c0_66 = arith.constant 0 : index
    %c0_67 = arith.constant 0 : index
    %c0_68 = arith.constant 0 : index
    %139 = vector.load %arg5[%c0_66, %c0_67, %c0_68] : memref<4x128x128xbf16, #tpu.memory_space<vmem>>, vector<1x128x128xbf16>
    %140 = vector.shape_cast %139 : vector<1x128x128xbf16> to vector<128x128xbf16>
    %cst_69 = arith.constant dense<0.000000e+00> : vector<8x128xf32>
    %141 = tpu.matmul %138, %140, %cst_69 {dimension_numbers = #tpu.dot_dimension_numbers<[1], [0], [0], [1], [0, 0, 1, 1], [], []>} : vector<8x128xbf16>, vector<128x128xbf16>, vector<8x128xf32> -> vector<8x128xf32>
    %142 = vector.broadcast %8 : vector<1x128xf32> to vector<8x128xf32>
    %143 = arith.addf %141, %142 : vector<8x128xf32>
    %cst_70 = arith.constant 0.000000e+00 : f32
    %144 = vector.broadcast %cst_70 : f32 to vector<8x128xf32>
    %145 = arith.maximumf %143, %144 : vector<8x128xf32>
    %146 = arith.truncf %145 : vector<8x128xf32> to vector<8x128xbf16>
    %c0_71 = arith.constant 0 : index
    %c0_72 = arith.constant 0 : index
    %c0_73 = arith.constant 0 : index
    %147 = vector.load %arg6[%c0_71, %c0_72, %c0_73] : memref<4x128x128xbf16, #tpu.memory_space<vmem>>, vector<1x128x128xbf16>
    %148 = vector.shape_cast %147 : vector<1x128x128xbf16> to vector<128x128xbf16>
    %cst_74 = arith.constant dense<0.000000e+00> : vector<8x128xf32>
    %149 = tpu.matmul %146, %148, %cst_74 {dimension_numbers = #tpu.dot_dimension_numbers<[1], [0], [0], [1], [0, 0, 1, 1], [], []>} : vector<8x128xbf16>, vector<128x128xbf16>, vector<8x128xf32> -> vector<8x128xf32>
    %150 = vector.broadcast %9 : vector<1x128xf32> to vector<8x128xf32>
    %151 = arith.addf %149, %150 : vector<8x128xf32>
    %152 = arith.addf %137, %151 : vector<8x128xf32>
    %cst_75 = arith.constant dense<0.000000e+00> : vector<8xf32>
    %153 = vector.multi_reduction <add>, %152, %cst_75 [1] : vector<8x128xf32> to vector<8xf32>
    %154 = vector.shape_cast %153 : vector<8xf32> to vector<8x1xf32>
    %cst_76 = arith.constant 0.020833334 : f32
    %155 = vector.broadcast %cst_76 : f32 to vector<8x1xf32>
    %156 = arith.mulf %154, %155 : vector<8x1xf32>
    %157 = arith.mulf %152, %152 : vector<8x128xf32>
    %cst_77 = arith.constant dense<0.000000e+00> : vector<8xf32>
    %158 = vector.multi_reduction <add>, %157, %cst_77 [1] : vector<8x128xf32> to vector<8xf32>
    %159 = vector.shape_cast %158 : vector<8xf32> to vector<8x1xf32>
    %cst_78 = arith.constant 0.020833334 : f32
    %160 = vector.broadcast %cst_78 : f32 to vector<8x1xf32>
    %161 = arith.mulf %159, %160 : vector<8x1xf32>
    %162 = arith.mulf %156, %156 : vector<8x1xf32>
    %163 = arith.subf %161, %162 : vector<8x1xf32>
    %164 = vector.broadcast %156 : vector<8x1xf32> to vector<8x128xf32>
    %165 = arith.subf %152, %164 : vector<8x128xf32>
    %cst_79 = arith.constant 9.99999974E-6 : f32
    %166 = vector.broadcast %cst_79 : f32 to vector<8x1xf32>
    %167 = arith.addf %163, %166 : vector<8x1xf32>
    %168 = math.rsqrt %167 : vector<8x1xf32>
    %169 = vector.broadcast %168 : vector<8x1xf32> to vector<8x128xf32>
    %170 = arith.mulf %165, %169 : vector<8x128xf32>
    %171 = vector.broadcast %10 : vector<1x128xf32> to vector<8x128xf32>
    %172 = arith.mulf %170, %171 : vector<8x128xf32>
    %173 = vector.broadcast %11 : vector<1x128xf32> to vector<8x128xf32>
    %174 = arith.addf %172, %173 : vector<8x128xf32>
    %c1_80 = arith.constant 1 : index
    %c0_81 = arith.constant 0 : index
    %c0_82 = arith.constant 0 : index
    %175 = vector.load %arg7[%c1_80, %c0_81, %c0_82] : memref<4x8x128xf32, #tpu.memory_space<vmem>>, vector<1x8x128xf32>
    %176 = vector.shape_cast %175 : vector<1x8x128xf32> to vector<8x128xf32>
    %177 = vector.extract_strided_slice %176 {offsets = [0, 0], sizes = [1, 128], strides = [1, 1]} : vector<8x128xf32> to vector<1x128xf32>
    %178 = vector.extract_strided_slice %176 {offsets = [1, 0], sizes = [1, 128], strides = [1, 1]} : vector<8x128xf32> to vector<1x128xf32>
    %179 = vector.extract_strided_slice %176 {offsets = [2, 0], sizes = [1, 128], strides = [1, 1]} : vector<8x128xf32> to vector<1x128xf32>
    %180 = vector.extract_strided_slice %176 {offsets = [3, 0], sizes = [1, 128], strides = [1, 1]} : vector<8x128xf32> to vector<1x128xf32>
    %181 = vector.extract_strided_slice %176 {offsets = [4, 0], sizes = [1, 128], strides = [1, 1]} : vector<8x128xf32> to vector<1x128xf32>
    %182 = vector.extract_strided_slice %176 {offsets = [5, 0], sizes = [1, 128], strides = [1, 1]} : vector<8x128xf32> to vector<1x128xf32>
    %183 = vector.extract_strided_slice %176 {offsets = [6, 0], sizes = [1, 128], strides = [1, 1]} : vector<8x128xf32> to vector<1x128xf32>
    %184 = arith.truncf %174 : vector<8x128xf32> to vector<8x128xbf16>
    %cst_83 = arith.constant 0.000000e+00 : f32
    %185 = vector.broadcast %cst_83 : f32 to vector<8x128xf32>
    %c1_84 = arith.constant 1 : index
    %c0_85 = arith.constant 0 : index
    %c0_86 = arith.constant 0 : index
    %c0_87 = arith.constant 0 : index
    %186 = vector.load %arg2[%c1_84, %c0_85, %c0_86, %c0_87] : memref<4x3x128x384xbf16, #tpu.memory_space<vmem>>, vector<1x1x128x384xbf16>
    %187 = vector.shape_cast %186 : vector<1x1x128x384xbf16> to vector<128x384xbf16>
    %cst_88 = arith.constant dense<0.000000e+00> : vector<8x384xf32>
    %188 = tpu.matmul %184, %187, %cst_88 {dimension_numbers = #tpu.dot_dimension_numbers<[1], [0], [0], [1], [0, 0, 1, 1], [], []>} : vector<8x128xbf16>, vector<128x384xbf16>, vector<8x384xf32> -> vector<8x384xf32>
    %c1_89 = arith.constant 1 : index
    %c0_90 = arith.constant 0 : index
    %c0_91 = arith.constant 0 : index
    %c0_92 = arith.constant 0 : index
    %189 = vector.load %arg3[%c1_89, %c0_90, %c0_91, %c0_92] : memref<4x3x1x384xf32, #tpu.memory_space<vmem>>, vector<1x1x1x384xf32>
    %190 = vector.shape_cast %189 : vector<1x1x1x384xf32> to vector<1x384xf32>
    %191 = vector.broadcast %190 : vector<1x384xf32> to vector<8x384xf32>
    %192 = arith.addf %188, %191 : vector<8x384xf32>
    %193 = vector.extract_strided_slice %192 {offsets = [0, 0], sizes = [8, 128], strides = [1, 1]} : vector<8x384xf32> to vector<8x128xf32>
    %194 = arith.truncf %193 : vector<8x128xf32> to vector<8x128xbf16>
    %195 = vector.extract_strided_slice %192 {offsets = [0, 128], sizes = [8, 128], strides = [1, 1]} : vector<8x384xf32> to vector<8x128xf32>
    %196 = arith.truncf %195 : vector<8x128xf32> to vector<8x128xbf16>
    %197 = vector.extract_strided_slice %192 {offsets = [0, 256], sizes = [8, 128], strides = [1, 1]} : vector<8x384xf32> to vector<8x128xf32>
    %198 = arith.truncf %197 : vector<8x128xf32> to vector<8x128xbf16>
    %cst_93 = arith.constant dense<0.000000e+00> : vector<8x8xf32>
    %199 = tpu.matmul %194, %196, %cst_93 {dimension_numbers = #tpu.dot_dimension_numbers<[1], [1], [0], [0], [0, 0, 1, 0], [], []>} : vector<8x128xbf16>, vector<8x128xbf16>, vector<8x8xf32> -> vector<8x8xf32>
    %cst_94 = arith.constant 2.500000e-01 : f32
    %200 = vector.broadcast %cst_94 : f32 to vector<8x8xf32>
    %201 = arith.mulf %199, %200 : vector<8x8xf32>
    %cst_95 = arith.constant dense<0xFF800000> : vector<8xf32>
    %202 = vector.multi_reduction <maximumf>, %201, %cst_95 [1] : vector<8x8xf32> to vector<8xf32>
    %203 = vector.shape_cast %202 : vector<8xf32> to vector<8x1xf32>
    %204 = vector.broadcast %203 : vector<8x1xf32> to vector<8x8xf32>
    %205 = arith.subf %201, %204 : vector<8x8xf32>
    %206 = math.exp %205 : vector<8x8xf32>
    %cst_96 = arith.constant dense<0.000000e+00> : vector<8xf32>
    %207 = vector.multi_reduction <add>, %206, %cst_96 [1] : vector<8x8xf32> to vector<8xf32>
    %208 = vector.shape_cast %207 : vector<8xf32> to vector<8x1xf32>
    %209 = tpu.reciprocal %208 {approx = true} : vector<8x1xf32> -> vector<8x1xf32>
    %210 = vector.broadcast %209 : vector<8x1xf32> to vector<8x8xf32>
    %211 = arith.mulf %206, %210 : vector<8x8xf32>
    %212 = arith.truncf %211 : vector<8x8xf32> to vector<8x8xbf16>
    %cst_97 = arith.constant dense<0.000000e+00> : vector<8x128xf32>
    %213 = tpu.matmul %212, %198, %cst_97 {dimension_numbers = #tpu.dot_dimension_numbers<[1], [0], [0], [1], [0, 0, 1, 1], [], []>} : vector<8x8xbf16>, vector<8x128xbf16>, vector<8x128xf32> -> vector<8x128xf32>
    %214 = arith.truncf %213 : vector<8x128xf32> to vector<8x128xbf16>
    %c1_98 = arith.constant 1 : index
    %c0_99 = arith.constant 0 : index
    %c0_100 = arith.constant 0 : index
    %c0_101 = arith.constant 0 : index
    %215 = vector.load %arg4[%c1_98, %c0_99, %c0_100, %c0_101] : memref<4x3x128x128xbf16, #tpu.memory_space<vmem>>, vector<1x1x128x128xbf16>
    %216 = vector.shape_cast %215 : vector<1x1x128x128xbf16> to vector<128x128xbf16>
    %cst_102 = arith.constant dense<0.000000e+00> : vector<8x128xf32>
    %217 = tpu.matmul %214, %216, %cst_102 {dimension_numbers = #tpu.dot_dimension_numbers<[1], [0], [0], [1], [0, 0, 1, 1], [], []>} : vector<8x128xbf16>, vector<128x128xbf16>, vector<8x128xf32> -> vector<8x128xf32>
    %218 = arith.addf %185, %217 : vector<8x128xf32>
    %c1_103 = arith.constant 1 : index
    %c1_104 = arith.constant 1 : index
    %c0_105 = arith.constant 0 : index
    %c0_106 = arith.constant 0 : index
    %219 = vector.load %arg2[%c1_103, %c1_104, %c0_105, %c0_106] : memref<4x3x128x384xbf16, #tpu.memory_space<vmem>>, vector<1x1x128x384xbf16>
    %220 = vector.shape_cast %219 : vector<1x1x128x384xbf16> to vector<128x384xbf16>
    %cst_107 = arith.constant dense<0.000000e+00> : vector<8x384xf32>
    %221 = tpu.matmul %184, %220, %cst_107 {dimension_numbers = #tpu.dot_dimension_numbers<[1], [0], [0], [1], [0, 0, 1, 1], [], []>} : vector<8x128xbf16>, vector<128x384xbf16>, vector<8x384xf32> -> vector<8x384xf32>
    %c1_108 = arith.constant 1 : index
    %c1_109 = arith.constant 1 : index
    %c0_110 = arith.constant 0 : index
    %c0_111 = arith.constant 0 : index
    %222 = vector.load %arg3[%c1_108, %c1_109, %c0_110, %c0_111] : memref<4x3x1x384xf32, #tpu.memory_space<vmem>>, vector<1x1x1x384xf32>
    %223 = vector.shape_cast %222 : vector<1x1x1x384xf32> to vector<1x384xf32>
    %224 = vector.broadcast %223 : vector<1x384xf32> to vector<8x384xf32>
    %225 = arith.addf %221, %224 : vector<8x384xf32>
    %226 = vector.extract_strided_slice %225 {offsets = [0, 0], sizes = [8, 128], strides = [1, 1]} : vector<8x384xf32> to vector<8x128xf32>
    %227 = arith.truncf %226 : vector<8x128xf32> to vector<8x128xbf16>
    %228 = vector.extract_strided_slice %225 {offsets = [0, 128], sizes = [8, 128], strides = [1, 1]} : vector<8x384xf32> to vector<8x128xf32>
    %229 = arith.truncf %228 : vector<8x128xf32> to vector<8x128xbf16>
    %230 = vector.extract_strided_slice %225 {offsets = [0, 256], sizes = [8, 128], strides = [1, 1]} : vector<8x384xf32> to vector<8x128xf32>
    %231 = arith.truncf %230 : vector<8x128xf32> to vector<8x128xbf16>
    %cst_112 = arith.constant dense<0.000000e+00> : vector<8x8xf32>
    %232 = tpu.matmul %227, %229, %cst_112 {dimension_numbers = #tpu.dot_dimension_numbers<[1], [1], [0], [0], [0, 0, 1, 0], [], []>} : vector<8x128xbf16>, vector<8x128xbf16>, vector<8x8xf32> -> vector<8x8xf32>
    %cst_113 = arith.constant 2.500000e-01 : f32
    %233 = vector.broadcast %cst_113 : f32 to vector<8x8xf32>
    %234 = arith.mulf %232, %233 : vector<8x8xf32>
    %cst_114 = arith.constant dense<0xFF800000> : vector<8xf32>
    %235 = vector.multi_reduction <maximumf>, %234, %cst_114 [1] : vector<8x8xf32> to vector<8xf32>
    %236 = vector.shape_cast %235 : vector<8xf32> to vector<8x1xf32>
    %237 = vector.broadcast %236 : vector<8x1xf32> to vector<8x8xf32>
    %238 = arith.subf %234, %237 : vector<8x8xf32>
    %239 = math.exp %238 : vector<8x8xf32>
    %cst_115 = arith.constant dense<0.000000e+00> : vector<8xf32>
    %240 = vector.multi_reduction <add>, %239, %cst_115 [1] : vector<8x8xf32> to vector<8xf32>
    %241 = vector.shape_cast %240 : vector<8xf32> to vector<8x1xf32>
    %242 = tpu.reciprocal %241 {approx = true} : vector<8x1xf32> -> vector<8x1xf32>
    %243 = vector.broadcast %242 : vector<8x1xf32> to vector<8x8xf32>
    %244 = arith.mulf %239, %243 : vector<8x8xf32>
    %245 = arith.truncf %244 : vector<8x8xf32> to vector<8x8xbf16>
    %cst_116 = arith.constant dense<0.000000e+00> : vector<8x128xf32>
    %246 = tpu.matmul %245, %231, %cst_116 {dimension_numbers = #tpu.dot_dimension_numbers<[1], [0], [0], [1], [0, 0, 1, 1], [], []>} : vector<8x8xbf16>, vector<8x128xbf16>, vector<8x128xf32> -> vector<8x128xf32>
    %247 = arith.truncf %246 : vector<8x128xf32> to vector<8x128xbf16>
    %c1_117 = arith.constant 1 : index
    %c1_118 = arith.constant 1 : index
    %c0_119 = arith.constant 0 : index
    %c0_120 = arith.constant 0 : index
    %248 = vector.load %arg4[%c1_117, %c1_118, %c0_119, %c0_120] : memref<4x3x128x128xbf16, #tpu.memory_space<vmem>>, vector<1x1x128x128xbf16>
    %249 = vector.shape_cast %248 : vector<1x1x128x128xbf16> to vector<128x128xbf16>
    %cst_121 = arith.constant dense<0.000000e+00> : vector<8x128xf32>
    %250 = tpu.matmul %247, %249, %cst_121 {dimension_numbers = #tpu.dot_dimension_numbers<[1], [0], [0], [1], [0, 0, 1, 1], [], []>} : vector<8x128xbf16>, vector<128x128xbf16>, vector<8x128xf32> -> vector<8x128xf32>
    %251 = arith.addf %218, %250 : vector<8x128xf32>
    %c1_122 = arith.constant 1 : index
    %c2_123 = arith.constant 2 : index
    %c0_124 = arith.constant 0 : index
    %c0_125 = arith.constant 0 : index
    %252 = vector.load %arg2[%c1_122, %c2_123, %c0_124, %c0_125] : memref<4x3x128x384xbf16, #tpu.memory_space<vmem>>, vector<1x1x128x384xbf16>
    %253 = vector.shape_cast %252 : vector<1x1x128x384xbf16> to vector<128x384xbf16>
    %cst_126 = arith.constant dense<0.000000e+00> : vector<8x384xf32>
    %254 = tpu.matmul %184, %253, %cst_126 {dimension_numbers = #tpu.dot_dimension_numbers<[1], [0], [0], [1], [0, 0, 1, 1], [], []>} : vector<8x128xbf16>, vector<128x384xbf16>, vector<8x384xf32> -> vector<8x384xf32>
    %c1_127 = arith.constant 1 : index
    %c2_128 = arith.constant 2 : index
    %c0_129 = arith.constant 0 : index
    %c0_130 = arith.constant 0 : index
    %255 = vector.load %arg3[%c1_127, %c2_128, %c0_129, %c0_130] : memref<4x3x1x384xf32, #tpu.memory_space<vmem>>, vector<1x1x1x384xf32>
    %256 = vector.shape_cast %255 : vector<1x1x1x384xf32> to vector<1x384xf32>
    %257 = vector.broadcast %256 : vector<1x384xf32> to vector<8x384xf32>
    %258 = arith.addf %254, %257 : vector<8x384xf32>
    %259 = vector.extract_strided_slice %258 {offsets = [0, 0], sizes = [8, 128], strides = [1, 1]} : vector<8x384xf32> to vector<8x128xf32>
    %260 = arith.truncf %259 : vector<8x128xf32> to vector<8x128xbf16>
    %261 = vector.extract_strided_slice %258 {offsets = [0, 128], sizes = [8, 128], strides = [1, 1]} : vector<8x384xf32> to vector<8x128xf32>
    %262 = arith.truncf %261 : vector<8x128xf32> to vector<8x128xbf16>
    %263 = vector.extract_strided_slice %258 {offsets = [0, 256], sizes = [8, 128], strides = [1, 1]} : vector<8x384xf32> to vector<8x128xf32>
    %264 = arith.truncf %263 : vector<8x128xf32> to vector<8x128xbf16>
    %cst_131 = arith.constant dense<0.000000e+00> : vector<8x8xf32>
    %265 = tpu.matmul %260, %262, %cst_131 {dimension_numbers = #tpu.dot_dimension_numbers<[1], [1], [0], [0], [0, 0, 1, 0], [], []>} : vector<8x128xbf16>, vector<8x128xbf16>, vector<8x8xf32> -> vector<8x8xf32>
    %cst_132 = arith.constant 2.500000e-01 : f32
    %266 = vector.broadcast %cst_132 : f32 to vector<8x8xf32>
    %267 = arith.mulf %265, %266 : vector<8x8xf32>
    %cst_133 = arith.constant dense<0xFF800000> : vector<8xf32>
    %268 = vector.multi_reduction <maximumf>, %267, %cst_133 [1] : vector<8x8xf32> to vector<8xf32>
    %269 = vector.shape_cast %268 : vector<8xf32> to vector<8x1xf32>
    %270 = vector.broadcast %269 : vector<8x1xf32> to vector<8x8xf32>
    %271 = arith.subf %267, %270 : vector<8x8xf32>
    %272 = math.exp %271 : vector<8x8xf32>
    %cst_134 = arith.constant dense<0.000000e+00> : vector<8xf32>
    %273 = vector.multi_reduction <add>, %272, %cst_134 [1] : vector<8x8xf32> to vector<8xf32>
    %274 = vector.shape_cast %273 : vector<8xf32> to vector<8x1xf32>
    %275 = tpu.reciprocal %274 {approx = true} : vector<8x1xf32> -> vector<8x1xf32>
    %276 = vector.broadcast %275 : vector<8x1xf32> to vector<8x8xf32>
    %277 = arith.mulf %272, %276 : vector<8x8xf32>
    %278 = arith.truncf %277 : vector<8x8xf32> to vector<8x8xbf16>
    %cst_135 = arith.constant dense<0.000000e+00> : vector<8x128xf32>
    %279 = tpu.matmul %278, %264, %cst_135 {dimension_numbers = #tpu.dot_dimension_numbers<[1], [0], [0], [1], [0, 0, 1, 1], [], []>} : vector<8x8xbf16>, vector<8x128xbf16>, vector<8x128xf32> -> vector<8x128xf32>
    %280 = arith.truncf %279 : vector<8x128xf32> to vector<8x128xbf16>
    %c1_136 = arith.constant 1 : index
    %c2_137 = arith.constant 2 : index
    %c0_138 = arith.constant 0 : index
    %c0_139 = arith.constant 0 : index
    %281 = vector.load %arg4[%c1_136, %c2_137, %c0_138, %c0_139] : memref<4x3x128x128xbf16, #tpu.memory_space<vmem>>, vector<1x1x128x128xbf16>
    %282 = vector.shape_cast %281 : vector<1x1x128x128xbf16> to vector<128x128xbf16>
    %cst_140 = arith.constant dense<0.000000e+00> : vector<8x128xf32>
    %283 = tpu.matmul %280, %282, %cst_140 {dimension_numbers = #tpu.dot_dimension_numbers<[1], [0], [0], [1], [0, 0, 1, 1], [], []>} : vector<8x128xbf16>, vector<128x128xbf16>, vector<8x128xf32> -> vector<8x128xf32>
    %284 = arith.addf %251, %283 : vector<8x128xf32>
    %285 = vector.broadcast %177 : vector<1x128xf32> to vector<8x128xf32>
    %286 = arith.addf %284, %285 : vector<8x128xf32>
    %287 = arith.addf %174, %286 : vector<8x128xf32>
    %cst_141 = arith.constant dense<0.000000e+00> : vector<8xf32>
    %288 = vector.multi_reduction <add>, %287, %cst_141 [1] : vector<8x128xf32> to vector<8xf32>
    %289 = vector.shape_cast %288 : vector<8xf32> to vector<8x1xf32>
    %cst_142 = arith.constant 0.020833334 : f32
    %290 = vector.broadcast %cst_142 : f32 to vector<8x1xf32>
    %291 = arith.mulf %289, %290 : vector<8x1xf32>
    %292 = arith.mulf %287, %287 : vector<8x128xf32>
    %cst_143 = arith.constant dense<0.000000e+00> : vector<8xf32>
    %293 = vector.multi_reduction <add>, %292, %cst_143 [1] : vector<8x128xf32> to vector<8xf32>
    %294 = vector.shape_cast %293 : vector<8xf32> to vector<8x1xf32>
    %cst_144 = arith.constant 0.020833334 : f32
    %295 = vector.broadcast %cst_144 : f32 to vector<8x1xf32>
    %296 = arith.mulf %294, %295 : vector<8x1xf32>
    %297 = arith.mulf %291, %291 : vector<8x1xf32>
    %298 = arith.subf %296, %297 : vector<8x1xf32>
    %299 = vector.broadcast %291 : vector<8x1xf32> to vector<8x128xf32>
    %300 = arith.subf %287, %299 : vector<8x128xf32>
    %cst_145 = arith.constant 9.99999974E-6 : f32
    %301 = vector.broadcast %cst_145 : f32 to vector<8x1xf32>
    %302 = arith.addf %298, %301 : vector<8x1xf32>
    %303 = math.rsqrt %302 : vector<8x1xf32>
    %304 = vector.broadcast %303 : vector<8x1xf32> to vector<8x128xf32>
    %305 = arith.mulf %300, %304 : vector<8x128xf32>
    %306 = vector.broadcast %178 : vector<1x128xf32> to vector<8x128xf32>
    %307 = arith.mulf %305, %306 : vector<8x128xf32>
    %308 = vector.broadcast %179 : vector<1x128xf32> to vector<8x128xf32>
    %309 = arith.addf %307, %308 : vector<8x128xf32>
    %310 = arith.truncf %309 : vector<8x128xf32> to vector<8x128xbf16>
    %c1_146 = arith.constant 1 : index
    %c0_147 = arith.constant 0 : index
    %c0_148 = arith.constant 0 : index
    %311 = vector.load %arg5[%c1_146, %c0_147, %c0_148] : memref<4x128x128xbf16, #tpu.memory_space<vmem>>, vector<1x128x128xbf16>
    %312 = vector.shape_cast %311 : vector<1x128x128xbf16> to vector<128x128xbf16>
    %cst_149 = arith.constant dense<0.000000e+00> : vector<8x128xf32>
    %313 = tpu.matmul %310, %312, %cst_149 {dimension_numbers = #tpu.dot_dimension_numbers<[1], [0], [0], [1], [0, 0, 1, 1], [], []>} : vector<8x128xbf16>, vector<128x128xbf16>, vector<8x128xf32> -> vector<8x128xf32>
    %314 = vector.broadcast %180 : vector<1x128xf32> to vector<8x128xf32>
    %315 = arith.addf %313, %314 : vector<8x128xf32>
    %cst_150 = arith.constant 0.000000e+00 : f32
    %316 = vector.broadcast %cst_150 : f32 to vector<8x128xf32>
    %317 = arith.maximumf %315, %316 : vector<8x128xf32>
    %318 = arith.truncf %317 : vector<8x128xf32> to vector<8x128xbf16>
    %c1_151 = arith.constant 1 : index
    %c0_152 = arith.constant 0 : index
    %c0_153 = arith.constant 0 : index
    %319 = vector.load %arg6[%c1_151, %c0_152, %c0_153] : memref<4x128x128xbf16, #tpu.memory_space<vmem>>, vector<1x128x128xbf16>
    %320 = vector.shape_cast %319 : vector<1x128x128xbf16> to vector<128x128xbf16>
    %cst_154 = arith.constant dense<0.000000e+00> : vector<8x128xf32>
    %321 = tpu.matmul %318, %320, %cst_154 {dimension_numbers = #tpu.dot_dimension_numbers<[1], [0], [0], [1], [0, 0, 1, 1], [], []>} : vector<8x128xbf16>, vector<128x128xbf16>, vector<8x128xf32> -> vector<8x128xf32>
    %322 = vector.broadcast %181 : vector<1x128xf32> to vector<8x128xf32>
    %323 = arith.addf %321, %322 : vector<8x128xf32>
    %324 = arith.addf %309, %323 : vector<8x128xf32>
    %cst_155 = arith.constant dense<0.000000e+00> : vector<8xf32>
    %325 = vector.multi_reduction <add>, %324, %cst_155 [1] : vector<8x128xf32> to vector<8xf32>
    %326 = vector.shape_cast %325 : vector<8xf32> to vector<8x1xf32>
    %cst_156 = arith.constant 0.020833334 : f32
    %327 = vector.broadcast %cst_156 : f32 to vector<8x1xf32>
    %328 = arith.mulf %326, %327 : vector<8x1xf32>
    %329 = arith.mulf %324, %324 : vector<8x128xf32>
    %cst_157 = arith.constant dense<0.000000e+00> : vector<8xf32>
    %330 = vector.multi_reduction <add>, %329, %cst_157 [1] : vector<8x128xf32> to vector<8xf32>
    %331 = vector.shape_cast %330 : vector<8xf32> to vector<8x1xf32>
    %cst_158 = arith.constant 0.020833334 : f32
    %332 = vector.broadcast %cst_158 : f32 to vector<8x1xf32>
    %333 = arith.mulf %331, %332 : vector<8x1xf32>
    %334 = arith.mulf %328, %328 : vector<8x1xf32>
    %335 = arith.subf %333, %334 : vector<8x1xf32>
    %336 = vector.broadcast %328 : vector<8x1xf32> to vector<8x128xf32>
    %337 = arith.subf %324, %336 : vector<8x128xf32>
    %cst_159 = arith.constant 9.99999974E-6 : f32
    %338 = vector.broadcast %cst_159 : f32 to vector<8x1xf32>
    %339 = arith.addf %335, %338 : vector<8x1xf32>
    %340 = math.rsqrt %339 : vector<8x1xf32>
    %341 = vector.broadcast %340 : vector<8x1xf32> to vector<8x128xf32>
    %342 = arith.mulf %337, %341 : vector<8x128xf32>
    %343 = vector.broadcast %182 : vector<1x128xf32> to vector<8x128xf32>
    %344 = arith.mulf %342, %343 : vector<8x128xf32>
    %345 = vector.broadcast %183 : vector<1x128xf32> to vector<8x128xf32>
    %346 = arith.addf %344, %345 : vector<8x128xf32>
    %c2_160 = arith.constant 2 : index
    %c0_161 = arith.constant 0 : index
    %c0_162 = arith.constant 0 : index
    %347 = vector.load %arg7[%c2_160, %c0_161, %c0_162] : memref<4x8x128xf32, #tpu.memory_space<vmem>>, vector<1x8x128xf32>
    %348 = vector.shape_cast %347 : vector<1x8x128xf32> to vector<8x128xf32>
    %349 = vector.extract_strided_slice %348 {offsets = [0, 0], sizes = [1, 128], strides = [1, 1]} : vector<8x128xf32> to vector<1x128xf32>
    %350 = vector.extract_strided_slice %348 {offsets = [1, 0], sizes = [1, 128], strides = [1, 1]} : vector<8x128xf32> to vector<1x128xf32>
    %351 = vector.extract_strided_slice %348 {offsets = [2, 0], sizes = [1, 128], strides = [1, 1]} : vector<8x128xf32> to vector<1x128xf32>
    %352 = vector.extract_strided_slice %348 {offsets = [3, 0], sizes = [1, 128], strides = [1, 1]} : vector<8x128xf32> to vector<1x128xf32>
    %353 = vector.extract_strided_slice %348 {offsets = [4, 0], sizes = [1, 128], strides = [1, 1]} : vector<8x128xf32> to vector<1x128xf32>
    %354 = vector.extract_strided_slice %348 {offsets = [5, 0], sizes = [1, 128], strides = [1, 1]} : vector<8x128xf32> to vector<1x128xf32>
    %355 = vector.extract_strided_slice %348 {offsets = [6, 0], sizes = [1, 128], strides = [1, 1]} : vector<8x128xf32> to vector<1x128xf32>
    %356 = arith.truncf %346 : vector<8x128xf32> to vector<8x128xbf16>
    %cst_163 = arith.constant 0.000000e+00 : f32
    %357 = vector.broadcast %cst_163 : f32 to vector<8x128xf32>
    %c2_164 = arith.constant 2 : index
    %c0_165 = arith.constant 0 : index
    %c0_166 = arith.constant 0 : index
    %c0_167 = arith.constant 0 : index
    %358 = vector.load %arg2[%c2_164, %c0_165, %c0_166, %c0_167] : memref<4x3x128x384xbf16, #tpu.memory_space<vmem>>, vector<1x1x128x384xbf16>
    %359 = vector.shape_cast %358 : vector<1x1x128x384xbf16> to vector<128x384xbf16>
    %cst_168 = arith.constant dense<0.000000e+00> : vector<8x384xf32>
    %360 = tpu.matmul %356, %359, %cst_168 {dimension_numbers = #tpu.dot_dimension_numbers<[1], [0], [0], [1], [0, 0, 1, 1], [], []>} : vector<8x128xbf16>, vector<128x384xbf16>, vector<8x384xf32> -> vector<8x384xf32>
    %c2_169 = arith.constant 2 : index
    %c0_170 = arith.constant 0 : index
    %c0_171 = arith.constant 0 : index
    %c0_172 = arith.constant 0 : index
    %361 = vector.load %arg3[%c2_169, %c0_170, %c0_171, %c0_172] : memref<4x3x1x384xf32, #tpu.memory_space<vmem>>, vector<1x1x1x384xf32>
    %362 = vector.shape_cast %361 : vector<1x1x1x384xf32> to vector<1x384xf32>
    %363 = vector.broadcast %362 : vector<1x384xf32> to vector<8x384xf32>
    %364 = arith.addf %360, %363 : vector<8x384xf32>
    %365 = vector.extract_strided_slice %364 {offsets = [0, 0], sizes = [8, 128], strides = [1, 1]} : vector<8x384xf32> to vector<8x128xf32>
    %366 = arith.truncf %365 : vector<8x128xf32> to vector<8x128xbf16>
    %367 = vector.extract_strided_slice %364 {offsets = [0, 128], sizes = [8, 128], strides = [1, 1]} : vector<8x384xf32> to vector<8x128xf32>
    %368 = arith.truncf %367 : vector<8x128xf32> to vector<8x128xbf16>
    %369 = vector.extract_strided_slice %364 {offsets = [0, 256], sizes = [8, 128], strides = [1, 1]} : vector<8x384xf32> to vector<8x128xf32>
    %370 = arith.truncf %369 : vector<8x128xf32> to vector<8x128xbf16>
    %cst_173 = arith.constant dense<0.000000e+00> : vector<8x8xf32>
    %371 = tpu.matmul %366, %368, %cst_173 {dimension_numbers = #tpu.dot_dimension_numbers<[1], [1], [0], [0], [0, 0, 1, 0], [], []>} : vector<8x128xbf16>, vector<8x128xbf16>, vector<8x8xf32> -> vector<8x8xf32>
    %cst_174 = arith.constant 2.500000e-01 : f32
    %372 = vector.broadcast %cst_174 : f32 to vector<8x8xf32>
    %373 = arith.mulf %371, %372 : vector<8x8xf32>
    %cst_175 = arith.constant dense<0xFF800000> : vector<8xf32>
    %374 = vector.multi_reduction <maximumf>, %373, %cst_175 [1] : vector<8x8xf32> to vector<8xf32>
    %375 = vector.shape_cast %374 : vector<8xf32> to vector<8x1xf32>
    %376 = vector.broadcast %375 : vector<8x1xf32> to vector<8x8xf32>
    %377 = arith.subf %373, %376 : vector<8x8xf32>
    %378 = math.exp %377 : vector<8x8xf32>
    %cst_176 = arith.constant dense<0.000000e+00> : vector<8xf32>
    %379 = vector.multi_reduction <add>, %378, %cst_176 [1] : vector<8x8xf32> to vector<8xf32>
    %380 = vector.shape_cast %379 : vector<8xf32> to vector<8x1xf32>
    %381 = tpu.reciprocal %380 {approx = true} : vector<8x1xf32> -> vector<8x1xf32>
    %382 = vector.broadcast %381 : vector<8x1xf32> to vector<8x8xf32>
    %383 = arith.mulf %378, %382 : vector<8x8xf32>
    %384 = arith.truncf %383 : vector<8x8xf32> to vector<8x8xbf16>
    %cst_177 = arith.constant dense<0.000000e+00> : vector<8x128xf32>
    %385 = tpu.matmul %384, %370, %cst_177 {dimension_numbers = #tpu.dot_dimension_numbers<[1], [0], [0], [1], [0, 0, 1, 1], [], []>} : vector<8x8xbf16>, vector<8x128xbf16>, vector<8x128xf32> -> vector<8x128xf32>
    %386 = arith.truncf %385 : vector<8x128xf32> to vector<8x128xbf16>
    %c2_178 = arith.constant 2 : index
    %c0_179 = arith.constant 0 : index
    %c0_180 = arith.constant 0 : index
    %c0_181 = arith.constant 0 : index
    %387 = vector.load %arg4[%c2_178, %c0_179, %c0_180, %c0_181] : memref<4x3x128x128xbf16, #tpu.memory_space<vmem>>, vector<1x1x128x128xbf16>
    %388 = vector.shape_cast %387 : vector<1x1x128x128xbf16> to vector<128x128xbf16>
    %cst_182 = arith.constant dense<0.000000e+00> : vector<8x128xf32>
    %389 = tpu.matmul %386, %388, %cst_182 {dimension_numbers = #tpu.dot_dimension_numbers<[1], [0], [0], [1], [0, 0, 1, 1], [], []>} : vector<8x128xbf16>, vector<128x128xbf16>, vector<8x128xf32> -> vector<8x128xf32>
    %390 = arith.addf %357, %389 : vector<8x128xf32>
    %c2_183 = arith.constant 2 : index
    %c1_184 = arith.constant 1 : index
    %c0_185 = arith.constant 0 : index
    %c0_186 = arith.constant 0 : index
    %391 = vector.load %arg2[%c2_183, %c1_184, %c0_185, %c0_186] : memref<4x3x128x384xbf16, #tpu.memory_space<vmem>>, vector<1x1x128x384xbf16>
    %392 = vector.shape_cast %391 : vector<1x1x128x384xbf16> to vector<128x384xbf16>
    %cst_187 = arith.constant dense<0.000000e+00> : vector<8x384xf32>
    %393 = tpu.matmul %356, %392, %cst_187 {dimension_numbers = #tpu.dot_dimension_numbers<[1], [0], [0], [1], [0, 0, 1, 1], [], []>} : vector<8x128xbf16>, vector<128x384xbf16>, vector<8x384xf32> -> vector<8x384xf32>
    %c2_188 = arith.constant 2 : index
    %c1_189 = arith.constant 1 : index
    %c0_190 = arith.constant 0 : index
    %c0_191 = arith.constant 0 : index
    %394 = vector.load %arg3[%c2_188, %c1_189, %c0_190, %c0_191] : memref<4x3x1x384xf32, #tpu.memory_space<vmem>>, vector<1x1x1x384xf32>
    %395 = vector.shape_cast %394 : vector<1x1x1x384xf32> to vector<1x384xf32>
    %396 = vector.broadcast %395 : vector<1x384xf32> to vector<8x384xf32>
    %397 = arith.addf %393, %396 : vector<8x384xf32>
    %398 = vector.extract_strided_slice %397 {offsets = [0, 0], sizes = [8, 128], strides = [1, 1]} : vector<8x384xf32> to vector<8x128xf32>
    %399 = arith.truncf %398 : vector<8x128xf32> to vector<8x128xbf16>
    %400 = vector.extract_strided_slice %397 {offsets = [0, 128], sizes = [8, 128], strides = [1, 1]} : vector<8x384xf32> to vector<8x128xf32>
    %401 = arith.truncf %400 : vector<8x128xf32> to vector<8x128xbf16>
    %402 = vector.extract_strided_slice %397 {offsets = [0, 256], sizes = [8, 128], strides = [1, 1]} : vector<8x384xf32> to vector<8x128xf32>
    %403 = arith.truncf %402 : vector<8x128xf32> to vector<8x128xbf16>
    %cst_192 = arith.constant dense<0.000000e+00> : vector<8x8xf32>
    %404 = tpu.matmul %399, %401, %cst_192 {dimension_numbers = #tpu.dot_dimension_numbers<[1], [1], [0], [0], [0, 0, 1, 0], [], []>} : vector<8x128xbf16>, vector<8x128xbf16>, vector<8x8xf32> -> vector<8x8xf32>
    %cst_193 = arith.constant 2.500000e-01 : f32
    %405 = vector.broadcast %cst_193 : f32 to vector<8x8xf32>
    %406 = arith.mulf %404, %405 : vector<8x8xf32>
    %cst_194 = arith.constant dense<0xFF800000> : vector<8xf32>
    %407 = vector.multi_reduction <maximumf>, %406, %cst_194 [1] : vector<8x8xf32> to vector<8xf32>
    %408 = vector.shape_cast %407 : vector<8xf32> to vector<8x1xf32>
    %409 = vector.broadcast %408 : vector<8x1xf32> to vector<8x8xf32>
    %410 = arith.subf %406, %409 : vector<8x8xf32>
    %411 = math.exp %410 : vector<8x8xf32>
    %cst_195 = arith.constant dense<0.000000e+00> : vector<8xf32>
    %412 = vector.multi_reduction <add>, %411, %cst_195 [1] : vector<8x8xf32> to vector<8xf32>
    %413 = vector.shape_cast %412 : vector<8xf32> to vector<8x1xf32>
    %414 = tpu.reciprocal %413 {approx = true} : vector<8x1xf32> -> vector<8x1xf32>
    %415 = vector.broadcast %414 : vector<8x1xf32> to vector<8x8xf32>
    %416 = arith.mulf %411, %415 : vector<8x8xf32>
    %417 = arith.truncf %416 : vector<8x8xf32> to vector<8x8xbf16>
    %cst_196 = arith.constant dense<0.000000e+00> : vector<8x128xf32>
    %418 = tpu.matmul %417, %403, %cst_196 {dimension_numbers = #tpu.dot_dimension_numbers<[1], [0], [0], [1], [0, 0, 1, 1], [], []>} : vector<8x8xbf16>, vector<8x128xbf16>, vector<8x128xf32> -> vector<8x128xf32>
    %419 = arith.truncf %418 : vector<8x128xf32> to vector<8x128xbf16>
    %c2_197 = arith.constant 2 : index
    %c1_198 = arith.constant 1 : index
    %c0_199 = arith.constant 0 : index
    %c0_200 = arith.constant 0 : index
    %420 = vector.load %arg4[%c2_197, %c1_198, %c0_199, %c0_200] : memref<4x3x128x128xbf16, #tpu.memory_space<vmem>>, vector<1x1x128x128xbf16>
    %421 = vector.shape_cast %420 : vector<1x1x128x128xbf16> to vector<128x128xbf16>
    %cst_201 = arith.constant dense<0.000000e+00> : vector<8x128xf32>
    %422 = tpu.matmul %419, %421, %cst_201 {dimension_numbers = #tpu.dot_dimension_numbers<[1], [0], [0], [1], [0, 0, 1, 1], [], []>} : vector<8x128xbf16>, vector<128x128xbf16>, vector<8x128xf32> -> vector<8x128xf32>
    %423 = arith.addf %390, %422 : vector<8x128xf32>
    %c2_202 = arith.constant 2 : index
    %c2_203 = arith.constant 2 : index
    %c0_204 = arith.constant 0 : index
    %c0_205 = arith.constant 0 : index
    %424 = vector.load %arg2[%c2_202, %c2_203, %c0_204, %c0_205] : memref<4x3x128x384xbf16, #tpu.memory_space<vmem>>, vector<1x1x128x384xbf16>
    %425 = vector.shape_cast %424 : vector<1x1x128x384xbf16> to vector<128x384xbf16>
    %cst_206 = arith.constant dense<0.000000e+00> : vector<8x384xf32>
    %426 = tpu.matmul %356, %425, %cst_206 {dimension_numbers = #tpu.dot_dimension_numbers<[1], [0], [0], [1], [0, 0, 1, 1], [], []>} : vector<8x128xbf16>, vector<128x384xbf16>, vector<8x384xf32> -> vector<8x384xf32>
    %c2_207 = arith.constant 2 : index
    %c2_208 = arith.constant 2 : index
    %c0_209 = arith.constant 0 : index
    %c0_210 = arith.constant 0 : index
    %427 = vector.load %arg3[%c2_207, %c2_208, %c0_209, %c0_210] : memref<4x3x1x384xf32, #tpu.memory_space<vmem>>, vector<1x1x1x384xf32>
    %428 = vector.shape_cast %427 : vector<1x1x1x384xf32> to vector<1x384xf32>
    %429 = vector.broadcast %428 : vector<1x384xf32> to vector<8x384xf32>
    %430 = arith.addf %426, %429 : vector<8x384xf32>
    %431 = vector.extract_strided_slice %430 {offsets = [0, 0], sizes = [8, 128], strides = [1, 1]} : vector<8x384xf32> to vector<8x128xf32>
    %432 = arith.truncf %431 : vector<8x128xf32> to vector<8x128xbf16>
    %433 = vector.extract_strided_slice %430 {offsets = [0, 128], sizes = [8, 128], strides = [1, 1]} : vector<8x384xf32> to vector<8x128xf32>
    %434 = arith.truncf %433 : vector<8x128xf32> to vector<8x128xbf16>
    %435 = vector.extract_strided_slice %430 {offsets = [0, 256], sizes = [8, 128], strides = [1, 1]} : vector<8x384xf32> to vector<8x128xf32>
    %436 = arith.truncf %435 : vector<8x128xf32> to vector<8x128xbf16>
    %cst_211 = arith.constant dense<0.000000e+00> : vector<8x8xf32>
    %437 = tpu.matmul %432, %434, %cst_211 {dimension_numbers = #tpu.dot_dimension_numbers<[1], [1], [0], [0], [0, 0, 1, 0], [], []>} : vector<8x128xbf16>, vector<8x128xbf16>, vector<8x8xf32> -> vector<8x8xf32>
    %cst_212 = arith.constant 2.500000e-01 : f32
    %438 = vector.broadcast %cst_212 : f32 to vector<8x8xf32>
    %439 = arith.mulf %437, %438 : vector<8x8xf32>
    %cst_213 = arith.constant dense<0xFF800000> : vector<8xf32>
    %440 = vector.multi_reduction <maximumf>, %439, %cst_213 [1] : vector<8x8xf32> to vector<8xf32>
    %441 = vector.shape_cast %440 : vector<8xf32> to vector<8x1xf32>
    %442 = vector.broadcast %441 : vector<8x1xf32> to vector<8x8xf32>
    %443 = arith.subf %439, %442 : vector<8x8xf32>
    %444 = math.exp %443 : vector<8x8xf32>
    %cst_214 = arith.constant dense<0.000000e+00> : vector<8xf32>
    %445 = vector.multi_reduction <add>, %444, %cst_214 [1] : vector<8x8xf32> to vector<8xf32>
    %446 = vector.shape_cast %445 : vector<8xf32> to vector<8x1xf32>
    %447 = tpu.reciprocal %446 {approx = true} : vector<8x1xf32> -> vector<8x1xf32>
    %448 = vector.broadcast %447 : vector<8x1xf32> to vector<8x8xf32>
    %449 = arith.mulf %444, %448 : vector<8x8xf32>
    %450 = arith.truncf %449 : vector<8x8xf32> to vector<8x8xbf16>
    %cst_215 = arith.constant dense<0.000000e+00> : vector<8x128xf32>
    %451 = tpu.matmul %450, %436, %cst_215 {dimension_numbers = #tpu.dot_dimension_numbers<[1], [0], [0], [1], [0, 0, 1, 1], [], []>} : vector<8x8xbf16>, vector<8x128xbf16>, vector<8x128xf32> -> vector<8x128xf32>
    %452 = arith.truncf %451 : vector<8x128xf32> to vector<8x128xbf16>
    %c2_216 = arith.constant 2 : index
    %c2_217 = arith.constant 2 : index
    %c0_218 = arith.constant 0 : index
    %c0_219 = arith.constant 0 : index
    %453 = vector.load %arg4[%c2_216, %c2_217, %c0_218, %c0_219] : memref<4x3x128x128xbf16, #tpu.memory_space<vmem>>, vector<1x1x128x128xbf16>
    %454 = vector.shape_cast %453 : vector<1x1x128x128xbf16> to vector<128x128xbf16>
    %cst_220 = arith.constant dense<0.000000e+00> : vector<8x128xf32>
    %455 = tpu.matmul %452, %454, %cst_220 {dimension_numbers = #tpu.dot_dimension_numbers<[1], [0], [0], [1], [0, 0, 1, 1], [], []>} : vector<8x128xbf16>, vector<128x128xbf16>, vector<8x128xf32> -> vector<8x128xf32>
    %456 = arith.addf %423, %455 : vector<8x128xf32>
    %457 = vector.broadcast %349 : vector<1x128xf32> to vector<8x128xf32>
    %458 = arith.addf %456, %457 : vector<8x128xf32>
    %459 = arith.addf %346, %458 : vector<8x128xf32>
    %cst_221 = arith.constant dense<0.000000e+00> : vector<8xf32>
    %460 = vector.multi_reduction <add>, %459, %cst_221 [1] : vector<8x128xf32> to vector<8xf32>
    %461 = vector.shape_cast %460 : vector<8xf32> to vector<8x1xf32>
    %cst_222 = arith.constant 0.020833334 : f32
    %462 = vector.broadcast %cst_222 : f32 to vector<8x1xf32>
    %463 = arith.mulf %461, %462 : vector<8x1xf32>
    %464 = arith.mulf %459, %459 : vector<8x128xf32>
    %cst_223 = arith.constant dense<0.000000e+00> : vector<8xf32>
    %465 = vector.multi_reduction <add>, %464, %cst_223 [1] : vector<8x128xf32> to vector<8xf32>
    %466 = vector.shape_cast %465 : vector<8xf32> to vector<8x1xf32>
    %cst_224 = arith.constant 0.020833334 : f32
    %467 = vector.broadcast %cst_224 : f32 to vector<8x1xf32>
    %468 = arith.mulf %466, %467 : vector<8x1xf32>
    %469 = arith.mulf %463, %463 : vector<8x1xf32>
    %470 = arith.subf %468, %469 : vector<8x1xf32>
    %471 = vector.broadcast %463 : vector<8x1xf32> to vector<8x128xf32>
    %472 = arith.subf %459, %471 : vector<8x128xf32>
    %cst_225 = arith.constant 9.99999974E-6 : f32
    %473 = vector.broadcast %cst_225 : f32 to vector<8x1xf32>
    %474 = arith.addf %470, %473 : vector<8x1xf32>
    %475 = math.rsqrt %474 : vector<8x1xf32>
    %476 = vector.broadcast %475 : vector<8x1xf32> to vector<8x128xf32>
    %477 = arith.mulf %472, %476 : vector<8x128xf32>
    %478 = vector.broadcast %350 : vector<1x128xf32> to vector<8x128xf32>
    %479 = arith.mulf %477, %478 : vector<8x128xf32>
    %480 = vector.broadcast %351 : vector<1x128xf32> to vector<8x128xf32>
    %481 = arith.addf %479, %480 : vector<8x128xf32>
    %482 = arith.truncf %481 : vector<8x128xf32> to vector<8x128xbf16>
    %c2_226 = arith.constant 2 : index
    %c0_227 = arith.constant 0 : index
    %c0_228 = arith.constant 0 : index
    %483 = vector.load %arg5[%c2_226, %c0_227, %c0_228] : memref<4x128x128xbf16, #tpu.memory_space<vmem>>, vector<1x128x128xbf16>
    %484 = vector.shape_cast %483 : vector<1x128x128xbf16> to vector<128x128xbf16>
    %cst_229 = arith.constant dense<0.000000e+00> : vector<8x128xf32>
    %485 = tpu.matmul %482, %484, %cst_229 {dimension_numbers = #tpu.dot_dimension_numbers<[1], [0], [0], [1], [0, 0, 1, 1], [], []>} : vector<8x128xbf16>, vector<128x128xbf16>, vector<8x128xf32> -> vector<8x128xf32>
    %486 = vector.broadcast %352 : vector<1x128xf32> to vector<8x128xf32>
    %487 = arith.addf %485, %486 : vector<8x128xf32>
    %cst_230 = arith.constant 0.000000e+00 : f32
    %488 = vector.broadcast %cst_230 : f32 to vector<8x128xf32>
    %489 = arith.maximumf %487, %488 : vector<8x128xf32>
    %490 = arith.truncf %489 : vector<8x128xf32> to vector<8x128xbf16>
    %c2_231 = arith.constant 2 : index
    %c0_232 = arith.constant 0 : index
    %c0_233 = arith.constant 0 : index
    %491 = vector.load %arg6[%c2_231, %c0_232, %c0_233] : memref<4x128x128xbf16, #tpu.memory_space<vmem>>, vector<1x128x128xbf16>
    %492 = vector.shape_cast %491 : vector<1x128x128xbf16> to vector<128x128xbf16>
    %cst_234 = arith.constant dense<0.000000e+00> : vector<8x128xf32>
    %493 = tpu.matmul %490, %492, %cst_234 {dimension_numbers = #tpu.dot_dimension_numbers<[1], [0], [0], [1], [0, 0, 1, 1], [], []>} : vector<8x128xbf16>, vector<128x128xbf16>, vector<8x128xf32> -> vector<8x128xf32>
    %494 = vector.broadcast %353 : vector<1x128xf32> to vector<8x128xf32>
    %495 = arith.addf %493, %494 : vector<8x128xf32>
    %496 = arith.addf %481, %495 : vector<8x128xf32>
    %cst_235 = arith.constant dense<0.000000e+00> : vector<8xf32>
    %497 = vector.multi_reduction <add>, %496, %cst_235 [1] : vector<8x128xf32> to vector<8xf32>
    %498 = vector.shape_cast %497 : vector<8xf32> to vector<8x1xf32>
    %cst_236 = arith.constant 0.020833334 : f32
    %499 = vector.broadcast %cst_236 : f32 to vector<8x1xf32>
    %500 = arith.mulf %498, %499 : vector<8x1xf32>
    %501 = arith.mulf %496, %496 : vector<8x128xf32>
    %cst_237 = arith.constant dense<0.000000e+00> : vector<8xf32>
    %502 = vector.multi_reduction <add>, %501, %cst_237 [1] : vector<8x128xf32> to vector<8xf32>
    %503 = vector.shape_cast %502 : vector<8xf32> to vector<8x1xf32>
    %cst_238 = arith.constant 0.020833334 : f32
    %504 = vector.broadcast %cst_238 : f32 to vector<8x1xf32>
    %505 = arith.mulf %503, %504 : vector<8x1xf32>
    %506 = arith.mulf %500, %500 : vector<8x1xf32>
    %507 = arith.subf %505, %506 : vector<8x1xf32>
    %508 = vector.broadcast %500 : vector<8x1xf32> to vector<8x128xf32>
    %509 = arith.subf %496, %508 : vector<8x128xf32>
    %cst_239 = arith.constant 9.99999974E-6 : f32
    %510 = vector.broadcast %cst_239 : f32 to vector<8x1xf32>
    %511 = arith.addf %507, %510 : vector<8x1xf32>
    %512 = math.rsqrt %511 : vector<8x1xf32>
    %513 = vector.broadcast %512 : vector<8x1xf32> to vector<8x128xf32>
    %514 = arith.mulf %509, %513 : vector<8x128xf32>
    %515 = vector.broadcast %354 : vector<1x128xf32> to vector<8x128xf32>
    %516 = arith.mulf %514, %515 : vector<8x128xf32>
    %517 = vector.broadcast %355 : vector<1x128xf32> to vector<8x128xf32>
    %518 = arith.addf %516, %517 : vector<8x128xf32>
    %c3 = arith.constant 3 : index
    %c0_240 = arith.constant 0 : index
    %c0_241 = arith.constant 0 : index
    %519 = vector.load %arg7[%c3, %c0_240, %c0_241] : memref<4x8x128xf32, #tpu.memory_space<vmem>>, vector<1x8x128xf32>
    %520 = vector.shape_cast %519 : vector<1x8x128xf32> to vector<8x128xf32>
    %521 = vector.extract_strided_slice %520 {offsets = [0, 0], sizes = [1, 128], strides = [1, 1]} : vector<8x128xf32> to vector<1x128xf32>
    %522 = vector.extract_strided_slice %520 {offsets = [1, 0], sizes = [1, 128], strides = [1, 1]} : vector<8x128xf32> to vector<1x128xf32>
    %523 = vector.extract_strided_slice %520 {offsets = [2, 0], sizes = [1, 128], strides = [1, 1]} : vector<8x128xf32> to vector<1x128xf32>
    %524 = vector.extract_strided_slice %520 {offsets = [3, 0], sizes = [1, 128], strides = [1, 1]} : vector<8x128xf32> to vector<1x128xf32>
    %525 = vector.extract_strided_slice %520 {offsets = [4, 0], sizes = [1, 128], strides = [1, 1]} : vector<8x128xf32> to vector<1x128xf32>
    %526 = vector.extract_strided_slice %520 {offsets = [5, 0], sizes = [1, 128], strides = [1, 1]} : vector<8x128xf32> to vector<1x128xf32>
    %527 = vector.extract_strided_slice %520 {offsets = [6, 0], sizes = [1, 128], strides = [1, 1]} : vector<8x128xf32> to vector<1x128xf32>
    %528 = arith.truncf %518 : vector<8x128xf32> to vector<8x128xbf16>
    %cst_242 = arith.constant 0.000000e+00 : f32
    %529 = vector.broadcast %cst_242 : f32 to vector<8x128xf32>
    %c3_243 = arith.constant 3 : index
    %c0_244 = arith.constant 0 : index
    %c0_245 = arith.constant 0 : index
    %c0_246 = arith.constant 0 : index
    %530 = vector.load %arg2[%c3_243, %c0_244, %c0_245, %c0_246] : memref<4x3x128x384xbf16, #tpu.memory_space<vmem>>, vector<1x1x128x384xbf16>
    %531 = vector.shape_cast %530 : vector<1x1x128x384xbf16> to vector<128x384xbf16>
    %cst_247 = arith.constant dense<0.000000e+00> : vector<8x384xf32>
    %532 = tpu.matmul %528, %531, %cst_247 {dimension_numbers = #tpu.dot_dimension_numbers<[1], [0], [0], [1], [0, 0, 1, 1], [], []>} : vector<8x128xbf16>, vector<128x384xbf16>, vector<8x384xf32> -> vector<8x384xf32>
    %c3_248 = arith.constant 3 : index
    %c0_249 = arith.constant 0 : index
    %c0_250 = arith.constant 0 : index
    %c0_251 = arith.constant 0 : index
    %533 = vector.load %arg3[%c3_248, %c0_249, %c0_250, %c0_251] : memref<4x3x1x384xf32, #tpu.memory_space<vmem>>, vector<1x1x1x384xf32>
    %534 = vector.shape_cast %533 : vector<1x1x1x384xf32> to vector<1x384xf32>
    %535 = vector.broadcast %534 : vector<1x384xf32> to vector<8x384xf32>
    %536 = arith.addf %532, %535 : vector<8x384xf32>
    %537 = vector.extract_strided_slice %536 {offsets = [0, 0], sizes = [8, 128], strides = [1, 1]} : vector<8x384xf32> to vector<8x128xf32>
    %538 = arith.truncf %537 : vector<8x128xf32> to vector<8x128xbf16>
    %539 = vector.extract_strided_slice %536 {offsets = [0, 128], sizes = [8, 128], strides = [1, 1]} : vector<8x384xf32> to vector<8x128xf32>
    %540 = arith.truncf %539 : vector<8x128xf32> to vector<8x128xbf16>
    %541 = vector.extract_strided_slice %536 {offsets = [0, 256], sizes = [8, 128], strides = [1, 1]} : vector<8x384xf32> to vector<8x128xf32>
    %542 = arith.truncf %541 : vector<8x128xf32> to vector<8x128xbf16>
    %cst_252 = arith.constant dense<0.000000e+00> : vector<8x8xf32>
    %543 = tpu.matmul %538, %540, %cst_252 {dimension_numbers = #tpu.dot_dimension_numbers<[1], [1], [0], [0], [0, 0, 1, 0], [], []>} : vector<8x128xbf16>, vector<8x128xbf16>, vector<8x8xf32> -> vector<8x8xf32>
    %cst_253 = arith.constant 2.500000e-01 : f32
    %544 = vector.broadcast %cst_253 : f32 to vector<8x8xf32>
    %545 = arith.mulf %543, %544 : vector<8x8xf32>
    %cst_254 = arith.constant dense<0xFF800000> : vector<8xf32>
    %546 = vector.multi_reduction <maximumf>, %545, %cst_254 [1] : vector<8x8xf32> to vector<8xf32>
    %547 = vector.shape_cast %546 : vector<8xf32> to vector<8x1xf32>
    %548 = vector.broadcast %547 : vector<8x1xf32> to vector<8x8xf32>
    %549 = arith.subf %545, %548 : vector<8x8xf32>
    %550 = math.exp %549 : vector<8x8xf32>
    %cst_255 = arith.constant dense<0.000000e+00> : vector<8xf32>
    %551 = vector.multi_reduction <add>, %550, %cst_255 [1] : vector<8x8xf32> to vector<8xf32>
    %552 = vector.shape_cast %551 : vector<8xf32> to vector<8x1xf32>
    %553 = tpu.reciprocal %552 {approx = true} : vector<8x1xf32> -> vector<8x1xf32>
    %554 = vector.broadcast %553 : vector<8x1xf32> to vector<8x8xf32>
    %555 = arith.mulf %550, %554 : vector<8x8xf32>
    %556 = arith.truncf %555 : vector<8x8xf32> to vector<8x8xbf16>
    %cst_256 = arith.constant dense<0.000000e+00> : vector<8x128xf32>
    %557 = tpu.matmul %556, %542, %cst_256 {dimension_numbers = #tpu.dot_dimension_numbers<[1], [0], [0], [1], [0, 0, 1, 1], [], []>} : vector<8x8xbf16>, vector<8x128xbf16>, vector<8x128xf32> -> vector<8x128xf32>
    %558 = arith.truncf %557 : vector<8x128xf32> to vector<8x128xbf16>
    %c3_257 = arith.constant 3 : index
    %c0_258 = arith.constant 0 : index
    %c0_259 = arith.constant 0 : index
    %c0_260 = arith.constant 0 : index
    %559 = vector.load %arg4[%c3_257, %c0_258, %c0_259, %c0_260] : memref<4x3x128x128xbf16, #tpu.memory_space<vmem>>, vector<1x1x128x128xbf16>
    %560 = vector.shape_cast %559 : vector<1x1x128x128xbf16> to vector<128x128xbf16>
    %cst_261 = arith.constant dense<0.000000e+00> : vector<8x128xf32>
    %561 = tpu.matmul %558, %560, %cst_261 {dimension_numbers = #tpu.dot_dimension_numbers<[1], [0], [0], [1], [0, 0, 1, 1], [], []>} : vector<8x128xbf16>, vector<128x128xbf16>, vector<8x128xf32> -> vector<8x128xf32>
    %562 = arith.addf %529, %561 : vector<8x128xf32>
    %c3_262 = arith.constant 3 : index
    %c1_263 = arith.constant 1 : index
    %c0_264 = arith.constant 0 : index
    %c0_265 = arith.constant 0 : index
    %563 = vector.load %arg2[%c3_262, %c1_263, %c0_264, %c0_265] : memref<4x3x128x384xbf16, #tpu.memory_space<vmem>>, vector<1x1x128x384xbf16>
    %564 = vector.shape_cast %563 : vector<1x1x128x384xbf16> to vector<128x384xbf16>
    %cst_266 = arith.constant dense<0.000000e+00> : vector<8x384xf32>
    %565 = tpu.matmul %528, %564, %cst_266 {dimension_numbers = #tpu.dot_dimension_numbers<[1], [0], [0], [1], [0, 0, 1, 1], [], []>} : vector<8x128xbf16>, vector<128x384xbf16>, vector<8x384xf32> -> vector<8x384xf32>
    %c3_267 = arith.constant 3 : index
    %c1_268 = arith.constant 1 : index
    %c0_269 = arith.constant 0 : index
    %c0_270 = arith.constant 0 : index
    %566 = vector.load %arg3[%c3_267, %c1_268, %c0_269, %c0_270] : memref<4x3x1x384xf32, #tpu.memory_space<vmem>>, vector<1x1x1x384xf32>
    %567 = vector.shape_cast %566 : vector<1x1x1x384xf32> to vector<1x384xf32>
    %568 = vector.broadcast %567 : vector<1x384xf32> to vector<8x384xf32>
    %569 = arith.addf %565, %568 : vector<8x384xf32>
    %570 = vector.extract_strided_slice %569 {offsets = [0, 0], sizes = [8, 128], strides = [1, 1]} : vector<8x384xf32> to vector<8x128xf32>
    %571 = arith.truncf %570 : vector<8x128xf32> to vector<8x128xbf16>
    %572 = vector.extract_strided_slice %569 {offsets = [0, 128], sizes = [8, 128], strides = [1, 1]} : vector<8x384xf32> to vector<8x128xf32>
    %573 = arith.truncf %572 : vector<8x128xf32> to vector<8x128xbf16>
    %574 = vector.extract_strided_slice %569 {offsets = [0, 256], sizes = [8, 128], strides = [1, 1]} : vector<8x384xf32> to vector<8x128xf32>
    %575 = arith.truncf %574 : vector<8x128xf32> to vector<8x128xbf16>
    %cst_271 = arith.constant dense<0.000000e+00> : vector<8x8xf32>
    %576 = tpu.matmul %571, %573, %cst_271 {dimension_numbers = #tpu.dot_dimension_numbers<[1], [1], [0], [0], [0, 0, 1, 0], [], []>} : vector<8x128xbf16>, vector<8x128xbf16>, vector<8x8xf32> -> vector<8x8xf32>
    %cst_272 = arith.constant 2.500000e-01 : f32
    %577 = vector.broadcast %cst_272 : f32 to vector<8x8xf32>
    %578 = arith.mulf %576, %577 : vector<8x8xf32>
    %cst_273 = arith.constant dense<0xFF800000> : vector<8xf32>
    %579 = vector.multi_reduction <maximumf>, %578, %cst_273 [1] : vector<8x8xf32> to vector<8xf32>
    %580 = vector.shape_cast %579 : vector<8xf32> to vector<8x1xf32>
    %581 = vector.broadcast %580 : vector<8x1xf32> to vector<8x8xf32>
    %582 = arith.subf %578, %581 : vector<8x8xf32>
    %583 = math.exp %582 : vector<8x8xf32>
    %cst_274 = arith.constant dense<0.000000e+00> : vector<8xf32>
    %584 = vector.multi_reduction <add>, %583, %cst_274 [1] : vector<8x8xf32> to vector<8xf32>
    %585 = vector.shape_cast %584 : vector<8xf32> to vector<8x1xf32>
    %586 = tpu.reciprocal %585 {approx = true} : vector<8x1xf32> -> vector<8x1xf32>
    %587 = vector.broadcast %586 : vector<8x1xf32> to vector<8x8xf32>
    %588 = arith.mulf %583, %587 : vector<8x8xf32>
    %589 = arith.truncf %588 : vector<8x8xf32> to vector<8x8xbf16>
    %cst_275 = arith.constant dense<0.000000e+00> : vector<8x128xf32>
    %590 = tpu.matmul %589, %575, %cst_275 {dimension_numbers = #tpu.dot_dimension_numbers<[1], [0], [0], [1], [0, 0, 1, 1], [], []>} : vector<8x8xbf16>, vector<8x128xbf16>, vector<8x128xf32> -> vector<8x128xf32>
    %591 = arith.truncf %590 : vector<8x128xf32> to vector<8x128xbf16>
    %c3_276 = arith.constant 3 : index
    %c1_277 = arith.constant 1 : index
    %c0_278 = arith.constant 0 : index
    %c0_279 = arith.constant 0 : index
    %592 = vector.load %arg4[%c3_276, %c1_277, %c0_278, %c0_279] : memref<4x3x128x128xbf16, #tpu.memory_space<vmem>>, vector<1x1x128x128xbf16>
    %593 = vector.shape_cast %592 : vector<1x1x128x128xbf16> to vector<128x128xbf16>
    %cst_280 = arith.constant dense<0.000000e+00> : vector<8x128xf32>
    %594 = tpu.matmul %591, %593, %cst_280 {dimension_numbers = #tpu.dot_dimension_numbers<[1], [0], [0], [1], [0, 0, 1, 1], [], []>} : vector<8x128xbf16>, vector<128x128xbf16>, vector<8x128xf32> -> vector<8x128xf32>
    %595 = arith.addf %562, %594 : vector<8x128xf32>
    %c3_281 = arith.constant 3 : index
    %c2_282 = arith.constant 2 : index
    %c0_283 = arith.constant 0 : index
    %c0_284 = arith.constant 0 : index
    %596 = vector.load %arg2[%c3_281, %c2_282, %c0_283, %c0_284] : memref<4x3x128x384xbf16, #tpu.memory_space<vmem>>, vector<1x1x128x384xbf16>
    %597 = vector.shape_cast %596 : vector<1x1x128x384xbf16> to vector<128x384xbf16>
    %cst_285 = arith.constant dense<0.000000e+00> : vector<8x384xf32>
    %598 = tpu.matmul %528, %597, %cst_285 {dimension_numbers = #tpu.dot_dimension_numbers<[1], [0], [0], [1], [0, 0, 1, 1], [], []>} : vector<8x128xbf16>, vector<128x384xbf16>, vector<8x384xf32> -> vector<8x384xf32>
    %c3_286 = arith.constant 3 : index
    %c2_287 = arith.constant 2 : index
    %c0_288 = arith.constant 0 : index
    %c0_289 = arith.constant 0 : index
    %599 = vector.load %arg3[%c3_286, %c2_287, %c0_288, %c0_289] : memref<4x3x1x384xf32, #tpu.memory_space<vmem>>, vector<1x1x1x384xf32>
    %600 = vector.shape_cast %599 : vector<1x1x1x384xf32> to vector<1x384xf32>
    %601 = vector.broadcast %600 : vector<1x384xf32> to vector<8x384xf32>
    %602 = arith.addf %598, %601 : vector<8x384xf32>
    %603 = vector.extract_strided_slice %602 {offsets = [0, 0], sizes = [8, 128], strides = [1, 1]} : vector<8x384xf32> to vector<8x128xf32>
    %604 = arith.truncf %603 : vector<8x128xf32> to vector<8x128xbf16>
    %605 = vector.extract_strided_slice %602 {offsets = [0, 128], sizes = [8, 128], strides = [1, 1]} : vector<8x384xf32> to vector<8x128xf32>
    %606 = arith.truncf %605 : vector<8x128xf32> to vector<8x128xbf16>
    %607 = vector.extract_strided_slice %602 {offsets = [0, 256], sizes = [8, 128], strides = [1, 1]} : vector<8x384xf32> to vector<8x128xf32>
    %608 = arith.truncf %607 : vector<8x128xf32> to vector<8x128xbf16>
    %cst_290 = arith.constant dense<0.000000e+00> : vector<8x8xf32>
    %609 = tpu.matmul %604, %606, %cst_290 {dimension_numbers = #tpu.dot_dimension_numbers<[1], [1], [0], [0], [0, 0, 1, 0], [], []>} : vector<8x128xbf16>, vector<8x128xbf16>, vector<8x8xf32> -> vector<8x8xf32>
    %cst_291 = arith.constant 2.500000e-01 : f32
    %610 = vector.broadcast %cst_291 : f32 to vector<8x8xf32>
    %611 = arith.mulf %609, %610 : vector<8x8xf32>
    %cst_292 = arith.constant dense<0xFF800000> : vector<8xf32>
    %612 = vector.multi_reduction <maximumf>, %611, %cst_292 [1] : vector<8x8xf32> to vector<8xf32>
    %613 = vector.shape_cast %612 : vector<8xf32> to vector<8x1xf32>
    %614 = vector.broadcast %613 : vector<8x1xf32> to vector<8x8xf32>
    %615 = arith.subf %611, %614 : vector<8x8xf32>
    %616 = math.exp %615 : vector<8x8xf32>
    %cst_293 = arith.constant dense<0.000000e+00> : vector<8xf32>
    %617 = vector.multi_reduction <add>, %616, %cst_293 [1] : vector<8x8xf32> to vector<8xf32>
    %618 = vector.shape_cast %617 : vector<8xf32> to vector<8x1xf32>
    %619 = tpu.reciprocal %618 {approx = true} : vector<8x1xf32> -> vector<8x1xf32>
    %620 = vector.broadcast %619 : vector<8x1xf32> to vector<8x8xf32>
    %621 = arith.mulf %616, %620 : vector<8x8xf32>
    %622 = arith.truncf %621 : vector<8x8xf32> to vector<8x8xbf16>
    %cst_294 = arith.constant dense<0.000000e+00> : vector<8x128xf32>
    %623 = tpu.matmul %622, %608, %cst_294 {dimension_numbers = #tpu.dot_dimension_numbers<[1], [0], [0], [1], [0, 0, 1, 1], [], []>} : vector<8x8xbf16>, vector<8x128xbf16>, vector<8x128xf32> -> vector<8x128xf32>
    %624 = arith.truncf %623 : vector<8x128xf32> to vector<8x128xbf16>
    %c3_295 = arith.constant 3 : index
    %c2_296 = arith.constant 2 : index
    %c0_297 = arith.constant 0 : index
    %c0_298 = arith.constant 0 : index
    %625 = vector.load %arg4[%c3_295, %c2_296, %c0_297, %c0_298] : memref<4x3x128x128xbf16, #tpu.memory_space<vmem>>, vector<1x1x128x128xbf16>
    %626 = vector.shape_cast %625 : vector<1x1x128x128xbf16> to vector<128x128xbf16>
    %cst_299 = arith.constant dense<0.000000e+00> : vector<8x128xf32>
    %627 = tpu.matmul %624, %626, %cst_299 {dimension_numbers = #tpu.dot_dimension_numbers<[1], [0], [0], [1], [0, 0, 1, 1], [], []>} : vector<8x128xbf16>, vector<128x128xbf16>, vector<8x128xf32> -> vector<8x128xf32>
    %628 = arith.addf %595, %627 : vector<8x128xf32>
    %629 = vector.broadcast %521 : vector<1x128xf32> to vector<8x128xf32>
    %630 = arith.addf %628, %629 : vector<8x128xf32>
    %631 = arith.addf %518, %630 : vector<8x128xf32>
    %cst_300 = arith.constant dense<0.000000e+00> : vector<8xf32>
    %632 = vector.multi_reduction <add>, %631, %cst_300 [1] : vector<8x128xf32> to vector<8xf32>
    %633 = vector.shape_cast %632 : vector<8xf32> to vector<8x1xf32>
    %cst_301 = arith.constant 0.020833334 : f32
    %634 = vector.broadcast %cst_301 : f32 to vector<8x1xf32>
    %635 = arith.mulf %633, %634 : vector<8x1xf32>
    %636 = arith.mulf %631, %631 : vector<8x128xf32>
    %cst_302 = arith.constant dense<0.000000e+00> : vector<8xf32>
    %637 = vector.multi_reduction <add>, %636, %cst_302 [1] : vector<8x128xf32> to vector<8xf32>
    %638 = vector.shape_cast %637 : vector<8xf32> to vector<8x1xf32>
    %cst_303 = arith.constant 0.020833334 : f32
    %639 = vector.broadcast %cst_303 : f32 to vector<8x1xf32>
    %640 = arith.mulf %638, %639 : vector<8x1xf32>
    %641 = arith.mulf %635, %635 : vector<8x1xf32>
    %642 = arith.subf %640, %641 : vector<8x1xf32>
    %643 = vector.broadcast %635 : vector<8x1xf32> to vector<8x128xf32>
    %644 = arith.subf %631, %643 : vector<8x128xf32>
    %cst_304 = arith.constant 9.99999974E-6 : f32
    %645 = vector.broadcast %cst_304 : f32 to vector<8x1xf32>
    %646 = arith.addf %642, %645 : vector<8x1xf32>
    %647 = math.rsqrt %646 : vector<8x1xf32>
    %648 = vector.broadcast %647 : vector<8x1xf32> to vector<8x128xf32>
    %649 = arith.mulf %644, %648 : vector<8x128xf32>
    %650 = vector.broadcast %522 : vector<1x128xf32> to vector<8x128xf32>
    %651 = arith.mulf %649, %650 : vector<8x128xf32>
    %652 = vector.broadcast %523 : vector<1x128xf32> to vector<8x128xf32>
    %653 = arith.addf %651, %652 : vector<8x128xf32>
    %654 = arith.truncf %653 : vector<8x128xf32> to vector<8x128xbf16>
    %c3_305 = arith.constant 3 : index
    %c0_306 = arith.constant 0 : index
    %c0_307 = arith.constant 0 : index
    %655 = vector.load %arg5[%c3_305, %c0_306, %c0_307] : memref<4x128x128xbf16, #tpu.memory_space<vmem>>, vector<1x128x128xbf16>
    %656 = vector.shape_cast %655 : vector<1x128x128xbf16> to vector<128x128xbf16>
    %cst_308 = arith.constant dense<0.000000e+00> : vector<8x128xf32>
    %657 = tpu.matmul %654, %656, %cst_308 {dimension_numbers = #tpu.dot_dimension_numbers<[1], [0], [0], [1], [0, 0, 1, 1], [], []>} : vector<8x128xbf16>, vector<128x128xbf16>, vector<8x128xf32> -> vector<8x128xf32>
    %658 = vector.broadcast %524 : vector<1x128xf32> to vector<8x128xf32>
    %659 = arith.addf %657, %658 : vector<8x128xf32>
    %cst_309 = arith.constant 0.000000e+00 : f32
    %660 = vector.broadcast %cst_309 : f32 to vector<8x128xf32>
    %661 = arith.maximumf %659, %660 : vector<8x128xf32>
    %662 = arith.truncf %661 : vector<8x128xf32> to vector<8x128xbf16>
    %c3_310 = arith.constant 3 : index
    %c0_311 = arith.constant 0 : index
    %c0_312 = arith.constant 0 : index
    %663 = vector.load %arg6[%c3_310, %c0_311, %c0_312] : memref<4x128x128xbf16, #tpu.memory_space<vmem>>, vector<1x128x128xbf16>
    %664 = vector.shape_cast %663 : vector<1x128x128xbf16> to vector<128x128xbf16>
    %cst_313 = arith.constant dense<0.000000e+00> : vector<8x128xf32>
    %665 = tpu.matmul %662, %664, %cst_313 {dimension_numbers = #tpu.dot_dimension_numbers<[1], [0], [0], [1], [0, 0, 1, 1], [], []>} : vector<8x128xbf16>, vector<128x128xbf16>, vector<8x128xf32> -> vector<8x128xf32>
    %666 = vector.broadcast %525 : vector<1x128xf32> to vector<8x128xf32>
    %667 = arith.addf %665, %666 : vector<8x128xf32>
    %668 = arith.addf %653, %667 : vector<8x128xf32>
    %cst_314 = arith.constant dense<0.000000e+00> : vector<8xf32>
    %669 = vector.multi_reduction <add>, %668, %cst_314 [1] : vector<8x128xf32> to vector<8xf32>
    %670 = vector.shape_cast %669 : vector<8xf32> to vector<8x1xf32>
    %cst_315 = arith.constant 0.020833334 : f32
    %671 = vector.broadcast %cst_315 : f32 to vector<8x1xf32>
    %672 = arith.mulf %670, %671 : vector<8x1xf32>
    %673 = arith.mulf %668, %668 : vector<8x128xf32>
    %cst_316 = arith.constant dense<0.000000e+00> : vector<8xf32>
    %674 = vector.multi_reduction <add>, %673, %cst_316 [1] : vector<8x128xf32> to vector<8xf32>
    %675 = vector.shape_cast %674 : vector<8xf32> to vector<8x1xf32>
    %cst_317 = arith.constant 0.020833334 : f32
    %676 = vector.broadcast %cst_317 : f32 to vector<8x1xf32>
    %677 = arith.mulf %675, %676 : vector<8x1xf32>
    %678 = arith.mulf %672, %672 : vector<8x1xf32>
    %679 = arith.subf %677, %678 : vector<8x1xf32>
    %680 = vector.broadcast %672 : vector<8x1xf32> to vector<8x128xf32>
    %681 = arith.subf %668, %680 : vector<8x128xf32>
    %cst_318 = arith.constant 9.99999974E-6 : f32
    %682 = vector.broadcast %cst_318 : f32 to vector<8x1xf32>
    %683 = arith.addf %679, %682 : vector<8x1xf32>
    %684 = math.rsqrt %683 : vector<8x1xf32>
    %685 = vector.broadcast %684 : vector<8x1xf32> to vector<8x128xf32>
    %686 = arith.mulf %681, %685 : vector<8x128xf32>
    %687 = vector.broadcast %526 : vector<1x128xf32> to vector<8x128xf32>
    %688 = arith.mulf %686, %687 : vector<8x128xf32>
    %689 = vector.broadcast %527 : vector<1x128xf32> to vector<8x128xf32>
    %690 = arith.addf %688, %689 : vector<8x128xf32>
    %c0_319 = arith.constant 0 : index
    %c0_320 = arith.constant 0 : index
    %691 = vector.load %arg8[%c0_319, %c0_320] : memref<8x128xf32, #tpu.memory_space<vmem>>, vector<8x128xf32>
    tpu.vector_store %arg8[%c0_319, %c0_320], %690 {strides = array<i32>} : memref<8x128xf32, #tpu.memory_space<vmem>>, vector<8x128xf32>,
    return
  }
}

</mosaic_0001>

<bundles_post_ra>
// kernel: modelo_forward.1
= control target key start
LH: loop header
LB: loop body
LE: loop exit
PB: predicated region body
PF: predicated region fallthrough
CT: control target
= control target key end

     0   :  { %13 = vsyncpa [#allocation3], 0  ;;  %s10059_s0 = inlined_call_operand.vmem [shape: f32[8,128], index: 0, kind: input, shape index: {}]   ;;  %s10060_s1 = inlined_call_operand.hbm [shape: f32[8,128], index: 1, kind: input, shape index: {}]   ;;  %s10061_s2 = inlined_call_operand.hbm [shape: bf16[4,3,128,384], index: 2, kind: input, shape index: {}]   ;;  %s10062_s3 = inlined_call_operand.hbm [shape: f32[4,3,1,384], index: 3, kind: input, shape index: {}]   ;;  %s10063_s4 = inlined_call_operand.hbm [shape: bf16[4,3,128,128], index: 4, kind: input, shape index: {}]   ;;  %s10064_s5 = inlined_call_operand.hbm [shape: bf16[4,128,128], index: 5, kind: input, shape index: {}]   ;;  %s10065_s6 = inlined_call_operand.hbm [shape: bf16[4,128,128], index: 6, kind: input, shape index: {}]   ;;  %s10066_s7 = inlined_call_operand.hbm [shape: f32[4,8,128], index: 7, kind: input, shape index: {}]   ;;  %s10067_s8 = inlined_call_operand.vmem [shape: f32[8,128], index: 8, kind: output, shape index: {}]  }
   0x1   :  { %14 = vsyncpa [#allocation5], 0 }
   0x2   :  { %15 = vsyncpa [#allocation8], 0 }
   0x3   :  { %16 = vsyncpa [#allocation11], 0  ;;  %s9227_s27 = smov [#allocation4]   ;;  %s9065_s9 = scalar_lea.hbm %s10061_s2, 36864 }
   0x4   :  { %s34_s28 = sshll.u32 %s9227_s27, 4  ;;  %p9066_p0 = scmp.ne.s32.totalorder %s10061_s2, %s9065_s9  ;;  %s35_s28 = int_to_ptr.vmem [resolvable:$true] %s34_s28 }
   0x5   :  { %p9069_p1 = scmp.lt.u32.totalorder %s9065_s9, %s10061_s2 }
   0x7   :  { %p9071_p2 = pnand %p9069_p1, %p9066_p0 }
   0x9   :  { %9074 = shalt.err (!%p9071_p2)
}
   0xa   :  { %s9075_s14 = scalar_lea.vmem %s35_s28, 36864  ;;  %p9080_p4 = scmp.lt.s32.totalorder %s35_s28, %s35_s28 }
   0xb   :  { %p9076_p3 = scmp.ne.s32.totalorder %s35_s28, %s9075_s14  ;;  %p9081_p5 = scmp.lt.s32.totalorder %s9075_s14, %s9075_s14 }
   0xd   :  { %p9082_p6 = por %p9081_p5, %p9080_p4 }
   0xf   :  { %p9083_p7 = pnand %p9082_p6, %p9076_p3 }
  0x11   :  { %9086 = shalt.err (!%p9083_p7)
}
  0x12   :  { %s9228_s15 = smov 192   ;;  %s9229_s16 = smov 12  }
  0x13   :  { %40 = dma.hbm_to_vmem [thread:$0]  %s10061_s2, 36864, %s35_s28, [#allocation5], %s9228_s15, %s9228_s15, %s9229_s16  }
  0x14   :  { %s9230_s19 = smov [#allocation7]   ;;  %s9087_s23 = scalar_lea.hbm %s10063_s4, 12288 }
  0x15   :  { %s58_s20 = sshll.u32 %s9230_s19, 4  ;;  %p9088_p8 = scmp.ne.s32.totalorder %s10063_s4, %s9087_s23  ;;  %s59_s20 = int_to_ptr.vmem [resolvable:$true] %s58_s20 }
  0x16   :  { %p9091_p9 = scmp.lt.u32.totalorder %s9087_s23, %s10063_s4 }
  0x18   :  { %p9093_p10 = pnand %p9091_p9, %p9088_p8 }
  0x1a   :  { %9096 = shalt.err (!%p9093_p10)
}
  0x1b   :  { %s9097_s29 = scalar_lea.vmem %s59_s20, 12288  ;;  %p9102_p12 = scmp.lt.s32.totalorder %s59_s20, %s59_s20 }
  0x1c   :  { %p9098_p11 = scmp.ne.s32.totalorder %s59_s20, %s9097_s29  ;;  %p9103_p13 = scmp.lt.s32.totalorder %s9097_s29, %s9097_s29 }
  0x1e   :  { %p9104_p0 = por %p9103_p13, %p9102_p12 }
  0x20   :  { %p9105_p1 = pnand %p9104_p0, %p9098_p11 }
  0x22   :  { %9108 = shalt.err (!%p9105_p1)
}
  0x23   :  { %s9231_s2 = smov 64   ;;  %s9232_s28 = smov 4  }
  0x24   :  { %64 = dma.hbm_to_vmem [thread:$0]  %s10063_s4, 12288, %s59_s20, [#allocation8], %s9231_s2, %s9231_s2, %s9232_s28  }
  0x25   :  { %s9233_s10 = smov [#allocation10]   ;;  %s9234_s12 = smov [#allocation2]  }
  0x26   :  { %s82_s11 = sshll.u32 %s9233_s10, 4  ;;  %s25_s13 = sshll.u32 %s9234_s12, 4  ;;  %s83_s11 = int_to_ptr.vmem [resolvable:$true] %s82_s11  ;;  %s26_s13 = int_to_ptr.vmem [resolvable:$true] %s25_s13 }
  0x27   :  { %s9109_s16 = scalar_lea.hbm %s10065_s6, 4096 }
  0x28   :  { %p9110_p2 = scmp.ne.s32.totalorder %s10065_s6, %s9109_s16  ;;  %p9113_p3 = scmp.lt.u32.totalorder %s9109_s16, %s10065_s6 }
  0x2a   :  { %p9115_p4 = pnand %p9113_p3, %p9110_p2 }
  0x2c   :  { %9118 = shalt.err (!%p9115_p4)
}
  0x2d   :  { %s9119_s4 = scalar_lea.vmem %s83_s11, 4096  ;;  %p9124_p6 = scmp.lt.s32.totalorder %s83_s11, %s83_s11 }
  0x2e   :  { %p9120_p5 = scmp.ne.s32.totalorder %s83_s11, %s9119_s4  ;;  %p9125_p7 = scmp.lt.s32.totalorder %s9119_s4, %s9119_s4 }
  0x30   :  { %p9126_p8 = por %p9125_p7, %p9124_p6 }
  0x32   :  { %p9127_p9 = pnand %p9126_p8, %p9120_p5 }
  0x34   :  { %9130 = shalt.err (!%p9127_p9)
}
  0x35   :  { %88 = dma.hbm_to_vmem [thread:$0]  %s10065_s6, 4096, %s83_s11, [#allocation11], %s9231_s2, %s9231_s2, %s9232_s28  }
  0x36   :  { %s9131_s25 = scalar_lea.hbm %s10060_s1, 128 }
  0x37   :  { %p9132_p10 = scmp.ne.s32.totalorder %s10060_s1, %s9131_s25  ;;  %p9135_p11 = scmp.lt.u32.totalorder %s9131_s25, %s10060_s1 }
  0x39   :  { %p9137_p12 = pnand %p9135_p11, %p9132_p10 }
  0x3b   :  { %9140 = shalt.err (!%p9137_p12)
}
  0x3c   :  { %s9141_s9 = scalar_lea.vmem %s26_s13, 128  ;;  %p9146_p0 = scmp.lt.s32.totalorder %s26_s13, %s26_s13 }
  0x3d   :  { %p9142_p13 = scmp.ne.s32.totalorder %s26_s13, %s9141_s9  ;;  %p9147_p1 = scmp.lt.s32.totalorder %s9141_s9, %s9141_s9 }
  0x3f   :  { %p9148_p2 = por %p9147_p1, %p9146_p0 }
  0x41   :  { %p9149_p3 = pnand %p9148_p2, %p9142_p13 }
  0x43   :  { %9152 = shalt.err (!%p9149_p3)
}
  0x44   :  { %28 = dma.hbm_to_vmem [thread:$0]  %s10060_s1, 128, %s26_s13, [#allocation3]  }
  0x45   :  { %s9235_s11 = smov [#allocation6]   ;;  %s9153_s16 = scalar_lea.hbm %s10062_s3, 576 }
  0x46   :  { %s46_s12 = sshll.u32 %s9235_s11, 4  ;;  %p9154_p4 = scmp.ne.s32.totalorder %s10062_s3, %s9153_s16  ;;  %s47_s12 = int_to_ptr.vmem [resolvable:$true] %s46_s12 }
  0x47   :  { %p9157_p5 = scmp.lt.u32.totalorder %s9153_s16, %s10062_s3 }
  0x49   :  { %p9159_p6 = pnand %p9157_p5, %p9154_p4 }
  0x4b   :  { %9162 = shalt.err (!%p9159_p6)
}
  0x4c   :  { %s9163_s4 = scalar_lea.vmem %s47_s12, 576  ;;  %p9168_p8 = scmp.lt.s32.totalorder %s47_s12, %s47_s12 }
  0x4d   :  { %p9164_p7 = scmp.ne.s32.totalorder %s47_s12, %s9163_s4  ;;  %p9169_p9 = scmp.lt.s32.totalorder %s9163_s4, %s9163_s4 }
  0x4f   :  { %p9170_p10 = por %p9169_p9, %p9168_p8 }
  0x51   :  { %p9171_p11 = pnand %p9170_p10, %p9164_p7 }
  0x53   :  { %9174 = shalt.err (!%p9171_p11)
}
  0x54   :  { %s9236_s1 = smov 48   ;;  %s9237_s13 = smov 3  }
  0x55   :  { %52 = dma.hbm_to_vmem [thread:$0]  %s10062_s3, 576, %s47_s12, [#allocation5], %s9236_s1, %s9236_s1, %s9237_s13  }
  0x56   :  { %s9238_s23 = smov [#allocation9]   ;;  %s9239_s25 = smov [#allocation12]  }
  0x57   :  { %s70_s24 = sshll.u32 %s9238_s23, 4  ;;  %s94_s26 = sshll.u32 %s9239_s25, 4  ;;  %s71_s24 = int_to_ptr.vmem [resolvable:$true] %s70_s24  ;;  %s95_s26 = int_to_ptr.vmem [resolvable:$true] %s94_s26 }
  0x58   :  { %s9175_s30 = scalar_lea.hbm %s10064_s5, 4096 }
  0x59   :  { %p9176_p12 = scmp.ne.s32.totalorder %s10064_s5, %s9175_s30  ;;  %p9179_p13 = scmp.lt.u32.totalorder %s9175_s30, %s10064_s5 }
  0x5b   :  { %p9181_p0 = pnand %p9179_p13, %p9176_p12 }
  0x5d   :  { %9184 = shalt.err (!%p9181_p0)
}
  0x5e   :  { %s9185_s3 = scalar_lea.vmem %s71_s24, 4096  ;;  %p9190_p2 = scmp.lt.s32.totalorder %s71_s24, %s71_s24 }
  0x5f   :  { %p9186_p1 = scmp.ne.s32.totalorder %s71_s24, %s9185_s3  ;;  %p9191_p3 = scmp.lt.s32.totalorder %s9185_s3, %s9185_s3 }
  0x61   :  { %p9192_p4 = por %p9191_p3, %p9190_p2 }
  0x63   :  { %p9193_p5 = pnand %p9192_p4, %p9186_p1 }
  0x65   :  { %9196 = shalt.err (!%p9193_p5)
}
  0x66   :  { %76 = dma.hbm_to_vmem [thread:$0]  %s10064_s5, 4096, %s71_s24, [#allocation8], %s9231_s2, %s9231_s2, %s9232_s28  }
  0x67   :  { %s9197_s17 = scalar_lea.hbm %s10066_s7, 512 }
  0x68   :  { %p9198_p6 = scmp.ne.s32.totalorder %s10066_s7, %s9197_s17  ;;  %p9201_p7 = scmp.lt.u32.totalorder %s9197_s17, %s10066_s7 }
  0x6a   :  { %p9203_p8 = pnand %p9201_p7, %p9198_p6 }
  0x6c   :  { %9206 = shalt.err (!%p9203_p8)
}
  0x6d   :  { %s9207_s1 = scalar_lea.vmem %s95_s26, 512  ;;  %p9212_p10 = scmp.lt.s32.totalorder %s95_s26, %s95_s26 }
  0x6e   :  { %p9208_p9 = scmp.ne.s32.totalorder %s95_s26, %s9207_s1  ;;  %p9213_p11 = scmp.lt.s32.totalorder %s9207_s1, %s9207_s1 }
  0x70   :  { %p9214_p12 = por %p9213_p11, %p9212_p10 }
  0x72   :  { %p9215_p13 = pnand %p9214_p12, %p9208_p9 }
  0x74   :  { %9218 = shalt.err (!%p9215_p13)
}
  0x75   :  { %s9240_s5 = smov 128   ;;  %s9241_s2 = smov 8  }
  0x76   :  { %100 = dma.hbm_to_vmem [thread:$0]  %s10066_s7, 512, %s95_s26, [#allocation11], %s9240_s5, %s9240_s5, %s9241_s2  }
  0x77   :  { %9219 = dma.done.wait [#allocation3], 128  }
  0x78   :  { %9220 = vsyncadd [#allocation3], 4294967168 }
  0x79   :  { %9221 = dma.done.wait [#allocation5], 37440  }
  0x7a   :  { %9222 = vsyncadd [#allocation5], 4294929856 }
  0x7b   :  { %9223 = dma.done.wait [#allocation8], 16384  }
  0x7c   :  { %9224 = vsyncadd [#allocation8], 4294950912 }
  0x7d   :  { %9225 = dma.done.wait [#allocation11], 4608  }
  0x7e   :  { %9226 = vsyncadd [#allocation11], 4294962688  ;;  %v9242_v0 = vmov 0   ;;  %v9243_v1 = vmov 0.0   ;;  %v8457_v2 = vld [vmem:[#allocation4 + $0x4] ss:$12 sps:$4 sm:$0xff]   ;;  %v162_v30 = vlaneseq }
  0x7f   :  { %337 = vmatprep.mubr.bf16.mxu0 %v9242_v0  ;;  %7655 = vmatprep.subr.bf16.mxu1 %v9243_v1  ;;  %v8459_v3 = vld [vmem:[#allocation4] ss:$12 sps:$4 sm:$0xff]   ;;  %v8460_v4 = vld [vmem:[#allocation4 + $0x1c] ss:$12 sps:$4 sm:$0xff]   ;;  %v8462_v5 = vld [vmem:[#allocation4 + $0x18] ss:$12 sps:$4 sm:$0xff]  }
  0x80   :  { %305 = vmatprep.subr.bf16.mxu0 %v8457_v2  ;;  %v8463_v6 = vld [vmem:[#allocation4 + $0x34] ss:$12 sps:$4 sm:$0xff]   ;;  %v8465_v7 = vld [vmem:[#allocation4 + $0x30] ss:$12 sps:$4 sm:$0xff]   ;;  %v8466_v8 = vld [vmem:[#allocation4 + $0x4c] ss:$12 sps:$4 sm:$0xff]  }
  0x81   :  { %306 = vmatpush1.bf16.msra.mxu0 %v8459_v3  ;;  %v8468_v9 = vld [vmem:[#allocation4 + $0x48] ss:$12 sps:$4 sm:$0xff]   ;;  %v8469_v10 = vld [vmem:[#allocation4 + $0x64] ss:$12 sps:$4 sm:$0xff]   ;;  %v8482_v12 = vld [vmem:[#allocation4 + $0x20] ss:$12 sps:$4 sm:$0xff]  }
  0x82   :  { %307 = vmatprep.subr.bf16.mxu0 %v8460_v4  ;;  %v8481_v11 = vld [vmem:[#allocation4 + $0x8] ss:$12 sps:$4 sm:$0xff]   ;;  %v8471_v13 = vld [vmem:[#allocation4 + $0x60] ss:$12 sps:$4 sm:$0xff]   ;;  %v8483_v15 = vld [vmem:[#allocation4 + $0x38] ss:$12 sps:$4 sm:$0xff]  }
  0x83   :  { %7656 = vmatpush3.bf16.msra.mxu1 %v8481_v11  ;;  %v8472_v14 = vld [vmem:[#allocation4 + $0x7c] ss:$12 sps:$4 sm:$0xff]   ;;  %v8474_v16 = vld [vmem:[#allocation4 + $0x78] ss:$12 sps:$4 sm:$0xff]   ;;  %v8475_v17 = vld [vmem:[#allocation4 + $0x94] ss:$12 sps:$4 sm:$0xff]  }
  0x84   :  { %7657 = vmatprep.subr.bf16.mxu1 %v9243_v1  ;;  %v8484_v18 = vld [vmem:[#allocation4 + $0x50] ss:$12 sps:$4 sm:$0xff]   ;;  %v8478_v22 = vld [vmem:[#allocation4 + $0xac] ss:$12 sps:$4 sm:$0xff]   ;;  %v8485_v23 = vld [vmem:[#allocation4 + $0x68] ss:$12 sps:$4 sm:$0xff]  }
  0x85   :  { %308 = vmatpush1.bf16.msra.mxu0 %v8462_v5  ;;  %v8477_v19 = vld [vmem:[#allocation4 + $0x90] ss:$12 sps:$4 sm:$0xff]   ;;  %v8480_v24 = vld [vmem:[#allocation4 + $0xa8] ss:$12 sps:$4 sm:$0xff]   ;;  %v8486_v26 = vld [vmem:[#allocation4 + $0x80] ss:$12 sps:$4 sm:$0xff]  }
  0x86   :  { %309 = vmatprep.subr.bf16.mxu0 %v8463_v6  ;;  %v123_v20 = vld [vmem:[%s10059_s0] sm:$0xff]  ;;  %vm9244_vm0 = vmmov 0   ;;  %v9409_v31 = vshrl.u32 %v162_v30, 7  ;;  %v160_v33 = vld [vmem:[#allocation6] sm:$0x7]  ;;  %vm446_vm1 = vcmask 1043456  }
  0x87   :  { %7658 = vmatpush3.bf16.msra.mxu1 %v8482_v12  ;;  %v124_v21 = vld [vmem:[#allocation2] sm:$0xff]  ;;  %7671 = vmatprep.mubr.msk.bf16.mxu1 %vm9244_vm0, %v9243_v1  ;;  %v8489_v54 = vld [vmem:[#allocation4 + $0xc0] ss:$12 sps:$4 sm:$0xff]   ;;  %v8491_v55 = vld [vmem:[#allocation4 + $0xc4] ss:$12 sps:$4 sm:$0xff]   ;;  %vm430_vm2 = vcmask 64512  }
  0x88   :  { %7659 = vmatprep.subr.bf16.mxu1 %v9243_v1  ;;  %v9391_v25 = vadd.f32 %v124_v21, %v123_v20  ;;  %v8487_v28 = vld [vmem:[#allocation4 + $0x98] ss:$12 sps:$4 sm:$0xff]   ;;  %v8488_v29 = vld [vmem:[#allocation4 + $0xb0] ss:$12 sps:$4 sm:$0xff]   ;;  %v9412_v32 = vsub.s32 1, %v9409_v31  ;;  %v9416_v35 = vsub.s32 0, %v9409_v31 }
  0x89   :  { %310 = vmatpush1.bf16.msra.mxu0 %v8465_v7  ;;  %v9423_v45 = vsub.s32 2, %v9409_v31  ;;  %v8494_v56 = vld [vmem:[#allocation4 + $0xdc] ss:$12 sps:$4 sm:$0xff]   ;;  %v8492_v57 = vld [vmem:[#allocation4 + $0xd8] ss:$12 sps:$4 sm:$0xff]  }
  0x8a   :  { %311 = vmatprep.subr.bf16.mxu0 %v8466_v8  ;;  %v9396_v27 = vpack.c.bf16 %v9391_v25, %v9391_v25  ;;  %v169_v34 = vrot.slane %v160_v33, %v9412_v32  ;;  %v165_v40 = vrot.slane %v160_v33, %v9416_v35  ;;  %v8497_v58 = vld [vmem:[#allocation4 + $0xf4] ss:$12 sps:$4 sm:$0xff]   ;;  %v8495_v59 = vld [vmem:[#allocation4 + $0xf0] ss:$12 sps:$4 sm:$0xff]   ;;  %v8500_v60 = vld [vmem:[#allocation4 + $0x10c] ss:$12 sps:$4 sm:$0xff]  }
  0x8b   :  { %7660 = vmatpush3.bf16.msra.mxu1 %v8483_v15  ;;  %v173_v46 = vrot.slane %v160_v33, %v9423_v45  ;;  %v8498_v61 = vld [vmem:[#allocation4 + $0x108] ss:$12 sps:$4 sm:$0xff]   ;;  %v8503_v62 = vld [vmem:[#allocation4 + $0x124] ss:$12 sps:$4 sm:$0xff]   ;;  %v8501_v63 = vld [vmem:[#allocation4 + $0x120] ss:$12 sps:$4 sm:$0xff]  }
  0x8c   :  { %7661 = vmatprep.subr.bf16.mxu1 %v9243_v1  ;;  %v8506_v2 = vld [vmem:[#allocation4 + $0x13c] ss:$12 sps:$4 sm:$0xff]   ;;  %v8504_v3 = vld [vmem:[#allocation4 + $0x138] ss:$12 sps:$4 sm:$0xff]   ;;  %v8509_v4 = vld [vmem:[#allocation4 + $0x154] ss:$12 sps:$4 sm:$0xff]  }
  0x8d   :  { %312 = vmatpush1.bf16.msra.mxu0 %v8468_v9  ;;  %v8507_v5 = vld [vmem:[#allocation4 + $0x150] ss:$12 sps:$4 sm:$0xff]   ;;  %v8512_v6 = vld [vmem:[#allocation4 + $0x16c] ss:$12 sps:$4 sm:$0xff]   ;;  %v8510_v7 = vld [vmem:[#allocation4 + $0x168] ss:$12 sps:$4 sm:$0xff]  }
  0x8e   :  { %313 = vmatprep.subr.bf16.mxu0 %v8469_v10  ;;  %v8514_v30 = vld [vmem:[#allocation4 + $0xe0] ss:$12 sps:$4 sm:$0xff]   ;;  %v8515_v33 = vld [vmem:[#allocation4 + $0xf8] ss:$12 sps:$4 sm:$0xff]  }
  0x8f   :  { %7662 = vmatpush3.bf16.msra.mxu1 %v8484_v18 }
  0x90   :  { %7663 = vmatprep.subr.bf16.mxu1 %v9243_v1 }
  0x91   :  { %314 = vmatpush1.bf16.msra.mxu0 %v8471_v13 }
  0x92   :  { %315 = vmatprep.subr.bf16.mxu0 %v8472_v14 }
  0x93   :  { %7664 = vmatpush3.bf16.msra.mxu1 %v8485_v23 }
  0x94   :  { %7665 = vmatprep.subr.bf16.mxu1 %v9243_v1 }
  0x95   :  { %316 = vmatpush1.bf16.msra.mxu0 %v8474_v16 }
  0x96   :  { %317 = vmatprep.subr.bf16.mxu0 %v8475_v17 }
  0x97   :  { %7666 = vmatpush3.bf16.msra.mxu1 %v8486_v26 }
  0x98   :  { %7667 = vmatprep.subr.bf16.mxu1 %v9243_v1 }
  0x99   :  { %318 = vmatpush1.bf16.msra.mxu0 %v8477_v19 }
  0x9a   :  { %319 = vmatprep.subr.bf16.mxu0 %v8478_v22 }
  0x9b   :  { %7668 = vmatpush3.bf16.msra.mxu1 %v8487_v28  ;;  %v8513_v28 = vld [vmem:[#allocation4 + $0xc8] ss:$12 sps:$4 sm:$0xff]  }
  0x9c   :  { %7669 = vmatprep.subr.bf16.mxu1 %v9243_v1 }
  0x9d   :  { %320 = vmatpush1.bf16.msra.mxu0 %v8480_v24 }
  0x9e   :  { %686 = vmatprep.subr.bf16.mxu0 %v8491_v55 }
  0x9f   :  { %7670 = vmatpush3.bf16.msra.mxu1 %v8488_v29 }
  0xa0   :  { %338 = vmatmul.mubr.bf16.vlgmr.msra.gmra.mrb[0].mxu0 %v9396_v27  ;;  %7675 = vmatprep.subr.bf16.mxu1 %v9243_v1 }
  0xa1   :  { %718 = vmatprep.mubr.bf16.mxu0 %v9242_v0  ;;  %687 = vmatpush1.bf16.msra.mxu0 %v8489_v54 }
  0xa2   :  { %7672 = vmatmul.mubr.bf16.vlgmr.msra.gmra.mrb[0].mxu1 %v9396_v27  ;;  %688 = vmatprep.subr.bf16.mxu0 %v8494_v56 }
  0xa3   :  { %7677 = vmatprep.mubr.msk.bf16.mxu1 %vm9244_vm0, %v9243_v1 }
  0xa5   :  { %689 = vmatpush1.bf16.msra.mxu0 %v8492_v57 }
  0xa6   :  { %690 = vmatprep.subr.bf16.mxu0 %v8497_v58 }
  0xa9   :  { %691 = vmatpush1.bf16.msra.mxu0 %v8495_v59 }
  0xaa   :  { %692 = vmatprep.subr.bf16.mxu0 %v8500_v60 }
  0xad   :  { %693 = vmatpush1.bf16.msra.mxu0 %v8498_v61 }
  0xae   :  { %694 = vmatprep.subr.bf16.mxu0 %v8503_v62 }
  0xb1   :  { %695 = vmatpush1.bf16.msra.mxu0 %v8501_v63 }
  0xb2   :  { %696 = vmatprep.subr.bf16.mxu0 %v8506_v2 }
  0xb5   :  { %697 = vmatpush1.bf16.msra.mxu0 %v8504_v3 }
  0xb6   :  { %698 = vmatprep.subr.bf16.mxu0 %v8509_v4 }
  0xb9   :  { %699 = vmatpush1.bf16.msra.mxu0 %v8507_v5 }
  0xba   :  { %700 = vmatprep.subr.bf16.mxu0 %v8512_v6 }
  0xbd   :  { %701 = vmatpush1.bf16.msra.mxu0 %v8510_v7 }
  0xbe   :  { %7719 = vmatprep.subr.bf16.mxu0 %v9243_v1 }
  0xc0   :  { %719 = vmatmul.mubr.bf16.vlgmr.msra.gmra.mrb[4].mxu0 %v9396_v27 }
  0xc1   :  { %7735 = vmatprep.mubr.msk.bf16.mxu0 %vm9244_vm0, %v9243_v1 }
 0x173   :  { %v339_v36 = vpop.f32.mrb[0].mxu0 }
 0x174   :  { %v341_v37 = vpop.f32.mrb[1].mxu0  ;;  %v340_v43 = vadd.f32 %v339_v36, %v165_v40  ;;  %v8517_v36 = vld [vmem:[#allocation4 + $0x128] ss:$12 sps:$4 sm:$0xff]   ;;  %v8520_v40 = vld [vmem:[#allocation4 + $0x170] ss:$12 sps:$4 sm:$0xff]  }
 0x175   :  { %v342_v38 = vadd.f32 %v341_v37, %v169_v34  ;;  %v343_v39 = vpop.f32.mrb[2].mxu0  ;;  %v380_v47 = vpop.f32.mrb[0].mxu1  ;;  %v8516_v34 = vld [vmem:[#allocation4 + $0x110] ss:$12 sps:$4 sm:$0xff]   ;;  %v8518_v37 = vld [vmem:[#allocation4 + $0x140] ss:$12 sps:$4 sm:$0xff]  }
 0x176   :  { %v344_v41 = vpop.f32.mrb[3].mxu0  ;;  %v386_v44 = vpack.c.bf16 %v340_v43, %v340_v43  ;;  %v381_v48 = vadd.f32 %v380_v47, %v173_v46  ;;  %v7673_v49 = vpop.f32.mrb[1].mxu1  ;;  %v541_v39 = vld [vmem:[#allocation6 + $0x3] sm:$0x7] }
 0x177   :  { %v387_v42 = vpack.c.bf16 %v342_v38, %v342_v38  ;;  %v383_v50 = vpop.f32.mrb[2].mxu1  ;;  %v8519_v38 = vld [vmem:[#allocation4 + $0x158] ss:$12 sps:$4 sm:$0xff]   ;;  %v550_v41 = vrot.slane %v541_v39, %v9412_v32 }
 0x178   :  { %v388_v51 = vpack.c.bf16 %v381_v48, %v381_v48  ;;  %v7674_v52 = vpop.f32.mrb[3].mxu1 }
 0x179   :  { %7676 = vmatpush3.bf16.xpose.msra.mxu1 %v387_v42  ;;  %v554_v52 = vrot.slane %v541_v39, %v9423_v45 }
 0x17a   :  { %7681 = vmatprep.subr.bf16.mxu1 %v9243_v1  ;;  %v448_v53 = vsel %vm446_vm1, %v388_v51, 0 }
 0x180   :  { %7678 = vmatmul.mubr.bf16.vlgmr.msra.gmra.mrb[4].mxu1 %v386_v44  ;;  %v546_v44 = vrot.slane %v541_v39, %v9416_v35 }
 0x181   :  { %7683 = vmatprep.mubr.msk.bf16.mxu1 %vm9244_vm0, %v9243_v1  ;;  %7682 = vmatpush3.bf16.msra.mxu1 %v448_v53 }
 0x182   :  { %7687 = vmatprep.subr.bf16.mxu1 %v9243_v1 }
 0x193   :  { %v720_v19 = vpop.f32.mrb[4].mxu0 }
 0x194   :  { %v722_v20 = vpop.f32.mrb[5].mxu0  ;;  %v721_v46 = vadd.f32 %v720_v19, %v546_v44  ;;  %v8545_v44 = vld [vmem:[#allocation4 + $0x1b4] ss:$12 sps:$4 sm:$0xff]  }
 0x195   :  { %v724_v21 = vpop.f32.mrb[6].mxu0  ;;  %v723_v42 = vadd.f32 %v722_v20, %v550_v41  ;;  %v8521_v20 = vld [vmem:[#allocation7] sm:$0xff]  }
 0x196   :  { %v725_v22 = vpop.f32.mrb[7].mxu0  ;;  %v767_v47 = vpack.c.bf16 %v721_v46, %v721_v46  ;;  %v8543_v46 = vld [vmem:[#allocation4 + $0x1b0] ss:$12 sps:$4 sm:$0xff]  }
 0x197   :  { %v768_v43 = vpack.c.bf16 %v723_v42, %v723_v42  ;;  %v8522_v22 = vld [vmem:[#allocation7 + $0x8] sm:$0xff]  }
 0x253   :  { %v423_v8 = vpop.f32.mrb[4].mxu1 }
 0x254   :  { %v429_v9 = vmul.f32 0.25, %v423_v8  ;;  %v7679_v10 = vpop.f32.mrb[5].mxu1 }
 0x255   :  { %v426_v11 = vpop.f32.mrb[6].mxu1  ;;  %v8530_v10 = vld [vmem:[#allocation7 + $0x48] sm:$0xff]  }
 0x256   :  { %v7680_v12 = vpop.f32.mrb[7].mxu1  ;;  %v431_v13 = vsel %vm430_vm2, %v429_v9, -inf  ;;  %v8531_v11 = vld [vmem:[#allocation7 + $0x50] sm:$0xff]  }
 0x257   :  { %432 = vmax.xlane.f32.xlu0 %v431_v13  ;;  %v8532_v12 = vld [vmem:[#allocation7 + $0x58] sm:$0xff]   ;;  %v8533_v13 = vld [vmem:[#allocation7 + $0x60] sm:$0xff]  }
 0x2e4   :  { %v433_v14 = vpop.xlane.xlu0 %432 }
 0x2e5   :  { %v434_v15 = vsub.f32 %v429_v9, %v433_v14  ;;  %v8529_v9 = vld [vmem:[#allocation7 + $0x40] sm:$0xff]   ;;  %v8534_v14 = vld [vmem:[#allocation7 + $0x68] sm:$0xff]  }
 0x2e6   :  { %7720 = vmatpush3.bf16.msra.mxu0 %v8529_v9 }
 0x2e7   :  { %v435_v16 = vmul.f32 1.442695, %v434_v15  ;;  %7721 = vmatprep.subr.bf16.mxu0 %v9243_v1  ;;  %v8535_v15 = vld [vmem:[#allocation7 + $0x70] sm:$0xff]  }
 0x2e9   :  { %9001 = vpow2.f32 %v435_v16  ;;  %v8536_v16 = vld [vmem:[#allocation7 + $0x78] sm:$0xff]  }
 0x2ea   :  { %7722 = vmatpush3.bf16.msra.mxu0 %v8530_v10 }
 0x2eb   :  { %7723 = vmatprep.subr.bf16.mxu0 %v9243_v1 }
 0x2ee   :  { %7724 = vmatpush3.bf16.msra.mxu0 %v8531_v11 }
 0x2ef   :  { %7725 = vmatprep.subr.bf16.mxu0 %v9243_v1 }
 0x2f2   :  { %7726 = vmatpush3.bf16.msra.mxu0 %v8532_v12 }
 0x2f3   :  { %v9002_v17 = vpop.eup %9001  ;;  %7727 = vmatprep.subr.bf16.mxu0 %v9243_v1 }
 0x2f4   :  { %v437_v18 = vsel %vm430_vm2, %v9002_v17, 0.0 }
 0x2f5   :  { %438 = vadd.xlane.f32.xlu0 %v437_v18 }
 0x2f6   :  { %7728 = vmatpush3.bf16.msra.mxu0 %v8533_v13 }
 0x2f7   :  { %7729 = vmatprep.subr.bf16.mxu0 %v9243_v1 }
 0x2fa   :  { %7730 = vmatpush3.bf16.msra.mxu0 %v8534_v14 }
 0x2fb   :  { %7731 = vmatprep.subr.bf16.mxu0 %v9243_v1 }
 0x2fe   :  { %7732 = vmatpush3.bf16.msra.mxu0 %v8535_v15  ;;  %v8561_v15 = vld [vmem:[#allocation4 + $0x188] ss:$12 sps:$4 sm:$0xff]  }
 0x2ff   :  { %7733 = vmatprep.subr.bf16.mxu0 %v9243_v1 }
 0x302   :  { %7734 = vmatpush3.bf16.msra.mxu0 %v8536_v16  ;;  %v8562_v16 = vld [vmem:[#allocation4 + $0x1a0] ss:$12 sps:$4 sm:$0xff]  }
 0x382   :  { %v439_v23 = vpop.xlane.xlu0 %438 }
 0x383   :  { %9003 = vrcp.f32 %v439_v23  ;;  %v8523_v23 = vld [vmem:[#allocation7 + $0x10] sm:$0xff]  }
 0x38d   :  { %v9004_v24 = vpop.eup %9003 }
 0x38e   :  { %v441_v26 = vmul.f32 %v9004_v24, %v9002_v17  ;;  %v8524_v24 = vld [vmem:[#allocation7 + $0x18] sm:$0xff]  }
 0x390   :  { %v442_v29 = vpack.c.bf16 %v441_v26, %v441_v26  ;;  %v8525_v26 = vld [vmem:[#allocation7 + $0x20] sm:$0xff]  }
 0x392   :  { %7684 = vmatmul.mubr.msk.bf16.vlgmr.msra.gmra.mrb[8].mxu1 %vm430_vm2, %v442_v29  ;;  %v8527_v29 = vld [vmem:[#allocation7 + $0x30] sm:$0xff]  }
 0x393   :  { %7688 = vmatpush3.bf16.msra.mxu1 %v8513_v28  ;;  %7703 = vmatprep.mubr.msk.bf16.mxu1 %vm9244_vm0, %v9243_v1  ;;  %v8526_v28 = vld [vmem:[#allocation7 + $0x28] sm:$0xff]  }
 0x394   :  { %7689 = vmatprep.subr.bf16.mxu1 %v9243_v1 }
 0x397   :  { %7690 = vmatpush3.bf16.msra.mxu1 %v8514_v30  ;;  %v8528_v30 = vld [vmem:[#allocation7 + $0x38] sm:$0xff]  }
 0x398   :  { %7691 = vmatprep.subr.bf16.mxu1 %v9243_v1 }
 0x39b   :  { %7692 = vmatpush3.bf16.msra.mxu1 %v8515_v33 }
 0x39c   :  { %7693 = vmatprep.subr.bf16.mxu1 %v9243_v1 }
 0x39f   :  { %7694 = vmatpush3.bf16.msra.mxu1 %v8516_v34  ;;  %v8539_v34 = vld [vmem:[#allocation4 + $0x184] ss:$12 sps:$4 sm:$0xff]  }
 0x3a0   :  { %7695 = vmatprep.subr.bf16.mxu1 %v9243_v1  ;;  %1242 = vmatprep.subr.bf16.mxu0 %v8539_v34 }
 0x3a3   :  { %7696 = vmatpush3.bf16.msra.mxu1 %v8517_v36 }
 0x3a4   :  { %7697 = vmatprep.subr.bf16.mxu1 %v9243_v1 }
 0x3a7   :  { %7698 = vmatpush3.bf16.msra.mxu1 %v8518_v37  ;;  %v8537_v37 = vld [vmem:[#allocation4 + $0x180] ss:$12 sps:$4 sm:$0xff]  }
 0x3a8   :  { %7699 = vmatprep.subr.bf16.mxu1 %v9243_v1 }
 0x3ab   :  { %7700 = vmatpush3.bf16.msra.mxu1 %v8519_v38 }
 0x3ac   :  { %7701 = vmatprep.subr.bf16.mxu1 %v9243_v1 }
 0x3af   :  { %7702 = vmatpush3.bf16.msra.mxu1 %v8520_v40  ;;  %v8542_v40 = vld [vmem:[#allocation4 + $0x19c] ss:$12 sps:$4 sm:$0xff]  }
 0x3b0   :  { %7707 = vmatprep.subr.bf16.mxu1 %v9243_v1 }
 0x3b2   :  { %7704 = vmatmul.mubr.bf16.vlgmr.msra.gmra.mrb[12].mxu1 %v9396_v27 }
 0x3b3   :  { %7709 = vmatprep.mubr.msk.bf16.mxu1 %vm9244_vm0, %v9243_v1 }
 0x3b8   :  { %7708 = vmatpush3.bf16.xpose.msra.mxu1 %v768_v43  ;;  %v8540_v43 = vld [vmem:[#allocation4 + $0x198] ss:$12 sps:$4 sm:$0xff]  }
 0x3b9   :  { %7713 = vmatprep.subr.bf16.mxu1 %v9243_v1 }
 0x3bf   :  { %7710 = vmatmul.mubr.bf16.vlgmr.msra.gmra.mrb[16].mxu1 %v767_v47  ;;  %v8548_v47 = vld [vmem:[#allocation4 + $0x1cc] ss:$12 sps:$4 sm:$0xff]  }
 0x3c0   :  { %7715 = vmatprep.mubr.msk.bf16.mxu1 %vm9244_vm0, %v9243_v1 }
 0x465   :  { %v9453_v48 = vpop.f32.mrb[8].mxu1 }
 0x466   :  { %v7685_v49 = vpop.f32.mrb[9].mxu1  ;;  %v490_v33 = vpack.c.bf16 %v9453_v48, %v9453_v48  ;;  %v8546_v48 = vld [vmem:[#allocation4 + $0x1c8] ss:$12 sps:$4 sm:$0xff]  }
 0x467   :  { %v487_v50 = vpop.f32.mrb[10].mxu1  ;;  %v8551_v49 = vld [vmem:[#allocation4 + $0x1e4] ss:$12 sps:$4 sm:$0xff]  }
 0x468   :  { %v7686_v51 = vpop.f32.mrb[11].mxu1  ;;  %v8549_v50 = vld [vmem:[#allocation4 + $0x1e0] ss:$12 sps:$4 sm:$0xff]  }
 0x469   :  { %v8554_v51 = vld [vmem:[#allocation4 + $0x1fc] ss:$12 sps:$4 sm:$0xff]  }
 0x485   :  { %v761_v53 = vpop.f32.mrb[12].mxu1 }
 0x486   :  { %v762_v54 = vadd.f32 %v761_v53, %v554_v52  ;;  %v7705_v55 = vpop.f32.mrb[13].mxu1  ;;  %v8552_v52 = vld [vmem:[#allocation4 + $0x1f8] ss:$12 sps:$4 sm:$0xff]   ;;  %v8557_v53 = vld [vmem:[#allocation4 + $0x214] ss:$12 sps:$4 sm:$0xff]  }
 0x487   :  { %v764_v56 = vpop.f32.mrb[14].mxu1  ;;  %v8560_v55 = vld [vmem:[#allocation4 + $0x22c] ss:$12 sps:$4 sm:$0xff]  }
 0x488   :  { %v769_v57 = vpack.c.bf16 %v762_v54, %v762_v54  ;;  %v7706_v58 = vpop.f32.mrb[15].mxu1  ;;  %v8555_v54 = vld [vmem:[#allocation4 + $0x210] ss:$12 sps:$4 sm:$0xff]   ;;  %v8558_v56 = vld [vmem:[#allocation4 + $0x228] ss:$12 sps:$4 sm:$0xff]  }
 0x48a   :  { %v827_v59 = vsel %vm446_vm1, %v769_v57, 0 }
 0x48b   :  { %7714 = vmatpush3.bf16.msra.mxu1 %v827_v59 }
 0x48c   :  { %7739 = vmatprep.subr.bf16.mxu1 %v9243_v1 }
 0x492   :  { %v804_v60 = vpop.f32.mrb[16].mxu1 }
 0x493   :  { %v810_v61 = vmul.f32 0.25, %v804_v60  ;;  %v7711_v62 = vpop.f32.mrb[17].mxu1 }
 0x494   :  { %v807_v63 = vpop.f32.mrb[18].mxu1 }
 0x495   :  { %v7712_v2 = vpop.f32.mrb[19].mxu1  ;;  %v811_v3 = vsel %vm430_vm2, %v810_v61, -inf }
 0x496   :  { %812 = vmax.xlane.f32.xlu1 %v811_v3 }
 0x523   :  { %v813_v4 = vpop.xlane.xlu1 %812 }
 0x524   :  { %v814_v5 = vsub.f32 %v810_v61, %v813_v4  ;;  %v1097_v4 = vld [vmem:[#allocation6 + $0x6] sm:$0x7] }
 0x525   :  { %v1102_v10 = vrot.slane %v1097_v4, %v9416_v35 }
 0x526   :  { %v815_v6 = vmul.f32 1.442695, %v814_v5  ;;  %v1106_v5 = vrot.slane %v1097_v4, %v9412_v32 }
 0x528   :  { %9005 = vpow2.f32 %v815_v6 }
 0x532   :  { %v9006_v7 = vpop.eup %9005 }
 0x533   :  { %v817_v8 = vsel %vm430_vm2, %v9006_v7, 0.0 }
 0x534   :  { %818 = vadd.xlane.f32.xlu1 %v817_v8 }
 0x5c1   :  { %v819_v17 = vpop.xlane.xlu1 %818 }
 0x5c2   :  { %9007 = vrcp.f32 %v819_v17  ;;  %v8563_v17 = vld [vmem:[#allocation4 + $0x1b8] ss:$12 sps:$4 sm:$0xff]  }
 0x5cc   :  { %v9008_v18 = vpop.eup %9007 }
 0x5cd   :  { %v821_v19 = vmul.f32 %v9008_v18, %v9006_v7  ;;  %v8564_v18 = vld [vmem:[#allocation4 + $0x1d0] ss:$12 sps:$4 sm:$0xff]  }
 0x5cf   :  { %v822_v21 = vpack.c.bf16 %v821_v19, %v821_v19  ;;  %v8565_v19 = vld [vmem:[#allocation4 + $0x1e8] ss:$12 sps:$4 sm:$0xff]  }
 0x5d1   :  { %7716 = vmatmul.mubr.msk.bf16.vlgmr.msra.gmra.mrb[20].mxu1 %vm430_vm2, %v822_v21  ;;  %v8567_v21 = vld [vmem:[#allocation4 + $0x218] ss:$12 sps:$4 sm:$0xff]  }
 0x5d2   :  { %7740 = vmatpush3.bf16.msra.mxu1 %v8521_v20  ;;  %7755 = vmatprep.mubr.msk.bf16.mxu1 %vm9244_vm0, %v9243_v1  ;;  %v8566_v20 = vld [vmem:[#allocation4 + $0x200] ss:$12 sps:$4 sm:$0xff]  }
 0x5d3   :  { %7741 = vmatprep.subr.bf16.mxu1 %v9243_v1 }
 0x5d6   :  { %7742 = vmatpush3.bf16.msra.mxu1 %v8522_v22  ;;  %v8568_v22 = vld [vmem:[#allocation4 + $0x230] ss:$12 sps:$4 sm:$0xff]  }
 0x5d7   :  { %7743 = vmatprep.subr.bf16.mxu1 %v9243_v1 }
 0x5da   :  { %7744 = vmatpush3.bf16.msra.mxu1 %v8523_v23 }
 0x5db   :  { %7745 = vmatprep.subr.bf16.mxu1 %v9243_v1 }
 0x5de   :  { %7746 = vmatpush3.bf16.msra.mxu1 %v8524_v24 }
 0x5df   :  { %7747 = vmatprep.subr.bf16.mxu1 %v9243_v1 }
 0x5e2   :  { %7748 = vmatpush3.bf16.msra.mxu1 %v8525_v26 }
 0x5e3   :  { %7749 = vmatprep.subr.bf16.mxu1 %v9243_v1 }
 0x5e6   :  { %7750 = vmatpush3.bf16.msra.mxu1 %v8526_v28 }
 0x5e7   :  { %7751 = vmatprep.subr.bf16.mxu1 %v9243_v1 }
 0x5ea   :  { %7752 = vmatpush3.bf16.msra.mxu1 %v8527_v29 }
 0x5eb   :  { %7753 = vmatprep.subr.bf16.mxu1 %v9243_v1 }
 0x5ee   :  { %7754 = vmatpush3.bf16.msra.mxu1 %v8528_v30 }
 0x5ef   :  { %7759 = vmatprep.subr.bf16.mxu1 %v9243_v1 }
 0x5f1   :  { %7756 = vmatmul.mubr.bf16.vlgmr.msra.gmra.mrb[24].mxu1 %v490_v33 }
 0x5f2   :  { %7775 = vmatprep.mubr.msk.bf16.mxu1 %vm9244_vm0, %v9243_v1  ;;  %7760 = vmatpush3.bf16.msra.mxu1 %v8561_v15  ;;  %v8579_v15 = vld [vmem:[#allocation9 + $0x10] sm:$0xff]  }
 0x5f3   :  { %7761 = vmatprep.subr.bf16.mxu1 %v9243_v1 }
 0x5f6   :  { %7762 = vmatpush3.bf16.msra.mxu1 %v8562_v16  ;;  %v8580_v16 = vld [vmem:[#allocation9 + $0x18] sm:$0xff]  }
 0x5f7   :  { %7763 = vmatprep.subr.bf16.mxu1 %v9243_v1 }
 0x5fa   :  { %7764 = vmatpush3.bf16.msra.mxu1 %v8563_v17  ;;  %v8582_v17 = vld [vmem:[#allocation9 + $0x28] sm:$0xff]  }
 0x5fb   :  { %7765 = vmatprep.subr.bf16.mxu1 %v9243_v1 }
 0x5fe   :  { %7766 = vmatpush3.bf16.msra.mxu1 %v8564_v18  ;;  %v8584_v18 = vld [vmem:[#allocation9 + $0x38] sm:$0xff]  }
 0x5ff   :  { %7767 = vmatprep.subr.bf16.mxu1 %v9243_v1 }
 0x602   :  { %7768 = vmatpush3.bf16.msra.mxu1 %v8565_v19  ;;  %v8585_v19 = vld [vmem:[#allocation10] sm:$0xff]  }
 0x603   :  { %7769 = vmatprep.subr.bf16.mxu1 %v9243_v1 }
 0x606   :  { %7770 = vmatpush3.bf16.msra.mxu1 %v8566_v20  ;;  %v8586_v20 = vld [vmem:[#allocation10 + $0x8] sm:$0xff]  }
 0x607   :  { %7771 = vmatprep.subr.bf16.mxu1 %v9243_v1 }
 0x60a   :  { %7772 = vmatpush3.bf16.msra.mxu1 %v8567_v21  ;;  %v8587_v21 = vld [vmem:[#allocation10 + $0x10] sm:$0xff]  }
 0x60b   :  { %7773 = vmatprep.subr.bf16.mxu1 %v9243_v1 }
 0x60e   :  { %7774 = vmatpush3.bf16.msra.mxu1 %v8568_v22  ;;  %v8588_v22 = vld [vmem:[#allocation10 + $0x18] sm:$0xff]  }
 0x60f   :  { %7785 = vmatprep.subr.bf16.mxu1 %v9243_v1 }
 0x611   :  { %7776 = vmatmul.mubr.bf16.vlgmr.msra.gmra.mrb[28].mxu1 %v9396_v27 }
 0x612   :  { %7787 = vmatprep.mubr.msk.bf16.mxu1 %vm9244_vm0, %v9243_v1 }
 0x6a4   :  { %v863_v36 = vpop.f32.mrb[20].mxu1 }
 0x6a5   :  { %v869_v38 = vpack.c.bf16 %v863_v36, %v863_v36  ;;  %v7717_v39 = vpop.f32.mrb[21].mxu1 }
 0x6a6   :  { %v866_v41 = vpop.f32.mrb[22].mxu1 }
 0x6a7   :  { %v7718_v42 = vpop.f32.mrb[23].mxu1  ;;  %7736 = vmatmul.mubr.bf16.vlgmr.msra.gmra.mrb[8].mxu0 %v869_v38 }
 0x6a8   :  { %1243 = vmatpush1.bf16.msra.mxu0 %v8537_v37  ;;  %1274 = vmatprep.mubr.bf16.mxu0 %v9242_v0 }
 0x6a9   :  { %1244 = vmatprep.subr.bf16.mxu0 %v8542_v40  ;;  %v1110_v40 = vrot.slane %v1097_v4, %v9423_v45  ;;  %v9524_v4 = vld [vmem:[#allocation12] sm:$0xff] }
 0x6ac   :  { %1245 = vmatpush1.bf16.msra.mxu0 %v8540_v43 }
 0x6ad   :  { %1246 = vmatprep.subr.bf16.mxu0 %v8545_v44 }
 0x6b0   :  { %1247 = vmatpush1.bf16.msra.mxu0 %v8543_v46 }
 0x6b1   :  { %1248 = vmatprep.subr.bf16.mxu0 %v8548_v47  ;;  %v8569_v47 = vld [vmem:[#allocation7 + $0x80] sm:$0xff]  }
 0x6b4   :  { %1249 = vmatpush1.bf16.msra.mxu0 %v8546_v48  ;;  %v8570_v48 = vld [vmem:[#allocation7 + $0x88] sm:$0xff]  }
 0x6b5   :  { %1250 = vmatprep.subr.bf16.mxu0 %v8551_v49  ;;  %v8571_v49 = vld [vmem:[#allocation7 + $0x90] sm:$0xff]  }
 0x6b8   :  { %1251 = vmatpush1.bf16.msra.mxu0 %v8549_v50  ;;  %v8572_v50 = vld [vmem:[#allocation7 + $0x98] sm:$0xff]  }
 0x6b9   :  { %1252 = vmatprep.subr.bf16.mxu0 %v8554_v51  ;;  %v8573_v51 = vld [vmem:[#allocation7 + $0xa0] sm:$0xff]  }
 0x6bc   :  { %1253 = vmatpush1.bf16.msra.mxu0 %v8552_v52  ;;  %v8574_v52 = vld [vmem:[#allocation7 + $0xa8] sm:$0xff]  }
 0x6bd   :  { %1254 = vmatprep.subr.bf16.mxu0 %v8557_v53  ;;  %v8575_v53 = vld [vmem:[#allocation7 + $0xb0] sm:$0xff]  }
 0x6c0   :  { %1255 = vmatpush1.bf16.msra.mxu0 %v8555_v54 }
 0x6c1   :  { %1256 = vmatprep.subr.bf16.mxu0 %v8560_v55 }
 0x6c4   :  { %v1057_v57 = vpop.f32.mrb[24].mxu1  ;;  %1257 = vmatpush1.bf16.msra.mxu0 %v8558_v56 }
 0x6c5   :  { %v7757_v58 = vpop.f32.mrb[25].mxu1  ;;  %7779 = vmatprep.subr.bf16.mxu0 %v9243_v1 }
 0x6c6   :  { %v1060_v59 = vpop.f32.mrb[26].mxu1  ;;  %v8576_v58 = vld [vmem:[#allocation7 + $0xb8] sm:$0xff]  }
 0x6c7   :  { %v7758_v60 = vpop.f32.mrb[27].mxu1  ;;  %1275 = vmatmul.mubr.bf16.vlgmr.msra.gmra.mrb[12].mxu0 %v9396_v27 }
 0x6c8   :  { %7781 = vmatprep.mubr.msk.bf16.mxu0 %vm9244_vm0, %v9243_v1 }
 0x6e4   :  { %v1317_v27 = vpop.f32.mrb[28].mxu1 }
 0x6e5   :  { %v7777_v39 = vpop.f32.mrb[29].mxu1  ;;  %v1318_v43 = vadd.f32 %v1317_v27, %v1110_v40  ;;  %v1559_v40 = vrot.slane %v9524_v4, %v9423_v45 }
 0x6e6   :  { %v1320_v41 = vpop.f32.mrb[30].mxu1 }
 0x6e7   :  { %v7778_v42 = vpop.f32.mrb[31].mxu1  ;;  %v1325_v44 = vpack.c.bf16 %v1318_v43, %v1318_v43 }
 0x6e9   :  { %v1383_v46 = vsel %vm446_vm1, %v1325_v44, 0  ;;  %v8591_v44 = vld [vmem:[#allocation10 + $0x30] sm:$0xff]  }
 0x6ea   :  { %7786 = vmatpush3.bf16.msra.mxu1 %v1383_v46  ;;  %v8592_v46 = vld [vmem:[#allocation10 + $0x38] sm:$0xff]  }
 0x6eb   :  { %7811 = vmatprep.subr.bf16.mxu1 %v9243_v1 }
 0x77a   :  { %v969_v61 = vpop.f32.mrb[8].mxu0 }
 0x77b   :  { %v9487_v62 = vadd.f32 %v1057_v57, %v969_v61  ;;  %v7737_v63 = vpop.f32.mrb[9].mxu0 }
 0x77c   :  { %v972_v2 = vpop.f32.mrb[10].mxu0 }
 0x77d   :  { %v7738_v3 = vpop.f32.mrb[11].mxu0 }
 0x77e   :  { %v8577_v3 = vld [vmem:[#allocation9] sm:$0xff]  }
 0x79a   :  { %v1276_v6 = vpop.f32.mrb[12].mxu0 }
 0x79b   :  { %v1278_v7 = vpop.f32.mrb[13].mxu0  ;;  %v1277_v13 = vadd.f32 %v1276_v6, %v1102_v10 }
 0x79c   :  { %v1279_v8 = vadd.f32 %v1278_v7, %v1106_v5  ;;  %v1280_v9 = vpop.f32.mrb[14].mxu0  ;;  %v1535_v5 = vrot.slane %v9524_v4, %v9416_v35 }
 0x79d   :  { %v1281_v11 = vpop.f32.mrb[15].mxu0  ;;  %v1323_v14 = vpack.c.bf16 %v1277_v13, %v1277_v13 }
 0x79e   :  { %v1324_v12 = vpack.c.bf16 %v1279_v8, %v1279_v8 }
 0x7a0   :  { %7780 = vmatpush3.bf16.xpose.msra.mxu0 %v1324_v12 }
 0x7a1   :  { %7791 = vmatprep.subr.bf16.mxu0 %v9243_v1 }
 0x7a7   :  { %7782 = vmatmul.mubr.bf16.vlgmr.msra.gmra.mrb[16].mxu0 %v1323_v14  ;;  %v8578_v14 = vld [vmem:[#allocation9 + $0x8] sm:$0xff]  }
 0x7a8   :  { %7807 = vmatprep.mubr.msk.bf16.mxu0 %vm9244_vm0, %v9243_v1  ;;  %7792 = vmatpush3.bf16.msra.mxu0 %v8569_v47  ;;  %v9550_v47 = vsub.s32 3, %v9409_v31 }
 0x7a9   :  { %7793 = vmatprep.subr.bf16.mxu0 %v9243_v1 }
 0x7ac   :  { %7794 = vmatpush3.bf16.msra.mxu0 %v8570_v48  ;;  %v1581_v48 = vrot.slane %v9524_v4, %v9550_v47 }
 0x7ad   :  { %7795 = vmatprep.subr.bf16.mxu0 %v9243_v1 }
 0x7b0   :  { %7796 = vmatpush3.bf16.msra.mxu0 %v8571_v49 }
 0x7b1   :  { %7797 = vmatprep.subr.bf16.mxu0 %v9243_v1 }
 0x7b4   :  { %7798 = vmatpush3.bf16.msra.mxu0 %v8572_v50 }
 0x7b5   :  { %7799 = vmatprep.subr.bf16.mxu0 %v9243_v1 }
 0x7b8   :  { %7800 = vmatpush3.bf16.msra.mxu0 %v8573_v51 }
 0x7b9   :  { %7801 = vmatprep.subr.bf16.mxu0 %v9243_v1 }
 0x7bc   :  { %7802 = vmatpush3.bf16.msra.mxu0 %v8574_v52 }
 0x7bd   :  { %7803 = vmatprep.subr.bf16.mxu0 %v9243_v1 }
 0x7c0   :  { %7804 = vmatpush3.bf16.msra.mxu0 %v8575_v53 }
 0x7c1   :  { %7805 = vmatprep.subr.bf16.mxu0 %v9243_v1 }
 0x7c4   :  { %7806 = vmatpush3.bf16.msra.mxu0 %v8576_v58  ;;  %v8596_v58 = vld [vmem:[#allocation4 + $0x248] ss:$12 sps:$4 sm:$0xff]  }
 0x7c5   :  { %7831 = vmatprep.subr.bf16.mxu0 %v9243_v1 }
 0x87a   :  { %v1360_v23 = vpop.f32.mrb[16].mxu0 }
 0x87b   :  { %v1366_v24 = vmul.f32 0.25, %v1360_v23  ;;  %v7783_v26 = vpop.f32.mrb[17].mxu0  ;;  %v8589_v23 = vld [vmem:[#allocation10 + $0x20] sm:$0xff]  }
 0x87c   :  { %v1363_v28 = vpop.f32.mrb[18].mxu0 }
 0x87d   :  { %v7784_v29 = vpop.f32.mrb[19].mxu0  ;;  %v1367_v30 = vsel %vm430_vm2, %v1366_v24, -inf }
 0x87e   :  { %1368 = vmax.xlane.f32.xlu0 %v1367_v30 }
 0x90b   :  { %v1369_v33 = vpop.xlane.xlu0 %1368 }
 0x90c   :  { %v1370_v34 = vsub.f32 %v1366_v24, %v1369_v33  ;;  %v8590_v24 = vld [vmem:[#allocation10 + $0x28] sm:$0xff]  }
 0x90e   :  { %v1371_v36 = vmul.f32 1.442695, %v1370_v34 }
 0x910   :  { %9009 = vpow2.f32 %v1371_v36 }
 0x91a   :  { %v9010_v37 = vpop.eup %9009 }
 0x91b   :  { %v1373_v38 = vsel %vm430_vm2, %v9010_v37, 0.0 }
 0x91c   :  { %1374 = vadd.xlane.f32.xlu1 %v1373_v38  ;;  %v1554_v38 = vrot.slane %v9524_v4, %v9412_v32 }
 0x9a9   :  { %v1375_v54 = vpop.xlane.xlu1 %1374 }
 0x9aa   :  { %9011 = vrcp.f32 %v1375_v54 }
 0x9b4   :  { %v9012_v55 = vpop.eup %9011 }
 0x9b5   :  { %v1377_v56 = vmul.f32 %v9012_v55, %v9010_v37 }
 0x9b7   :  { %v1378_v57 = vpack.c.bf16 %v1377_v56, %v1377_v56  ;;  %v8593_v56 = vld [vmem:[#allocation4 + $0x240] ss:$12 sps:$4 sm:$0xff]  }
 0x9b9   :  { %7788 = vmatmul.mubr.msk.bf16.vlgmr.msra.gmra.mrb[32].mxu1 %vm430_vm2, %v1378_v57  ;;  %v8595_v57 = vld [vmem:[#allocation4 + $0x244] ss:$12 sps:$4 sm:$0xff]  }
 0x9ba   :  { %7827 = vmatprep.mubr.msk.bf16.mxu1 %vm9244_vm0, %v9243_v1  ;;  %7812 = vmatpush3.bf16.msra.mxu1 %v8577_v3 }
 0x9bb   :  { %7813 = vmatprep.subr.bf16.mxu1 %v9243_v1 }
 0x9be   :  { %7814 = vmatpush3.bf16.msra.mxu1 %v8578_v14  ;;  %v8607_v14 = vld [vmem:[#allocation4 + $0x28c] ss:$12 sps:$4 sm:$0xff]  }
 0x9bf   :  { %7815 = vmatprep.subr.bf16.mxu1 %v9243_v1 }
 0x9c2   :  { %7816 = vmatpush3.bf16.msra.mxu1 %v8579_v15  ;;  %v8608_v15 = vld [vmem:[#allocation4 + $0x290] ss:$12 sps:$4 sm:$0xff]  }
 0x9c3   :  { %7817 = vmatprep.subr.bf16.mxu1 %v9243_v1 }
 0x9c6   :  { %7818 = vmatpush3.bf16.msra.mxu1 %v8580_v16  ;;  %v8605_v16 = vld [vmem:[#allocation4 + $0x288] ss:$12 sps:$4 sm:$0xff]  }
 0x9c7   :  { %7819 = vmatprep.subr.bf16.mxu1 %v9243_v1 }
 0xa8c   :  { %v1419_v59 = vpop.f32.mrb[32].mxu1 }
 0xa8d   :  { %v1425_v60 = vpack.c.bf16 %v1419_v59, %v1419_v59  ;;  %v7789_v61 = vpop.f32.mrb[33].mxu1  ;;  %v8599_v59 = vld [vmem:[#allocation4 + $0x25c] ss:$12 sps:$4 sm:$0xff]  }
 0xa8e   :  { %v1422_v63 = vpop.f32.mrb[34].mxu1  ;;  %v8597_v61 = vld [vmem:[#allocation4 + $0x258] ss:$12 sps:$4 sm:$0xff]  }
 0xa8f   :  { %v7790_v2 = vpop.f32.mrb[35].mxu1  ;;  %7808 = vmatmul.mubr.bf16.vlgmr.msra.gmra.mrb[20].mxu0 %v1425_v60  ;;  %v8600_v60 = vld [vmem:[#allocation4 + $0x260] ss:$12 sps:$4 sm:$0xff]   ;;  %v9559_v63 = vsub.s32 4, %v9409_v31 }
 0xa90   :  { %7847 = vmatprep.mubr.msk.bf16.mxu0 %vm9244_vm0, %v9243_v1  ;;  %7832 = vmatpush3.bf16.msra.mxu0 %v8585_v19  ;;  %v8616_v19 = vld [vmem:[#allocation4 + $0x2c0] ss:$12 sps:$4 sm:$0xff]  }
 0xa91   :  { %7833 = vmatprep.subr.bf16.mxu0 %v9243_v1  ;;  %v1691_v2 = vrot.slane %v9524_v4, %v9559_v63 }
 0xa94   :  { %7834 = vmatpush3.bf16.msra.mxu0 %v8586_v20  ;;  %v8613_v20 = vld [vmem:[#allocation4 + $0x2b8] ss:$12 sps:$4 sm:$0xff]  }
 0xa95   :  { %7835 = vmatprep.subr.bf16.mxu0 %v9243_v1 }
 0xa98   :  { %7836 = vmatpush3.bf16.msra.mxu0 %v8587_v21  ;;  %v8619_v21 = vld [vmem:[#allocation4 + $0x2d4] ss:$12 sps:$4 sm:$0xff]  }
 0xa99   :  { %7837 = vmatprep.subr.bf16.mxu0 %v9243_v1 }
 0xa9c   :  { %7838 = vmatpush3.bf16.msra.mxu0 %v8588_v22  ;;  %v8620_v22 = vld [vmem:[#allocation4 + $0x2d8] ss:$12 sps:$4 sm:$0xff]  }
 0xa9d   :  { %7839 = vmatprep.subr.bf16.mxu0 %v9243_v1 }
 0xaa0   :  { %7840 = vmatpush3.bf16.msra.mxu0 %v8589_v23  ;;  %v8617_v23 = vld [vmem:[#allocation4 + $0x2d0] ss:$12 sps:$4 sm:$0xff]  }
 0xaa1   :  { %7841 = vmatprep.subr.bf16.mxu0 %v9243_v1 }
 0xaa4   :  { %7842 = vmatpush3.bf16.msra.mxu0 %v8590_v24  ;;  %v8623_v24 = vld [vmem:[#allocation4 + $0x2ec] ss:$12 sps:$4 sm:$0xff]  }
 0xaa5   :  { %7843 = vmatprep.subr.bf16.mxu0 %v9243_v1 }
 0xaa8   :  { %7844 = vmatpush3.bf16.msra.mxu0 %v8591_v44 }
 0xaa9   :  { %7845 = vmatprep.subr.bf16.mxu0 %v9243_v1 }
 0xaac   :  { %7846 = vmatpush3.bf16.msra.mxu0 %v8592_v46 }
 0xaad   :  { %7851 = vmatprep.subr.bf16.mxu0 %v9243_v1 }
 0xb62   :  { %v1525_v6 = vpop.f32.mrb[20].mxu0 }
 0xb63   :  { %v1531_v7 = vadd.f32 %v1525_v6, %v9487_v62  ;;  %v7809_v8 = vpop.f32.mrb[21].mxu0  ;;  %v8581_v62 = vld [vmem:[#allocation9 + $0x20] sm:$0xff]  }
 0xb64   :  { %v1528_v9 = vpop.f32.mrb[22].mxu0  ;;  %7820 = vmatpush3.bf16.msra.mxu1 %v8581_v62  ;;  %v8611_v62 = vld [vmem:[#allocation4 + $0x2a4] ss:$12 sps:$4 sm:$0xff]  }
 0xb65   :  { %v1536_v10 = vadd.f32 %v1535_v5, %v1531_v7  ;;  %v7810_v11 = vpop.f32.mrb[23].mxu0  ;;  %7821 = vmatprep.subr.bf16.mxu1 %v9243_v1 }
 0xb66   :  { %v8603_v11 = vld [vmem:[#allocation4 + $0x274] ss:$12 sps:$4 sm:$0xff]  }
 0xb67   :  { %v1537_v12 = vadd.f32 %v1536_v10, %v9391_v25  ;;  %v8583_v25 = vld [vmem:[#allocation9 + $0x30] sm:$0xff]  }
 0xb68   :  { %7822 = vmatpush3.bf16.msra.mxu1 %v8582_v17  ;;  %v8612_v17 = vld [vmem:[#allocation4 + $0x2a8] ss:$12 sps:$4 sm:$0xff]  }
 0xb69   :  { %1538 = vadd.xlane.f32.xlu0 %v1537_v12  ;;  %v1541_v13 = vmul.f32 %v1537_v12, %v1537_v12  ;;  %7823 = vmatprep.subr.bf16.mxu1 %v9243_v1 }
 0xb6b   :  { %1542 = vadd.xlane.f32.xlu1 %v1541_v13  ;;  %v8601_v13 = vld [vmem:[#allocation4 + $0x270] ss:$12 sps:$4 sm:$0xff]  }
 0xb6c   :  { %7824 = vmatpush3.bf16.msra.mxu1 %v8583_v25  ;;  %v8609_v25 = vld [vmem:[#allocation4 + $0x2a0] ss:$12 sps:$4 sm:$0xff]  }
 0xb6d   :  { %7825 = vmatprep.subr.bf16.mxu1 %v9243_v1 }
 0xb70   :  { %7826 = vmatpush3.bf16.msra.mxu1 %v8584_v18  ;;  %v8615_v18 = vld [vmem:[#allocation4 + $0x2bc] ss:$12 sps:$4 sm:$0xff]  }
 0xb71   :  { %1986 = vmatprep.subr.bf16.mxu1 %v8595_v57 }
 0xbf6   :  { %v1539_v26 = vpop.xlane.xlu0 %1538 }
 0xbf7   :  { %v1540_v28 = vmul.f32 0.020833334, %v1539_v26  ;;  %v8624_v26 = vld [vmem:[#allocation4 + $0x2f0] ss:$12 sps:$4 sm:$0xff]  }
 0xbf8   :  { %v1543_v29 = vpop.xlane.xlu1 %1542 }
 0xbf9   :  { %v1545_v30 = vmul.f32 %v1540_v28, %v1540_v28  ;;  %v1544_v33 = vmul.f32 0.020833334, %v1543_v29  ;;  %v1547_v37 = vsub.f32 %v1537_v12, %v1540_v28  ;;  %v8604_v12 = vld [vmem:[#allocation4 + $0x278] ss:$12 sps:$4 sm:$0xff]   ;;  %v8621_v28 = vld [vmem:[#allocation4 + $0x2e8] ss:$12 sps:$4 sm:$0xff]  }
 0xbfb   :  { %v1546_v34 = vsub.f32 %v1544_v33, %v1545_v30 }
 0xbfd   :  { %v1548_v36 = vadd.f32 1e-05, %v1546_v34 }
 0xbff   :  { %9013 = vrsqrt.f32 %v1548_v36 }
 0xc09   :  { %v9014_v27 = vpop.eup %9013 }
 0xc0a   :  { %v1550_v39 = vmul.f32 %v9014_v27, %v1547_v37  ;;  %v9576_v27 = vsub.s32 5, %v9409_v31 }
 0xc0c   :  { %v1555_v41 = vmul.f32 %v1554_v38, %v1550_v39  ;;  %v9579_v39 = vsub.s32 6, %v9409_v31  ;;  %v8626_v31 = vld [vmem:[#allocation4 + $0x320] ss:$12 sps:$4 sm:$0xff]  }
 0xc0e   :  { %v1560_v42 = vadd.f32 %v1559_v40, %v1555_v41  ;;  %v1797_v41 = vrot.slane %v9524_v4, %v9576_v27 }
 0xc10   :  { %v1561_v43 = vpack.c.bf16 %v1560_v42, %v1560_v42 }
 0xc12   :  { %7828 = vmatmul.mubr.bf16.vlgmr.msra.gmra.mrb[36].mxu1 %v1561_v43  ;;  %v1802_v43 = vrot.slane %v9524_v4, %v9579_v39  ;;  %v8627_v4 = vld [vmem:[#allocation4 + $0x338] ss:$12 sps:$4 sm:$0xff]  }
 0xc13   :  { %2018 = vmatprep.mubr.bf16.mxu1 %v9242_v0  ;;  %1987 = vmatpush1.bf16.msra.mxu1 %v8593_v56  ;;  %v1841_v56 = vld [vmem:[#allocation6 + $0x9] sm:$0x7] }
 0xc14   :  { %1988 = vmatprep.subr.bf16.mxu1 %v8599_v59  ;;  %v1850_v57 = vrot.slane %v1841_v56, %v9412_v32 }
 0xc17   :  { %1989 = vmatpush1.bf16.msra.mxu1 %v8597_v61 }
 0xc18   :  { %1990 = vmatprep.subr.bf16.mxu1 %v8603_v11 }
 0xc1b   :  { %1991 = vmatpush1.bf16.msra.mxu1 %v8601_v13 }
 0xc1c   :  { %1992 = vmatprep.subr.bf16.mxu1 %v8607_v14 }
 0xc1f   :  { %1993 = vmatpush1.bf16.msra.mxu1 %v8605_v16 }
 0xc20   :  { %1994 = vmatprep.subr.bf16.mxu1 %v8611_v62 }
 0xc23   :  { %1995 = vmatpush1.bf16.msra.mxu1 %v8609_v25 }
 0xc24   :  { %1996 = vmatprep.subr.bf16.mxu1 %v8615_v18 }
 0xc27   :  { %1997 = vmatpush1.bf16.msra.mxu1 %v8613_v20 }
 0xc28   :  { %1998 = vmatprep.subr.bf16.mxu1 %v8619_v21 }
 0xc2b   :  { %1999 = vmatpush1.bf16.msra.mxu1 %v8617_v23 }
 0xc2c   :  { %2000 = vmatprep.subr.bf16.mxu1 %v8623_v24 }
 0xc2f   :  { %2001 = vmatpush1.bf16.msra.mxu1 %v8621_v28 }
 0xc30   :  { %7871 = vmatprep.subr.bf16.mxu1 %v9243_v1 }
 0xce5   :  { %v1664_v49 = vpop.f32.mrb[36].mxu1 }
 0xce6   :  { %v1665_v50 = vadd.f32 %v1664_v49, %v1581_v48  ;;  %v7829_v51 = vpop.f32.mrb[37].mxu1  ;;  %v8625_v49 = vld [vmem:[#allocation4 + $0x308] ss:$12 sps:$4 sm:$0xff]  }
 0xce7   :  { %v1667_v52 = vpop.f32.mrb[38].mxu1  ;;  %v8628_v51 = vld [vmem:[#allocation4 + $0x350] ss:$12 sps:$4 sm:$0xff]  }
 0xce8   :  { %v1670_v53 = vmax.f32 %v1665_v50, 0.0  ;;  %v7830_v54 = vpop.f32.mrb[39].mxu1  ;;  %v8629_v52 = vld [vmem:[#allocation4 + $0x368] ss:$12 sps:$4 sm:$0xff]  }
 0xce9   :  { %v8631_v54 = vld [vmem:[#allocation4 + $0x398] ss:$12 sps:$4 sm:$0xff]  }
 0xcea   :  { %v1671_v55 = vpack.c.bf16 %v1670_v53, %v1670_v53  ;;  %v8630_v53 = vld [vmem:[#allocation4 + $0x380] ss:$12 sps:$4 sm:$0xff]  }
 0xcec   :  { %7848 = vmatmul.mubr.bf16.vlgmr.msra.gmra.mrb[24].mxu0 %v1671_v55  ;;  %v8632_v55 = vld [vmem:[#allocation4 + $0x3b0] ss:$12 sps:$4 sm:$0xff]  }
 0xced   :  { %7867 = vmatprep.mubr.msk.bf16.mxu0 %vm9244_vm0, %v9243_v1  ;;  %7852 = vmatpush3.bf16.msra.mxu0 %v8596_v58 }
 0xcee   :  { %7853 = vmatprep.subr.bf16.mxu0 %v9243_v1 }
 0xcf1   :  { %7854 = vmatpush3.bf16.msra.mxu0 %v8600_v60  ;;  %v1854_v60 = vrot.slane %v1841_v56, %v9423_v45 }
 0xcf2   :  { %7855 = vmatprep.subr.bf16.mxu0 %v9243_v1 }
 0xcf5   :  { %7856 = vmatpush3.bf16.msra.mxu0 %v8604_v12 }
 0xcf6   :  { %7857 = vmatprep.subr.bf16.mxu0 %v9243_v1 }
 0xcf9   :  { %7858 = vmatpush3.bf16.msra.mxu0 %v8608_v15 }
 0xcfa   :  { %7859 = vmatprep.subr.bf16.mxu0 %v9243_v1 }
 0xcfd   :  { %7860 = vmatpush3.bf16.msra.mxu0 %v8612_v17 }
 0xcfe   :  { %7861 = vmatprep.subr.bf16.mxu0 %v9243_v1 }
 0xd01   :  { %7862 = vmatpush3.bf16.msra.mxu0 %v8616_v19 }
 0xd02   :  { %7863 = vmatprep.subr.bf16.mxu0 %v9243_v1 }
 0xd05   :  { %7864 = vmatpush3.bf16.msra.mxu0 %v8620_v22 }
 0xd06   :  { %7865 = vmatprep.subr.bf16.mxu0 %v9243_v1 }
 0xd09   :  { %7866 = vmatpush3.bf16.msra.mxu0 %v8624_v26 }
 0xd0a   :  { %7883 = vmatprep.subr.bf16.mxu0 %v9243_v1 }
 0xdbf   :  { %v1774_v3 = vpop.f32.mrb[24].mxu0 }
 0xdc0   :  { %v1775_v5 = vadd.f32 %v1774_v3, %v1691_v2  ;;  %v7849_v6 = vpop.f32.mrb[25].mxu0 }
 0xdc1   :  { %v1777_v7 = vpop.f32.mrb[26].mxu0 }
 0xdc2   :  { %v9563_v8 = vadd.f32 %v1775_v5, %v1560_v42  ;;  %v7850_v9 = vpop.f32.mrb[27].mxu0  ;;  %v1846_v7 = vrot.slane %v1841_v56, %v9416_v35  ;;  %v8654_v56 = vld [vmem:[#allocation4 + $0x3a8] ss:$12 sps:$4 sm:$0xff]  }
 0xdc4   :  { %1781 = vadd.xlane.f32.xlu0 %v9563_v8  ;;  %v1784_v10 = vmul.f32 %v9563_v8, %v9563_v8 }
 0xdc6   :  { %1785 = vadd.xlane.f32.xlu1 %v1784_v10 }
 0xe51   :  { %v1782_v29 = vpop.xlane.xlu0 %1781 }
 0xe52   :  { %v1783_v30 = vmul.f32 0.020833334, %v1782_v29 }
 0xe53   :  { %v1786_v33 = vpop.xlane.xlu1 %1785 }
 0xe54   :  { %v1788_v34 = vmul.f32 %v1783_v30, %v1783_v30  ;;  %v1787_v36 = vmul.f32 0.020833334, %v1786_v33  ;;  %v1790_v40 = vsub.f32 %v9563_v8, %v1783_v30  ;;  %v8635_v33 = vld [vmem:[#allocation4 + $0x304] ss:$12 sps:$4 sm:$0xff]  }
 0xe56   :  { %v1789_v37 = vsub.f32 %v1787_v36, %v1788_v34 }
 0xe58   :  { %v1791_v38 = vadd.f32 1e-05, %v1789_v37 }
 0xe5a   :  { %9015 = vrsqrt.f32 %v1791_v38  ;;  %v8633_v38 = vld [vmem:[#allocation4 + $0x300] ss:$12 sps:$4 sm:$0xff]  }
 0xe64   :  { %v9016_v42 = vpop.eup %9015 }
 0xe65   :  { %v1793_v44 = vmul.f32 %v9016_v42, %v1790_v40  ;;  %v8636_v42 = vld [vmem:[#allocation4 + $0x318] ss:$12 sps:$4 sm:$0xff]  }
 0xe67   :  { %v1798_v46 = vmul.f32 %v1797_v41, %v1793_v44  ;;  %v8638_v41 = vld [vmem:[#allocation4 + $0x31c] ss:$12 sps:$4 sm:$0xff]  }
 0xe68   :  { %v8639_v44 = vld [vmem:[#allocation4 + $0x330] ss:$12 sps:$4 sm:$0xff]  }
 0xe69   :  { %v9586_v48 = vadd.f32 %v1802_v43, %v1798_v46  ;;  %v8641_v43 = vld [vmem:[#allocation4 + $0x334] ss:$12 sps:$4 sm:$0xff]   ;;  %v8644_v46 = vld [vmem:[#allocation4 + $0x34c] ss:$12 sps:$4 sm:$0xff]  }
 0xe6b   :  { %v9590_v50 = vpack.c.bf16 %v9586_v48, %v9586_v48 }
 0xe6d   :  { %2019 = vmatmul.mubr.bf16.vlgmr.msra.gmra.mrb[40].mxu1 %v9590_v50  ;;  %7868 = vmatmul.mubr.bf16.vlgmr.msra.gmra.mrb[28].mxu0 %v9590_v50 }
 0xe6e   :  { %7884 = vmatpush3.bf16.msra.mxu0 %v8625_v49  ;;  %7899 = vmatprep.mubr.msk.bf16.mxu0 %vm9244_vm0, %v9243_v1  ;;  %v8642_v49 = vld [vmem:[#allocation4 + $0x348] ss:$12 sps:$4 sm:$0xff]  }
 0xe6f   :  { %7885 = vmatprep.subr.bf16.mxu0 %v9243_v1  ;;  %7873 = vmatprep.mubr.msk.bf16.mxu1 %vm9244_vm0, %v9243_v1 }
 0xe72   :  { %7886 = vmatpush3.bf16.msra.mxu0 %v8626_v31  ;;  %v8647_v31 = vld [vmem:[#allocation4 + $0x364] ss:$12 sps:$4 sm:$0xff]  }
 0xe73   :  { %7887 = vmatprep.subr.bf16.mxu0 %v9243_v1 }
 0xe76   :  { %7888 = vmatpush3.bf16.msra.mxu0 %v8627_v4  ;;  %v8645_v4 = vld [vmem:[#allocation4 + $0x360] ss:$12 sps:$4 sm:$0xff]  }
 0xe77   :  { %7889 = vmatprep.subr.bf16.mxu0 %v9243_v1 }
 0xe7a   :  { %7890 = vmatpush3.bf16.msra.mxu0 %v8628_v51  ;;  %v8650_v51 = vld [vmem:[#allocation4 + $0x37c] ss:$12 sps:$4 sm:$0xff]  }
 0xe7b   :  { %7891 = vmatprep.subr.bf16.mxu0 %v9243_v1 }
 0xe7e   :  { %7892 = vmatpush3.bf16.msra.mxu0 %v8629_v52  ;;  %v8648_v52 = vld [vmem:[#allocation4 + $0x378] ss:$12 sps:$4 sm:$0xff]  }
 0xe7f   :  { %7893 = vmatprep.subr.bf16.mxu0 %v9243_v1 }
 0xe82   :  { %7894 = vmatpush3.bf16.msra.mxu0 %v8630_v53  ;;  %v8653_v53 = vld [vmem:[#allocation4 + $0x394] ss:$12 sps:$4 sm:$0xff]  }
 0xe83   :  { %7895 = vmatprep.subr.bf16.mxu0 %v9243_v1 }
 0xe86   :  { %7896 = vmatpush3.bf16.msra.mxu0 %v8631_v54  ;;  %v8651_v54 = vld [vmem:[#allocation4 + $0x390] ss:$12 sps:$4 sm:$0xff]  }
 0xe87   :  { %7897 = vmatprep.subr.bf16.mxu0 %v9243_v1 }
 0xe8a   :  { %7898 = vmatpush3.bf16.msra.mxu0 %v8632_v55  ;;  %v8656_v55 = vld [vmem:[#allocation4 + $0x3ac] ss:$12 sps:$4 sm:$0xff]  }
 0xe8b   :  { %7915 = vmatprep.subr.bf16.mxu0 %v9243_v1 }
 0xe8d   :  { %7900 = vmatmul.mubr.bf16.vlgmr.msra.gmra.mrb[32].mxu0 %v9590_v50 }
 0xe8e   :  { %7931 = vmatprep.mubr.msk.bf16.mxu0 %vm9244_vm0, %v9243_v1 }
 0xf40   :  { %v2020_v58 = vpop.f32.mrb[40].mxu1  ;;  %v2061_v59 = vpop.f32.mrb[28].mxu0 }
 0xf41   :  { %v2022_v61 = vpop.f32.mrb[41].mxu1  ;;  %v7869_v2 = vpop.f32.mrb[29].mxu0  ;;  %v2062_v11 = vadd.f32 %v2061_v59, %v1854_v60  ;;  %v2021_v12 = vadd.f32 %v2020_v58, %v1846_v7 }
 0xf42   :  { %v2023_v3 = vadd.f32 %v2022_v61, %v1850_v57  ;;  %v2024_v5 = vpop.f32.mrb[42].mxu1  ;;  %v2064_v6 = vpop.f32.mrb[30].mxu0  ;;  %v2221_v61 = vld [vmem:[#allocation6 + $0xc] sm:$0x7] }
 0xf43   :  { %v2025_v8 = vpop.f32.mrb[43].mxu1  ;;  %v7870_v9 = vpop.f32.mrb[31].mxu0  ;;  %v2069_v13 = vpack.c.bf16 %v2062_v11, %v2062_v11  ;;  %v2067_v14 = vpack.c.bf16 %v2021_v12, %v2021_v12  ;;  %v2230_v2 = vrot.slane %v2221_v61, %v9412_v32  ;;  %v2234_v5 = vrot.slane %v2221_v61, %v9423_v45 }
 0xf44   :  { %v2068_v10 = vpack.c.bf16 %v2023_v3, %v2023_v3  ;;  %v2226_v9 = vrot.slane %v2221_v61, %v9416_v35  ;;  %v8671_v61 = vld [vmem:[#allocation4 + $0x458] ss:$12 sps:$4 sm:$0xff]  }
 0xf45   :  { %v2127_v15 = vsel %vm446_vm1, %v2069_v13, 0 }
 0xf46   :  { %7872 = vmatpush3.bf16.xpose.msra.mxu1 %v2068_v10 }
 0xf47   :  { %7877 = vmatprep.subr.bf16.mxu1 %v9243_v1 }
 0xf4d   :  { %7874 = vmatmul.mubr.bf16.vlgmr.msra.gmra.mrb[44].mxu1 %v2067_v14 }
 0xf4e   :  { %7878 = vmatpush3.bf16.msra.mxu1 %v2127_v15  ;;  %7879 = vmatprep.mubr.msk.bf16.mxu1 %vm9244_vm0, %v9243_v1 }
 0xf4f   :  { %2366 = vmatprep.subr.bf16.mxu1 %v8635_v33  ;;  %v8676_v33 = vld [vmem:[#allocation7 + $0x118] sm:$0xff]  }
 0xf60   :  { %v9616_v16 = vpop.f32.mrb[32].mxu0 }
 0xf61   :  { %v7901_v62 = vpop.f32.mrb[33].mxu0  ;;  %v2442_v12 = vadd.f32 %v9616_v16, %v2234_v5 }
 0xf62   :  { %v2444_v17 = vpop.f32.mrb[34].mxu0 }
 0xf63   :  { %v7902_v25 = vpop.f32.mrb[35].mxu0  ;;  %v2449_v14 = vpack.c.bf16 %v2442_v12, %v2442_v12  ;;  %v8684_v12 = vld [vmem:[#allocation4 + $0x3d8] ss:$12 sps:$4 sm:$0xff]  }
 0xf65   :  { %v2507_v62 = vsel %vm446_vm1, %v2449_v14, 0  ;;  %v8687_v14 = vld [vmem:[#allocation4 + $0x3f0] ss:$12 sps:$4 sm:$0xff]  }
0x1020   :  { %v2104_v18 = vpop.f32.mrb[44].mxu1 }
0x1021   :  { %v2110_v19 = vmul.f32 0.25, %v2104_v18  ;;  %v7875_v20 = vpop.f32.mrb[45].mxu1 }
0x1022   :  { %v2107_v21 = vpop.f32.mrb[46].mxu1 }
0x1023   :  { %v7876_v22 = vpop.f32.mrb[47].mxu1  ;;  %v2111_v23 = vsel %vm430_vm2, %v2110_v19, -inf }
0x1024   :  { %2112 = vmax.xlane.f32.xlu0 %v2111_v23 }
0x10b1   :  { %v2113_v24 = vpop.xlane.xlu0 %2112 }
0x10b2   :  { %v2114_v26 = vsub.f32 %v2110_v19, %v2113_v24 }
0x10b4   :  { %v2115_v28 = vmul.f32 1.442695, %v2114_v26 }
0x10b6   :  { %9017 = vpow2.f32 %v2115_v28  ;;  %v8673_v28 = vld [vmem:[#allocation7 + $0x100] sm:$0xff]  }
0x10b7   :  { %7916 = vmatpush3.bf16.msra.mxu0 %v8673_v28 }
0x10b8   :  { %7917 = vmatprep.subr.bf16.mxu0 %v9243_v1 }
0x10c0   :  { %v9018_v29 = vpop.eup %9017 }
0x10c1   :  { %v2117_v30 = vsel %vm430_vm2, %v9018_v29, 0.0 }
0x10c2   :  { %2118 = vadd.xlane.f32.xlu1 %v2117_v30  ;;  %v8675_v30 = vld [vmem:[#allocation7 + $0x110] sm:$0xff]  }
0x114f   :  { %v2119_v34 = vpop.xlane.xlu1 %2118 }
0x1150   :  { %9019 = vrcp.f32 %v2119_v34  ;;  %v8677_v34 = vld [vmem:[#allocation7 + $0x120] sm:$0xff]  }
0x115a   :  { %v9020_v36 = vpop.eup %9019 }
0x115b   :  { %v2121_v37 = vmul.f32 %v9020_v36, %v9018_v29  ;;  %v8674_v29 = vld [vmem:[#allocation7 + $0x108] sm:$0xff]  }
0x115c   :  { %7918 = vmatpush3.bf16.msra.mxu0 %v8674_v29  ;;  %v8678_v36 = vld [vmem:[#allocation7 + $0x128] sm:$0xff]  }
0x115d   :  { %v2122_v40 = vpack.c.bf16 %v2121_v37, %v2121_v37  ;;  %7919 = vmatprep.subr.bf16.mxu0 %v9243_v1  ;;  %v8679_v37 = vld [vmem:[#allocation7 + $0x130] sm:$0xff]   ;;  %v2777_v29 = vld [vmem:[#allocation6 + $0xf] sm:$0x7] }
0x115f   :  { %7880 = vmatmul.mubr.msk.bf16.vlgmr.msra.gmra.mrb[48].mxu1 %vm430_vm2, %v2122_v40 }
0x1160   :  { %2367 = vmatpush1.bf16.msra.mxu1 %v8633_v38  ;;  %2398 = vmatprep.mubr.bf16.mxu1 %v9242_v0  ;;  %v8680_v38 = vld [vmem:[#allocation7 + $0x138] sm:$0xff]  }
0x1161   :  { %2368 = vmatprep.subr.bf16.mxu1 %v8638_v41  ;;  %7920 = vmatpush3.bf16.msra.mxu0 %v8675_v30  ;;  %v2790_v30 = vrot.slane %v2777_v29, %v9423_v45 }
0x1162   :  { %7921 = vmatprep.subr.bf16.mxu0 %v9243_v1 }
0x1164   :  { %2369 = vmatpush1.bf16.msra.mxu1 %v8636_v42 }
0x1165   :  { %2370 = vmatprep.subr.bf16.mxu1 %v8641_v43  ;;  %7922 = vmatpush3.bf16.msra.mxu0 %v8676_v33  ;;  %v8657_v43 = vld [vmem:[#allocation7 + $0xc0] sm:$0xff]  }
0x1166   :  { %7923 = vmatprep.subr.bf16.mxu0 %v9243_v1 }
0x1168   :  { %2371 = vmatpush1.bf16.msra.mxu1 %v8639_v44 }
0x1169   :  { %2372 = vmatprep.subr.bf16.mxu1 %v8644_v46  ;;  %7924 = vmatpush3.bf16.msra.mxu0 %v8677_v34  ;;  %v8658_v46 = vld [vmem:[#allocation7 + $0xc8] sm:$0xff]  }
0x116a   :  { %7925 = vmatprep.subr.bf16.mxu0 %v9243_v1 }
0x116c   :  { %2373 = vmatpush1.bf16.msra.mxu1 %v8642_v49  ;;  %v8659_v49 = vld [vmem:[#allocation7 + $0xd0] sm:$0xff]  }
0x116d   :  { %2374 = vmatprep.subr.bf16.mxu1 %v8647_v31  ;;  %7926 = vmatpush3.bf16.msra.mxu0 %v8678_v36  ;;  %v8660_v31 = vld [vmem:[#allocation7 + $0xd8] sm:$0xff]  }
0x116e   :  { %7927 = vmatprep.subr.bf16.mxu0 %v9243_v1 }
0x1170   :  { %2375 = vmatpush1.bf16.msra.mxu1 %v8645_v4  ;;  %v8661_v4 = vld [vmem:[#allocation7 + $0xe0] sm:$0xff]  }
0x1171   :  { %2376 = vmatprep.subr.bf16.mxu1 %v8650_v51  ;;  %7928 = vmatpush3.bf16.msra.mxu0 %v8679_v37  ;;  %v8662_v51 = vld [vmem:[#allocation7 + $0xe8] sm:$0xff]  }
0x1172   :  { %7929 = vmatprep.subr.bf16.mxu0 %v9243_v1 }
0x1174   :  { %2377 = vmatpush1.bf16.msra.mxu1 %v8648_v52  ;;  %v8663_v52 = vld [vmem:[#allocation7 + $0xf0] sm:$0xff]  }
0x1175   :  { %2378 = vmatprep.subr.bf16.mxu1 %v8653_v53  ;;  %7930 = vmatpush3.bf16.msra.mxu0 %v8680_v38  ;;  %v8664_v53 = vld [vmem:[#allocation7 + $0xf8] sm:$0xff]  }
0x1178   :  { %2379 = vmatpush1.bf16.msra.mxu1 %v8651_v54  ;;  %v8665_v54 = vld [vmem:[#allocation4 + $0x3c8] ss:$12 sps:$4 sm:$0xff]  }
0x1179   :  { %2380 = vmatprep.subr.bf16.mxu1 %v8656_v55 }
0x117c   :  { %2381 = vmatpush1.bf16.msra.mxu1 %v8654_v56  ;;  %v8666_v56 = vld [vmem:[#allocation4 + $0x3e0] ss:$12 sps:$4 sm:$0xff]  }
0x117d   :  { %7903 = vmatprep.subr.bf16.mxu1 %v9243_v1 }
0x117f   :  { %2399 = vmatmul.mubr.bf16.vlgmr.msra.gmra.mrb[52].mxu1 %v9590_v50 }
0x1180   :  { %7905 = vmatprep.mubr.msk.bf16.mxu1 %vm9244_vm0, %v9243_v1 }
0x1232   :  { %v9626_v57 = vpop.f32.mrb[48].mxu1 }
0x1233   :  { %v7881_v58 = vpop.f32.mrb[49].mxu1  ;;  %v2169_v55 = vpack.c.bf16 %v9626_v57, %v9626_v57  ;;  %v8669_v57 = vld [vmem:[#allocation4 + $0x428] ss:$12 sps:$4 sm:$0xff]  }
0x1234   :  { %v2166_v59 = vpop.f32.mrb[50].mxu1  ;;  %v8667_v58 = vld [vmem:[#allocation4 + $0x3f8] ss:$12 sps:$4 sm:$0xff]  }
0x1235   :  { %v7882_v60 = vpop.f32.mrb[51].mxu1  ;;  %v8668_v59 = vld [vmem:[#allocation4 + $0x410] ss:$12 sps:$4 sm:$0xff]  }
0x1236   :  { %v8670_v60 = vld [vmem:[#allocation4 + $0x440] ss:$12 sps:$4 sm:$0xff]  }
0x1252   :  { %v2400_v3 = vpop.f32.mrb[52].mxu1 }
0x1253   :  { %v2402_v6 = vpop.f32.mrb[53].mxu1  ;;  %v2401_v13 = vadd.f32 %v2400_v3, %v2226_v9  ;;  %v8683_v3 = vld [vmem:[#allocation4 + $0x3c4] ss:$12 sps:$4 sm:$0xff]   ;;  %v8686_v9 = vld [vmem:[#allocation4 + $0x3dc] ss:$12 sps:$4 sm:$0xff]  }
0x1254   :  { %v2403_v7 = vadd.f32 %v2402_v6, %v2230_v2  ;;  %v2404_v8 = vpop.f32.mrb[54].mxu1  ;;  %v8672_v2 = vld [vmem:[#allocation4 + $0x470] ss:$12 sps:$4 sm:$0xff]   ;;  %2922 = vmatprep.subr.bf16.mxu0 %v8683_v3  ;;  %v8681_v6 = vld [vmem:[#allocation4 + $0x3c0] ss:$12 sps:$4 sm:$0xff]  }
0x1255   :  { %v2405_v10 = vpop.f32.mrb[55].mxu1  ;;  %v2447_v15 = vpack.c.bf16 %v2401_v13, %v2401_v13  ;;  %v8689_v13 = vld [vmem:[#allocation4 + $0x3f4] ss:$12 sps:$4 sm:$0xff]  }
0x1256   :  { %v2448_v11 = vpack.c.bf16 %v2403_v7, %v2403_v7 }
0x1258   :  { %7904 = vmatpush3.bf16.xpose.msra.mxu1 %v2448_v11 }
0x1259   :  { %7909 = vmatprep.subr.bf16.mxu1 %v9243_v1 }
0x125f   :  { %7906 = vmatmul.mubr.bf16.vlgmr.msra.gmra.mrb[56].mxu1 %v2447_v15  ;;  %v8692_v15 = vld [vmem:[#allocation4 + $0x40c] ss:$12 sps:$4 sm:$0xff]  }
0x1260   :  { %7910 = vmatpush3.bf16.msra.mxu1 %v2507_v62  ;;  %7911 = vmatprep.mubr.msk.bf16.mxu1 %vm9244_vm0, %v9243_v1  ;;  %v8690_v62 = vld [vmem:[#allocation4 + $0x408] ss:$12 sps:$4 sm:$0xff]  }
0x1261   :  { %7935 = vmatprep.subr.bf16.mxu1 %v9243_v1 }
0x1332   :  { %v2484_v17 = vpop.f32.mrb[56].mxu1 }
0x1333   :  { %v2490_v25 = vmul.f32 0.25, %v2484_v17  ;;  %v7907_v18 = vpop.f32.mrb[57].mxu1  ;;  %v8695_v17 = vld [vmem:[#allocation4 + $0x424] ss:$12 sps:$4 sm:$0xff]  }
0x1334   :  { %v2487_v19 = vpop.f32.mrb[58].mxu1  ;;  %v8698_v18 = vld [vmem:[#allocation4 + $0x43c] ss:$12 sps:$4 sm:$0xff]  }
0x1335   :  { %v7908_v16 = vpop.f32.mrb[59].mxu1  ;;  %v2491_v20 = vsel %vm430_vm2, %v2490_v25, -inf  ;;  %v8696_v19 = vld [vmem:[#allocation4 + $0x438] ss:$12 sps:$4 sm:$0xff]  }
0x1336   :  { %2492 = vmax.xlane.f32.xlu0 %v2491_v20  ;;  %v8701_v16 = vld [vmem:[#allocation4 + $0x454] ss:$12 sps:$4 sm:$0xff]   ;;  %v8699_v20 = vld [vmem:[#allocation4 + $0x450] ss:$12 sps:$4 sm:$0xff]  }
0x13c3   :  { %v2493_v21 = vpop.xlane.xlu0 %2492 }
0x13c4   :  { %v2494_v22 = vsub.f32 %v2490_v25, %v2493_v21  ;;  %v8693_v25 = vld [vmem:[#allocation4 + $0x420] ss:$12 sps:$4 sm:$0xff]  }
0x13c5   :  { %v8704_v21 = vld [vmem:[#allocation4 + $0x46c] ss:$12 sps:$4 sm:$0xff]  }
0x13c6   :  { %v2495_v23 = vmul.f32 1.442695, %v2494_v22  ;;  %v8702_v22 = vld [vmem:[#allocation4 + $0x468] ss:$12 sps:$4 sm:$0xff]  }
0x13c8   :  { %9021 = vpow2.f32 %v2495_v23 }
0x13d2   :  { %v9022_v24 = vpop.eup %9021 }
0x13d3   :  { %v2497_v26 = vsel %vm430_vm2, %v9022_v24, 0.0 }
0x13d4   :  { %2498 = vadd.xlane.f32.xlu1 %v2497_v26 }
0x1461   :  { %v2499_v40 = vpop.xlane.xlu1 %2498 }
0x1462   :  { %9023 = vrcp.f32 %v2499_v40 }
0x146c   :  { %v9024_v41 = vpop.eup %9023 }
0x146d   :  { %v2501_v42 = vmul.f32 %v9024_v41, %v9022_v24 }
0x146f   :  { %v2502_v44 = vpack.c.bf16 %v2501_v42, %v2501_v42 }
0x1471   :  { %7912 = vmatmul.mubr.msk.bf16.vlgmr.msra.gmra.mrb[60].mxu1 %vm430_vm2, %v2502_v44 }
0x1472   :  { %7936 = vmatpush3.bf16.msra.mxu1 %v8657_v43  ;;  %7951 = vmatprep.mubr.msk.bf16.mxu1 %vm9244_vm0, %v9243_v1 }
0x1473   :  { %7937 = vmatprep.subr.bf16.mxu1 %v9243_v1 }
0x1476   :  { %7938 = vmatpush3.bf16.msra.mxu1 %v8658_v46 }
0x1477   :  { %7939 = vmatprep.subr.bf16.mxu1 %v9243_v1 }
0x147a   :  { %7940 = vmatpush3.bf16.msra.mxu1 %v8659_v49  ;;  %v2786_v49 = vrot.slane %v2777_v29, %v9412_v32 }
0x147b   :  { %7941 = vmatprep.subr.bf16.mxu1 %v9243_v1 }
0x147e   :  { %7942 = vmatpush3.bf16.msra.mxu1 %v8660_v31 }
0x147f   :  { %7943 = vmatprep.subr.bf16.mxu1 %v9243_v1 }
0x1482   :  { %7944 = vmatpush3.bf16.msra.mxu1 %v8661_v4 }
0x1483   :  { %7945 = vmatprep.subr.bf16.mxu1 %v9243_v1 }
0x1486   :  { %7946 = vmatpush3.bf16.msra.mxu1 %v8662_v51 }
0x1487   :  { %7947 = vmatprep.subr.bf16.mxu1 %v9243_v1 }
0x148a   :  { %7948 = vmatpush3.bf16.msra.mxu1 %v8663_v52 }
0x148b   :  { %7949 = vmatprep.subr.bf16.mxu1 %v9243_v1 }
0x148e   :  { %7950 = vmatpush3.bf16.msra.mxu1 %v8664_v53  ;;  %v2782_v53 = vrot.slane %v2777_v29, %v9416_v35 }
0x148f   :  { %7955 = vmatprep.subr.bf16.mxu1 %v9243_v1 }
0x1491   :  { %7952 = vmatmul.mubr.bf16.vlgmr.msra.gmra.mrb[64].mxu1 %v2169_v55 }
0x1492   :  { %7956 = vmatpush3.bf16.msra.mxu1 %v8665_v54  ;;  %7971 = vmatprep.mubr.msk.bf16.mxu1 %vm9244_vm0, %v9243_v1 }
0x1493   :  { %7957 = vmatprep.subr.bf16.mxu1 %v9243_v1 }
0x1496   :  { %7958 = vmatpush3.bf16.msra.mxu1 %v8666_v56 }
0x1497   :  { %7959 = vmatprep.subr.bf16.mxu1 %v9243_v1 }
0x149a   :  { %7960 = vmatpush3.bf16.msra.mxu1 %v8667_v58 }
0x149b   :  { %7961 = vmatprep.subr.bf16.mxu1 %v9243_v1 }
0x149e   :  { %7962 = vmatpush3.bf16.msra.mxu1 %v8668_v59 }
0x149f   :  { %7963 = vmatprep.subr.bf16.mxu1 %v9243_v1 }
0x14a2   :  { %7964 = vmatpush3.bf16.msra.mxu1 %v8669_v57 }
0x14a3   :  { %7965 = vmatprep.subr.bf16.mxu1 %v9243_v1 }
0x14a6   :  { %7966 = vmatpush3.bf16.msra.mxu1 %v8670_v60 }
0x14a7   :  { %7967 = vmatprep.subr.bf16.mxu1 %v9243_v1 }
0x14aa   :  { %7968 = vmatpush3.bf16.msra.mxu1 %v8671_v61 }
0x14ab   :  { %7969 = vmatprep.subr.bf16.mxu1 %v9243_v1 }
0x14ae   :  { %7970 = vmatpush3.bf16.msra.mxu1 %v8672_v2 }
0x14af   :  { %7981 = vmatprep.subr.bf16.mxu1 %v9243_v1 }
0x14b1   :  { %7972 = vmatmul.mubr.bf16.vlgmr.msra.gmra.mrb[68].mxu1 %v9590_v50 }
0x14b2   :  { %7983 = vmatprep.mubr.msk.bf16.mxu1 %vm9244_vm0, %v9243_v1 }
0x1544   :  { %v2543_v5 = vpop.f32.mrb[60].mxu1 }
0x1545   :  { %v2549_v7 = vpack.c.bf16 %v2543_v5, %v2543_v5  ;;  %v7913_v8 = vpop.f32.mrb[61].mxu1 }
0x1546   :  { %v2546_v10 = vpop.f32.mrb[62].mxu1 }
0x1547   :  { %v7914_v11 = vpop.f32.mrb[63].mxu1  ;;  %7932 = vmatmul.mubr.bf16.vlgmr.msra.gmra.mrb[36].mxu0 %v2549_v7  ;;  %v8705_v10 = vld [vmem:[#allocation7 + $0x140] sm:$0xff]  }
0x1548   :  { %2923 = vmatpush1.bf16.msra.mxu0 %v8681_v6  ;;  %2954 = vmatprep.mubr.bf16.mxu0 %v9242_v0  ;;  %v8706_v11 = vld [vmem:[#allocation7 + $0x148] sm:$0xff]  }
0x1549   :  { %2924 = vmatprep.subr.bf16.mxu0 %v8686_v9 }
0x154c   :  { %2925 = vmatpush1.bf16.msra.mxu0 %v8684_v12  ;;  %v8707_v12 = vld [vmem:[#allocation7 + $0x150] sm:$0xff]  }
0x154d   :  { %2926 = vmatprep.subr.bf16.mxu0 %v8689_v13  ;;  %v8708_v13 = vld [vmem:[#allocation7 + $0x158] sm:$0xff]  }
0x1550   :  { %2927 = vmatpush1.bf16.msra.mxu0 %v8687_v14  ;;  %v8709_v14 = vld [vmem:[#allocation7 + $0x160] sm:$0xff]  }
0x1551   :  { %2928 = vmatprep.subr.bf16.mxu0 %v8692_v15  ;;  %v8710_v15 = vld [vmem:[#allocation7 + $0x168] sm:$0xff]  }
0x1554   :  { %2929 = vmatpush1.bf16.msra.mxu0 %v8690_v62  ;;  %v8711_v62 = vld [vmem:[#allocation7 + $0x170] sm:$0xff]  }
0x1555   :  { %2930 = vmatprep.subr.bf16.mxu0 %v8695_v17 }
0x1558   :  { %2931 = vmatpush1.bf16.msra.mxu0 %v8693_v25 }
0x1559   :  { %2932 = vmatprep.subr.bf16.mxu0 %v8698_v18 }
0x155c   :  { %2933 = vmatpush1.bf16.msra.mxu0 %v8696_v19 }
0x155d   :  { %2934 = vmatprep.subr.bf16.mxu0 %v8701_v16  ;;  %v8712_v16 = vld [vmem:[#allocation7 + $0x178] sm:$0xff]  }
0x1560   :  { %2935 = vmatpush1.bf16.msra.mxu0 %v8699_v20 }
0x1561   :  { %2936 = vmatprep.subr.bf16.mxu0 %v8704_v21 }
0x1564   :  { %v2737_v23 = vpop.f32.mrb[64].mxu1  ;;  %2937 = vmatpush1.bf16.msra.mxu0 %v8702_v22 }
0x1565   :  { %v7953_v24 = vpop.f32.mrb[65].mxu1  ;;  %7975 = vmatprep.subr.bf16.mxu0 %v9243_v1 }
0x1566   :  { %v2740_v26 = vpop.f32.mrb[66].mxu1 }
0x1567   :  { %v7954_v28 = vpop.f32.mrb[67].mxu1  ;;  %2955 = vmatmul.mubr.bf16.vlgmr.msra.gmra.mrb[40].mxu0 %v9590_v50  ;;  %v8713_v26 = vld [vmem:[#allocation9 + $0x40] sm:$0xff]  }
0x1568   :  { %7977 = vmatprep.mubr.msk.bf16.mxu0 %vm9244_vm0, %v9243_v1  ;;  %v9703_v28 = vld [vmem:[#allocation12 + $0x8] sm:$0xff] }
0x1569   :  { %v3215_v29 = vrot.slane %v9703_v28, %v9416_v35 }
0x1584   :  { %v2997_v33 = vpop.f32.mrb[68].mxu1 }
0x1585   :  { %v2998_v34 = vadd.f32 %v2997_v33, %v2790_v30  ;;  %v7973_v36 = vpop.f32.mrb[69].mxu1 }
0x1586   :  { %v3000_v37 = vpop.f32.mrb[70].mxu1 }
0x1587   :  { %v3005_v38 = vpack.c.bf16 %v2998_v34, %v2998_v34  ;;  %v7974_v40 = vpop.f32.mrb[71].mxu1 }
0x1589   :  { %v3063_v41 = vsel %vm446_vm1, %v3005_v38, 0 }
0x158a   :  { %7982 = vmatpush3.bf16.msra.mxu1 %v3063_v41 }
0x158b   :  { %8007 = vmatprep.subr.bf16.mxu1 %v9243_v1 }
0x161a   :  { %v2649_v42 = vpop.f32.mrb[36].mxu0 }
0x161b   :  { %v9680_v43 = vadd.f32 %v2737_v23, %v2649_v42  ;;  %v7933_v50 = vpop.f32.mrb[37].mxu0  ;;  %v8714_v42 = vld [vmem:[#allocation9 + $0x48] sm:$0xff]  }
0x161c   :  { %v2652_v44 = vpop.f32.mrb[38].mxu0  ;;  %v8715_v50 = vld [vmem:[#allocation9 + $0x50] sm:$0xff]  }
0x161d   :  { %v7934_v46 = vpop.f32.mrb[39].mxu0  ;;  %v8716_v44 = vld [vmem:[#allocation9 + $0x58] sm:$0xff]  }
0x161e   :  { %v8718_v46 = vld [vmem:[#allocation9 + $0x68] sm:$0xff]  }
0x163a   :  { %v2956_v31 = vpop.f32.mrb[40].mxu0 }
0x163b   :  { %v2958_v4 = vpop.f32.mrb[41].mxu0  ;;  %v2957_v56 = vadd.f32 %v2956_v31, %v2782_v53  ;;  %v8721_v31 = vld [vmem:[#allocation10 + $0x40] sm:$0xff]  }
0x163c   :  { %v2959_v51 = vadd.f32 %v2958_v4, %v2786_v49  ;;  %v2960_v52 = vpop.f32.mrb[42].mxu0  ;;  %v8720_v49 = vld [vmem:[#allocation9 + $0x78] sm:$0xff]   ;;  %v8722_v4 = vld [vmem:[#allocation10 + $0x48] sm:$0xff]   ;;  %v8725_v53 = vld [vmem:[#allocation10 + $0x60] sm:$0xff]  }
0x163d   :  { %v2961_v54 = vpop.f32.mrb[43].mxu0  ;;  %v3003_v58 = vpack.c.bf16 %v2957_v56, %v2957_v56  ;;  %v8724_v52 = vld [vmem:[#allocation10 + $0x58] sm:$0xff]  }
0x163e   :  { %v3004_v55 = vpack.c.bf16 %v2959_v51, %v2959_v51  ;;  %v8723_v51 = vld [vmem:[#allocation10 + $0x50] sm:$0xff]   ;;  %v8726_v54 = vld [vmem:[#allocation10 + $0x68] sm:$0xff]  }
0x1640   :  { %7976 = vmatpush3.bf16.xpose.msra.mxu0 %v3004_v55 }
0x1641   :  { %7987 = vmatprep.subr.bf16.mxu0 %v9243_v1 }
0x1647   :  { %7978 = vmatmul.mubr.bf16.vlgmr.msra.gmra.mrb[44].mxu0 %v3003_v58 }
0x1648   :  { %8003 = vmatprep.mubr.msk.bf16.mxu0 %vm9244_vm0, %v9243_v1  ;;  %7988 = vmatpush3.bf16.msra.mxu0 %v8705_v10 }
0x1649   :  { %7989 = vmatprep.subr.bf16.mxu0 %v9243_v1 }
0x164c   :  { %7990 = vmatpush3.bf16.msra.mxu0 %v8706_v11  ;;  %v8727_v11 = vld [vmem:[#allocation10 + $0x70] sm:$0xff]  }
0x164d   :  { %7991 = vmatprep.subr.bf16.mxu0 %v9243_v1 }
0x1650   :  { %7992 = vmatpush3.bf16.msra.mxu0 %v8707_v12  ;;  %v8728_v12 = vld [vmem:[#allocation10 + $0x78] sm:$0xff]  }
0x1651   :  { %7993 = vmatprep.subr.bf16.mxu0 %v9243_v1 }
0x1654   :  { %7994 = vmatpush3.bf16.msra.mxu0 %v8708_v13  ;;  %v3262_v13 = vrot.slane %v9703_v28, %v9550_v47 }
0x1655   :  { %7995 = vmatprep.subr.bf16.mxu0 %v9243_v1 }
0x1658   :  { %7996 = vmatpush3.bf16.msra.mxu0 %v8709_v14 }
0x1659   :  { %7997 = vmatprep.subr.bf16.mxu0 %v9243_v1 }
0x165c   :  { %7998 = vmatpush3.bf16.msra.mxu0 %v8710_v15 }
0x165d   :  { %7999 = vmatprep.subr.bf16.mxu0 %v9243_v1 }
0x1660   :  { %8000 = vmatpush3.bf16.msra.mxu0 %v8711_v62 }
0x1661   :  { %8001 = vmatprep.subr.bf16.mxu0 %v9243_v1 }
0x1664   :  { %8002 = vmatpush3.bf16.msra.mxu0 %v8712_v16  ;;  %v8729_v16 = vld [vmem:[#allocation4 + $0x480] ss:$12 sps:$4 sm:$0xff]  }
0x1665   :  { %8027 = vmatprep.subr.bf16.mxu0 %v9243_v1 }
0x171a   :  { %v3040_v59 = vpop.f32.mrb[44].mxu0 }
0x171b   :  { %v3046_v57 = vmul.f32 0.25, %v3040_v59  ;;  %v7979_v60 = vpop.f32.mrb[45].mxu0 }
0x171c   :  { %v3043_v61 = vpop.f32.mrb[46].mxu0 }
0x171d   :  { %v7980_v2 = vpop.f32.mrb[47].mxu0  ;;  %v3047_v3 = vsel %vm430_vm2, %v3046_v57, -inf }
0x171e   :  { %3048 = vmax.xlane.f32.xlu0 %v3047_v3  ;;  %v3234_v3 = vrot.slane %v9703_v28, %v9412_v32 }
0x17ab   :  { %v3049_v5 = vpop.xlane.xlu0 %3048 }
0x17ac   :  { %v3050_v6 = vsub.f32 %v3046_v57, %v3049_v5 }
0x17ae   :  { %v3051_v7 = vmul.f32 1.442695, %v3050_v6 }
0x17b0   :  { %9025 = vpow2.f32 %v3051_v7  ;;  %v3239_v7 = vrot.slane %v9703_v28, %v9423_v45 }
0x17ba   :  { %v9026_v8 = vpop.eup %9025 }
0x17bb   :  { %v3053_v9 = vsel %vm430_vm2, %v9026_v8, 0.0 }
0x17bc   :  { %3054 = vadd.xlane.f32.xlu1 %v3053_v9 }
0x1849   :  { %v3055_v17 = vpop.xlane.xlu1 %3054 }
0x184a   :  { %9027 = vrcp.f32 %v3055_v17 }
0x1854   :  { %v9028_v25 = vpop.eup %9027 }
0x1855   :  { %v3057_v18 = vmul.f32 %v9028_v25, %v9026_v8 }
0x1857   :  { %v3058_v19 = vpack.c.bf16 %v3057_v18, %v3057_v18 }
0x1859   :  { %7984 = vmatmul.mubr.msk.bf16.vlgmr.msra.gmra.mrb[72].mxu1 %vm430_vm2, %v3058_v19 }
0x185a   :  { %8023 = vmatprep.mubr.msk.bf16.mxu1 %vm9244_vm0, %v9243_v1  ;;  %8008 = vmatpush3.bf16.msra.mxu1 %v8713_v26  ;;  %v3373_v26 = vrot.slane %v9703_v28, %v9559_v63 }
0x185b   :  { %8009 = vmatprep.subr.bf16.mxu1 %v9243_v1 }
0x185e   :  { %8010 = vmatpush3.bf16.msra.mxu1 %v8714_v42  ;;  %v8737_v42 = vld [vmem:[#allocation4 + $0x4b0] ss:$12 sps:$4 sm:$0xff]  }
0x185f   :  { %8011 = vmatprep.subr.bf16.mxu1 %v9243_v1 }
0x1862   :  { %8012 = vmatpush3.bf16.msra.mxu1 %v8715_v50  ;;  %v8743_v50 = vld [vmem:[#allocation4 + $0x4cc] ss:$12 sps:$4 sm:$0xff]  }
0x1863   :  { %8013 = vmatprep.subr.bf16.mxu1 %v9243_v1 }
0x1866   :  { %8014 = vmatpush3.bf16.msra.mxu1 %v8716_v44  ;;  %v8744_v44 = vld [vmem:[#allocation4 + $0x4d0] ss:$12 sps:$4 sm:$0xff]  }
0x1867   :  { %8015 = vmatprep.subr.bf16.mxu1 %v9243_v1 }
0x192c   :  { %v3099_v20 = vpop.f32.mrb[72].mxu1 }
0x192d   :  { %v3105_v21 = vpack.c.bf16 %v3099_v20, %v3099_v20  ;;  %v7985_v22 = vpop.f32.mrb[73].mxu1  ;;  %v8731_v20 = vld [vmem:[#allocation4 + $0x484] ss:$12 sps:$4 sm:$0xff]  }
0x192e   :  { %v3102_v23 = vpop.f32.mrb[74].mxu1  ;;  %v8735_v22 = vld [vmem:[#allocation4 + $0x49c] ss:$12 sps:$4 sm:$0xff]  }
0x192f   :  { %v7986_v24 = vpop.f32.mrb[75].mxu1  ;;  %8004 = vmatmul.mubr.bf16.vlgmr.msra.gmra.mrb[48].mxu0 %v3105_v21  ;;  %v8732_v21 = vld [vmem:[#allocation4 + $0x488] ss:$12 sps:$4 sm:$0xff]   ;;  %v8736_v23 = vld [vmem:[#allocation4 + $0x4a0] ss:$12 sps:$4 sm:$0xff]  }
0x1930   :  { %8043 = vmatprep.mubr.msk.bf16.mxu0 %vm9244_vm0, %v9243_v1  ;;  %8028 = vmatpush3.bf16.msra.mxu0 %v8721_v31  ;;  %v8733_v24 = vld [vmem:[#allocation4 + $0x498] ss:$12 sps:$4 sm:$0xff]   ;;  %v8751_v31 = vld [vmem:[#allocation4 + $0x4fc] ss:$12 sps:$4 sm:$0xff]  }
0x1931   :  { %8029 = vmatprep.subr.bf16.mxu0 %v9243_v1 }
0x1934   :  { %8030 = vmatpush3.bf16.msra.mxu0 %v8722_v4  ;;  %v8752_v4 = vld [vmem:[#allocation4 + $0x500] ss:$12 sps:$4 sm:$0xff]  }
0x1935   :  { %8031 = vmatprep.subr.bf16.mxu0 %v9243_v1 }
0x1938   :  { %8032 = vmatpush3.bf16.msra.mxu0 %v8723_v51  ;;  %v8749_v51 = vld [vmem:[#allocation4 + $0x4f8] ss:$12 sps:$4 sm:$0xff]  }
0x1939   :  { %8033 = vmatprep.subr.bf16.mxu0 %v9243_v1 }
0x193c   :  { %8034 = vmatpush3.bf16.msra.mxu0 %v8724_v52  ;;  %v8755_v52 = vld [vmem:[#allocation4 + $0x514] ss:$12 sps:$4 sm:$0xff]  }
0x193d   :  { %8035 = vmatprep.subr.bf16.mxu0 %v9243_v1 }
0x1940   :  { %8036 = vmatpush3.bf16.msra.mxu0 %v8725_v53  ;;  %v8756_v53 = vld [vmem:[#allocation4 + $0x518] ss:$12 sps:$4 sm:$0xff]  }
0x1941   :  { %8037 = vmatprep.subr.bf16.mxu0 %v9243_v1 }
0x1944   :  { %8038 = vmatpush3.bf16.msra.mxu0 %v8726_v54  ;;  %v8753_v54 = vld [vmem:[#allocation4 + $0x510] ss:$12 sps:$4 sm:$0xff]  }
0x1945   :  { %8039 = vmatprep.subr.bf16.mxu0 %v9243_v1 }
0x1948   :  { %8040 = vmatpush3.bf16.msra.mxu0 %v8727_v11 }
0x1949   :  { %8041 = vmatprep.subr.bf16.mxu0 %v9243_v1 }
0x194c   :  { %8042 = vmatpush3.bf16.msra.mxu0 %v8728_v12 }
0x194d   :  { %8047 = vmatprep.subr.bf16.mxu0 %v9243_v1 }
0x1a02   :  { %v3205_v30 = vpop.f32.mrb[48].mxu0 }
0x1a03   :  { %v3211_v33 = vadd.f32 %v3205_v30, %v9680_v43  ;;  %v8005_v34 = vpop.f32.mrb[49].mxu0  ;;  %v8717_v43 = vld [vmem:[#allocation9 + $0x60] sm:$0xff]  }
0x1a04   :  { %v3208_v36 = vpop.f32.mrb[50].mxu0  ;;  %8016 = vmatpush3.bf16.msra.mxu1 %v8717_v43  ;;  %v8741_v43 = vld [vmem:[#allocation4 + $0x4c8] ss:$12 sps:$4 sm:$0xff]  }
0x1a05   :  { %v3216_v37 = vadd.f32 %v3215_v29, %v3211_v33  ;;  %v8006_v38 = vpop.f32.mrb[51].mxu0  ;;  %8017 = vmatprep.subr.bf16.mxu1 %v9243_v1 }
0x1a07   :  { %v3217_v40 = vadd.f32 %v3216_v37, %v9586_v48  ;;  %v8719_v48 = vld [vmem:[#allocation9 + $0x70] sm:$0xff]  }
0x1a08   :  { %8018 = vmatpush3.bf16.msra.mxu1 %v8718_v46  ;;  %v8747_v46 = vld [vmem:[#allocation4 + $0x4e4] ss:$12 sps:$4 sm:$0xff]  }
0x1a09   :  { %3218 = vadd.xlane.f32.xlu0 %v3217_v40  ;;  %v3221_v41 = vmul.f32 %v3217_v40, %v3217_v40  ;;  %8019 = vmatprep.subr.bf16.mxu1 %v9243_v1 }
0x1a0b   :  { %3222 = vadd.xlane.f32.xlu1 %v3221_v41  ;;  %v8740_v41 = vld [vmem:[#allocation4 + $0x4b8] ss:$12 sps:$4 sm:$0xff]  }
0x1a0c   :  { %8020 = vmatpush3.bf16.msra.mxu1 %v8719_v48  ;;  %v8748_v48 = vld [vmem:[#allocation4 + $0x4e8] ss:$12 sps:$4 sm:$0xff]  }
0x1a0d   :  { %8021 = vmatprep.subr.bf16.mxu1 %v9243_v1 }
0x1a10   :  { %8022 = vmatpush3.bf16.msra.mxu1 %v8720_v49  ;;  %v8745_v49 = vld [vmem:[#allocation4 + $0x4e0] ss:$12 sps:$4 sm:$0xff]  }
0x1a11   :  { %3668 = vmatprep.subr.bf16.mxu1 %v8731_v20 }
0x1a96   :  { %v3219_v55 = vpop.xlane.xlu0 %3218 }
0x1a97   :  { %v3220_v56 = vmul.f32 0.020833334, %v3219_v55  ;;  %v8759_v55 = vld [vmem:[#allocation4 + $0x52c] ss:$12 sps:$4 sm:$0xff]  }
0x1a98   :  { %v3223_v58 = vpop.xlane.xlu1 %3222 }
0x1a99   :  { %v3225_v59 = vmul.f32 %v3220_v56, %v3220_v56  ;;  %v3224_v57 = vmul.f32 0.020833334, %v3223_v58  ;;  %v3227_v2 = vsub.f32 %v3217_v40, %v3220_v56  ;;  %v8739_v40 = vld [vmem:[#allocation4 + $0x4b4] ss:$12 sps:$4 sm:$0xff]   ;;  %v8760_v56 = vld [vmem:[#allocation4 + $0x530] ss:$12 sps:$4 sm:$0xff]  }
0x1a9a   :  { %v8757_v58 = vld [vmem:[#allocation4 + $0x528] ss:$12 sps:$4 sm:$0xff]  }
0x1a9b   :  { %v3226_v60 = vsub.f32 %v3224_v57, %v3225_v59 }
0x1a9d   :  { %v3228_v61 = vadd.f32 1e-05, %v3226_v60 }
0x1a9f   :  { %9029 = vrsqrt.f32 %v3228_v61 }
0x1aa9   :  { %v9030_v5 = vpop.eup %9029 }
0x1aaa   :  { %v3230_v6 = vmul.f32 %v9030_v5, %v3227_v2 }
0x1aac   :  { %v3235_v8 = vmul.f32 %v3234_v3, %v3230_v6 }
0x1aae   :  { %v3240_v9 = vadd.f32 %v3239_v7, %v3235_v8  ;;  %v3479_v7 = vrot.slane %v9703_v28, %v9576_v27 }
0x1ab0   :  { %v3241_v10 = vpack.c.bf16 %v3240_v9, %v3240_v9 }
0x1ab2   :  { %8024 = vmatmul.mubr.bf16.vlgmr.msra.gmra.mrb[76].mxu1 %v3241_v10 }
0x1ab3   :  { %3700 = vmatprep.mubr.bf16.mxu1 %v9242_v0  ;;  %3669 = vmatpush1.bf16.msra.mxu1 %v8729_v16  ;;  %v3523_v16 = vld [vmem:[#allocation6 + $0x12] sm:$0x7] }
0x1ab4   :  { %3670 = vmatprep.subr.bf16.mxu1 %v8735_v22  ;;  %v3532_v20 = vrot.slane %v3523_v16, %v9412_v32 }
0x1ab7   :  { %3671 = vmatpush1.bf16.msra.mxu1 %v8733_v24 }
0x1ab8   :  { %3672 = vmatprep.subr.bf16.mxu1 %v8739_v40 }
0x1abb   :  { %3673 = vmatpush1.bf16.msra.mxu1 %v8737_v42 }
0x1abc   :  { %3674 = vmatprep.subr.bf16.mxu1 %v8743_v50 }
0x1abf   :  { %3675 = vmatpush1.bf16.msra.mxu1 %v8741_v43 }
0x1ac0   :  { %3676 = vmatprep.subr.bf16.mxu1 %v8747_v46 }
0x1ac3   :  { %3677 = vmatpush1.bf16.msra.mxu1 %v8745_v49 }
0x1ac4   :  { %3678 = vmatprep.subr.bf16.mxu1 %v8751_v31 }
0x1ac7   :  { %3679 = vmatpush1.bf16.msra.mxu1 %v8749_v51 }
0x1ac8   :  { %3680 = vmatprep.subr.bf16.mxu1 %v8755_v52 }
0x1acb   :  { %3681 = vmatpush1.bf16.msra.mxu1 %v8753_v54 }
0x1acc   :  { %3682 = vmatprep.subr.bf16.mxu1 %v8759_v55 }
0x1acf   :  { %3683 = vmatpush1.bf16.msra.mxu1 %v8757_v58 }
0x1ad0   :  { %8067 = vmatprep.subr.bf16.mxu1 %v9243_v1 }
0x1b85   :  { %v3345_v14 = vpop.f32.mrb[76].mxu1 }
0x1b86   :  { %v3346_v15 = vadd.f32 %v3345_v14, %v3262_v13  ;;  %v8025_v62 = vpop.f32.mrb[77].mxu1  ;;  %v8761_v13 = vld [vmem:[#allocation4 + $0x548] ss:$12 sps:$4 sm:$0xff]  }
0x1b87   :  { %v3348_v17 = vpop.f32.mrb[78].mxu1  ;;  %v8764_v62 = vld [vmem:[#allocation4 + $0x590] ss:$12 sps:$4 sm:$0xff]  }
0x1b88   :  { %v3351_v25 = vmax.f32 %v3346_v15, 0.0  ;;  %v8026_v18 = vpop.f32.mrb[79].mxu1  ;;  %v8762_v15 = vld [vmem:[#allocation4 + $0x560] ss:$12 sps:$4 sm:$0xff]   ;;  %v8765_v17 = vld [vmem:[#allocation4 + $0x5a8] ss:$12 sps:$4 sm:$0xff]  }
0x1b89   :  { %v8767_v18 = vld [vmem:[#allocation4 + $0x5d8] ss:$12 sps:$4 sm:$0xff]  }
0x1b8a   :  { %v3352_v19 = vpack.c.bf16 %v3351_v25, %v3351_v25  ;;  %v8766_v25 = vld [vmem:[#allocation4 + $0x5c0] ss:$12 sps:$4 sm:$0xff]  }
0x1b8c   :  { %8044 = vmatmul.mubr.bf16.vlgmr.msra.gmra.mrb[52].mxu0 %v3352_v19  ;;  %v8768_v19 = vld [vmem:[#allocation4 + $0x5f0] ss:$12 sps:$4 sm:$0xff]  }
0x1b8d   :  { %8063 = vmatprep.mubr.msk.bf16.mxu0 %vm9244_vm0, %v9243_v1  ;;  %8048 = vmatpush3.bf16.msra.mxu0 %v8732_v21 }
0x1b8e   :  { %8049 = vmatprep.subr.bf16.mxu0 %v9243_v1 }
0x1b91   :  { %8050 = vmatpush3.bf16.msra.mxu0 %v8736_v23  ;;  %v3536_v23 = vrot.slane %v3523_v16, %v9423_v45 }
0x1b92   :  { %8051 = vmatprep.subr.bf16.mxu0 %v9243_v1 }
0x1b95   :  { %8052 = vmatpush3.bf16.msra.mxu0 %v8740_v41 }
0x1b96   :  { %8053 = vmatprep.subr.bf16.mxu0 %v9243_v1 }
0x1b99   :  { %8054 = vmatpush3.bf16.msra.mxu0 %v8744_v44 }
0x1b9a   :  { %8055 = vmatprep.subr.bf16.mxu0 %v9243_v1 }
0x1b9d   :  { %8056 = vmatpush3.bf16.msra.mxu0 %v8748_v48 }
0x1b9e   :  { %8057 = vmatprep.subr.bf16.mxu0 %v9243_v1 }
0x1ba1   :  { %8058 = vmatpush3.bf16.msra.mxu0 %v8752_v4 }
0x1ba2   :  { %8059 = vmatprep.subr.bf16.mxu0 %v9243_v1 }
0x1ba5   :  { %8060 = vmatpush3.bf16.msra.mxu0 %v8756_v53 }
0x1ba6   :  { %8061 = vmatprep.subr.bf16.mxu0 %v9243_v1 }
0x1ba9   :  { %8062 = vmatpush3.bf16.msra.mxu0 %v8760_v56 }
0x1baa   :  { %8079 = vmatprep.subr.bf16.mxu0 %v9243_v1 }
0x1c5f   :  { %v3456_v29 = vpop.f32.mrb[52].mxu0 }
0x1c60   :  { %v3457_v30 = vadd.f32 %v3456_v29, %v3373_v26  ;;  %v8045_v33 = vpop.f32.mrb[53].mxu0 }
0x1c61   :  { %v3459_v34 = vpop.f32.mrb[54].mxu0 }
0x1c62   :  { %v3462_v36 = vadd.f32 %v3457_v30, %v3240_v9  ;;  %v8046_v37 = vpop.f32.mrb[55].mxu0  ;;  %v3484_v9 = vrot.slane %v9703_v28, %v9579_v39  ;;  %v8763_v28 = vld [vmem:[#allocation4 + $0x578] ss:$12 sps:$4 sm:$0xff]   ;;  %v3528_v34 = vrot.slane %v3523_v16, %v9416_v35  ;;  %v8790_v16 = vld [vmem:[#allocation4 + $0x5e8] ss:$12 sps:$4 sm:$0xff]  }
0x1c64   :  { %3463 = vadd.xlane.f32.xlu0 %v3462_v36  ;;  %v3466_v38 = vmul.f32 %v3462_v36, %v3462_v36 }
0x1c66   :  { %3467 = vadd.xlane.f32.xlu1 %v3466_v38 }
0x1cf1   :  { %v3464_v59 = vpop.xlane.xlu0 %3463 }
0x1cf2   :  { %v3465_v57 = vmul.f32 0.020833334, %v3464_v59 }
0x1cf3   :  { %v3468_v60 = vpop.xlane.xlu1 %3467 }
0x1cf4   :  { %v3470_v61 = vmul.f32 %v3465_v57, %v3465_v57  ;;  %v3469_v2 = vmul.f32 0.020833334, %v3468_v60  ;;  %v3472_v6 = vsub.f32 %v3462_v36, %v3465_v57  ;;  %v8771_v60 = vld [vmem:[#allocation4 + $0x544] ss:$12 sps:$4 sm:$0xff]  }
0x1cf6   :  { %v3471_v3 = vsub.f32 %v3469_v2, %v3470_v61 }
0x1cf8   :  { %v3473_v5 = vadd.f32 1e-05, %v3471_v3 }
0x1cfa   :  { %9031 = vrsqrt.f32 %v3473_v5  ;;  %v8769_v5 = vld [vmem:[#allocation4 + $0x540] ss:$12 sps:$4 sm:$0xff]  }
0x1d04   :  { %v9032_v8 = vpop.eup %9031 }
0x1d05   :  { %v3475_v10 = vmul.f32 %v9032_v8, %v3472_v6  ;;  %v8772_v8 = vld [vmem:[#allocation4 + $0x558] ss:$12 sps:$4 sm:$0xff]  }
0x1d07   :  { %v3480_v11 = vmul.f32 %v3479_v7, %v3475_v10  ;;  %v8774_v7 = vld [vmem:[#allocation4 + $0x55c] ss:$12 sps:$4 sm:$0xff]  }
0x1d08   :  { %v8775_v10 = vld [vmem:[#allocation4 + $0x570] ss:$12 sps:$4 sm:$0xff]  }
0x1d09   :  { %v9747_v12 = vadd.f32 %v3484_v9, %v3480_v11  ;;  %v8777_v9 = vld [vmem:[#allocation4 + $0x574] ss:$12 sps:$4 sm:$0xff]   ;;  %v8780_v11 = vld [vmem:[#allocation4 + $0x58c] ss:$12 sps:$4 sm:$0xff]  }
0x1d0b   :  { %v9751_v14 = vpack.c.bf16 %v9747_v12, %v9747_v12 }
0x1d0d   :  { %3701 = vmatmul.mubr.bf16.vlgmr.msra.gmra.mrb[80].mxu1 %v9751_v14  ;;  %8064 = vmatmul.mubr.bf16.vlgmr.msra.gmra.mrb[56].mxu0 %v9751_v14 }
0x1d0e   :  { %8080 = vmatpush3.bf16.msra.mxu0 %v8761_v13  ;;  %8095 = vmatprep.mubr.msk.bf16.mxu0 %vm9244_vm0, %v9243_v1  ;;  %v8778_v13 = vld [vmem:[#allocation4 + $0x588] ss:$12 sps:$4 sm:$0xff]  }
0x1d0f   :  { %8081 = vmatprep.subr.bf16.mxu0 %v9243_v1  ;;  %8069 = vmatprep.mubr.msk.bf16.mxu1 %vm9244_vm0, %v9243_v1 }
0x1d12   :  { %8082 = vmatpush3.bf16.msra.mxu0 %v8762_v15  ;;  %v8783_v15 = vld [vmem:[#allocation4 + $0x5a4] ss:$12 sps:$4 sm:$0xff]  }
0x1d13   :  { %8083 = vmatprep.subr.bf16.mxu0 %v9243_v1 }
0x1d16   :  { %8084 = vmatpush3.bf16.msra.mxu0 %v8763_v28  ;;  %v8781_v28 = vld [vmem:[#allocation4 + $0x5a0] ss:$12 sps:$4 sm:$0xff]  }
0x1d17   :  { %8085 = vmatprep.subr.bf16.mxu0 %v9243_v1 }
0x1d1a   :  { %8086 = vmatpush3.bf16.msra.mxu0 %v8764_v62  ;;  %v8786_v62 = vld [vmem:[#allocation4 + $0x5bc] ss:$12 sps:$4 sm:$0xff]  }
0x1d1b   :  { %8087 = vmatprep.subr.bf16.mxu0 %v9243_v1 }
0x1d1e   :  { %8088 = vmatpush3.bf16.msra.mxu0 %v8765_v17  ;;  %v8784_v17 = vld [vmem:[#allocation4 + $0x5b8] ss:$12 sps:$4 sm:$0xff]  }
0x1d1f   :  { %8089 = vmatprep.subr.bf16.mxu0 %v9243_v1 }
0x1d22   :  { %8090 = vmatpush3.bf16.msra.mxu0 %v8766_v25  ;;  %v8789_v25 = vld [vmem:[#allocation4 + $0x5d4] ss:$12 sps:$4 sm:$0xff]  }
0x1d23   :  { %8091 = vmatprep.subr.bf16.mxu0 %v9243_v1 }
0x1d26   :  { %8092 = vmatpush3.bf16.msra.mxu0 %v8767_v18  ;;  %v8787_v18 = vld [vmem:[#allocation4 + $0x5d0] ss:$12 sps:$4 sm:$0xff]  }
0x1d27   :  { %8093 = vmatprep.subr.bf16.mxu0 %v9243_v1 }
0x1d2a   :  { %8094 = vmatpush3.bf16.msra.mxu0 %v8768_v19  ;;  %v8792_v19 = vld [vmem:[#allocation4 + $0x5ec] ss:$12 sps:$4 sm:$0xff]  }
0x1d2b   :  { %8111 = vmatprep.subr.bf16.mxu0 %v9243_v1 }
0x1d2d   :  { %8096 = vmatmul.mubr.bf16.vlgmr.msra.gmra.mrb[60].mxu0 %v9751_v14 }
0x1d2e   :  { %8127 = vmatprep.mubr.msk.bf16.mxu0 %vm9244_vm0, %v9243_v1 }
0x1de0   :  { %v3702_v21 = vpop.f32.mrb[80].mxu1  ;;  %v3743_v22 = vpop.f32.mrb[56].mxu0 }
0x1de1   :  { %v3704_v24 = vpop.f32.mrb[81].mxu1  ;;  %v8065_v26 = vpop.f32.mrb[57].mxu0  ;;  %v3744_v40 = vadd.f32 %v3743_v22, %v3536_v23  ;;  %v3703_v41 = vadd.f32 %v3702_v21, %v3528_v34 }
0x1de2   :  { %v3705_v29 = vadd.f32 %v3704_v24, %v3532_v20  ;;  %v3706_v30 = vpop.f32.mrb[82].mxu1  ;;  %v3746_v33 = vpop.f32.mrb[58].mxu0  ;;  %v3903_v24 = vld [vmem:[#allocation6 + $0x15] sm:$0x7] }
0x1de3   :  { %v3707_v36 = vpop.f32.mrb[83].mxu1  ;;  %v8066_v37 = vpop.f32.mrb[59].mxu0  ;;  %v3751_v42 = vpack.c.bf16 %v3744_v40, %v3744_v40  ;;  %v3749_v50 = vpack.c.bf16 %v3703_v41, %v3703_v41  ;;  %v3912_v26 = vrot.slane %v3903_v24, %v9412_v32  ;;  %v3916_v30 = vrot.slane %v3903_v24, %v9423_v45 }
0x1de4   :  { %v3750_v38 = vpack.c.bf16 %v3705_v29, %v3705_v29  ;;  %v3908_v37 = vrot.slane %v3903_v24, %v9416_v35  ;;  %v8807_v24 = vld [vmem:[#allocation4 + $0x698] ss:$12 sps:$4 sm:$0xff]  }
0x1de5   :  { %v3809_v44 = vsel %vm446_vm1, %v3751_v42, 0 }
0x1de6   :  { %8068 = vmatpush3.bf16.xpose.msra.mxu1 %v3750_v38 }
0x1de7   :  { %8073 = vmatprep.subr.bf16.mxu1 %v9243_v1 }
0x1ded   :  { %8070 = vmatmul.mubr.bf16.vlgmr.msra.gmra.mrb[84].mxu1 %v3749_v50 }
0x1dee   :  { %8074 = vmatpush3.bf16.msra.mxu1 %v3809_v44  ;;  %8075 = vmatprep.mubr.msk.bf16.mxu1 %vm9244_vm0, %v9243_v1 }
0x1def   :  { %4048 = vmatprep.subr.bf16.mxu1 %v8771_v60  ;;  %v8812_v60 = vld [vmem:[#allocation7 + $0x1d8] sm:$0xff]  }
0x1e00   :  { %v9777_v43 = vpop.f32.mrb[60].mxu0 }
0x1e01   :  { %v8097_v46 = vpop.f32.mrb[61].mxu0  ;;  %v4124_v41 = vadd.f32 %v9777_v43, %v3916_v30 }
0x1e02   :  { %v4126_v48 = vpop.f32.mrb[62].mxu0 }
0x1e03   :  { %v8098_v49 = vpop.f32.mrb[63].mxu0  ;;  %v4131_v50 = vpack.c.bf16 %v4124_v41, %v4124_v41  ;;  %v8820_v41 = vld [vmem:[#allocation4 + $0x618] ss:$12 sps:$4 sm:$0xff]  }
0x1e05   :  { %v4189_v46 = vsel %vm446_vm1, %v4131_v50, 0  ;;  %v8823_v50 = vld [vmem:[#allocation4 + $0x630] ss:$12 sps:$4 sm:$0xff]  }
0x1ec0   :  { %v3786_v31 = vpop.f32.mrb[84].mxu1 }
0x1ec1   :  { %v3792_v4 = vmul.f32 0.25, %v3786_v31  ;;  %v8071_v51 = vpop.f32.mrb[85].mxu1 }
0x1ec2   :  { %v3789_v52 = vpop.f32.mrb[86].mxu1 }
0x1ec3   :  { %v8072_v53 = vpop.f32.mrb[87].mxu1  ;;  %v3793_v54 = vsel %vm430_vm2, %v3792_v4, -inf }
0x1ec4   :  { %3794 = vmax.xlane.f32.xlu0 %v3793_v54 }
0x1f51   :  { %v3795_v55 = vpop.xlane.xlu0 %3794 }
0x1f52   :  { %v3796_v56 = vsub.f32 %v3792_v4, %v3795_v55 }
0x1f54   :  { %v3797_v58 = vmul.f32 1.442695, %v3796_v56 }
0x1f56   :  { %9033 = vpow2.f32 %v3797_v58  ;;  %v8809_v58 = vld [vmem:[#allocation7 + $0x1c0] sm:$0xff]  }
0x1f57   :  { %8112 = vmatpush3.bf16.msra.mxu0 %v8809_v58 }
0x1f58   :  { %8113 = vmatprep.subr.bf16.mxu0 %v9243_v1 }
0x1f60   :  { %v9034_v59 = vpop.eup %9033 }
0x1f61   :  { %v3799_v57 = vsel %vm430_vm2, %v9034_v59, 0.0 }
0x1f62   :  { %3800 = vadd.xlane.f32.xlu1 %v3799_v57  ;;  %v8811_v57 = vld [vmem:[#allocation7 + $0x1d0] sm:$0xff]  }
0x1fef   :  { %v3801_v61 = vpop.xlane.xlu1 %3800 }
0x1ff0   :  { %9035 = vrcp.f32 %v3801_v61  ;;  %v8813_v61 = vld [vmem:[#allocation7 + $0x1e0] sm:$0xff]  }
0x1ffa   :  { %v9036_v2 = vpop.eup %9035 }
0x1ffb   :  { %v3803_v3 = vmul.f32 %v9036_v2, %v9034_v59  ;;  %v8810_v59 = vld [vmem:[#allocation7 + $0x1c8] sm:$0xff]  }
0x1ffc   :  { %8114 = vmatpush3.bf16.msra.mxu0 %v8810_v59  ;;  %v8814_v2 = vld [vmem:[#allocation7 + $0x1e8] sm:$0xff]   ;;  %v4459_v59 = vld [vmem:[#allocation6 + $0x18] sm:$0x7] }
0x1ffd   :  { %v3804_v6 = vpack.c.bf16 %v3803_v3, %v3803_v3  ;;  %8115 = vmatprep.subr.bf16.mxu0 %v9243_v1  ;;  %v8815_v3 = vld [vmem:[#allocation7 + $0x1f0] sm:$0xff]  }
0x1fff   :  { %8076 = vmatmul.mubr.msk.bf16.vlgmr.msra.gmra.mrb[88].mxu1 %vm430_vm2, %v3804_v6 }
0x2000   :  { %4049 = vmatpush1.bf16.msra.mxu1 %v8769_v5  ;;  %4080 = vmatprep.mubr.bf16.mxu1 %v9242_v0  ;;  %v8816_v5 = vld [vmem:[#allocation7 + $0x1f8] sm:$0xff]  }
0x2001   :  { %4050 = vmatprep.subr.bf16.mxu1 %v8774_v7  ;;  %8116 = vmatpush3.bf16.msra.mxu0 %v8811_v57  ;;  %v4472_v57 = vrot.slane %v4459_v59, %v9423_v45 }
0x2002   :  { %8117 = vmatprep.subr.bf16.mxu0 %v9243_v1 }
0x2004   :  { %4051 = vmatpush1.bf16.msra.mxu1 %v8772_v8 }
0x2005   :  { %4052 = vmatprep.subr.bf16.mxu1 %v8777_v9  ;;  %8118 = vmatpush3.bf16.msra.mxu0 %v8812_v60  ;;  %v8793_v9 = vld [vmem:[#allocation7 + $0x180] sm:$0xff]  }
0x2006   :  { %8119 = vmatprep.subr.bf16.mxu0 %v9243_v1 }
0x2008   :  { %4053 = vmatpush1.bf16.msra.mxu1 %v8775_v10 }
0x2009   :  { %4054 = vmatprep.subr.bf16.mxu1 %v8780_v11  ;;  %8120 = vmatpush3.bf16.msra.mxu0 %v8813_v61  ;;  %v8794_v11 = vld [vmem:[#allocation7 + $0x188] sm:$0xff]  }
0x200a   :  { %8121 = vmatprep.subr.bf16.mxu0 %v9243_v1 }
0x200c   :  { %4055 = vmatpush1.bf16.msra.mxu1 %v8778_v13  ;;  %v8795_v13 = vld [vmem:[#allocation7 + $0x190] sm:$0xff]  }
0x200d   :  { %4056 = vmatprep.subr.bf16.mxu1 %v8783_v15  ;;  %8122 = vmatpush3.bf16.msra.mxu0 %v8814_v2  ;;  %v8796_v15 = vld [vmem:[#allocation7 + $0x198] sm:$0xff]  }
0x200e   :  { %8123 = vmatprep.subr.bf16.mxu0 %v9243_v1 }
0x2010   :  { %4057 = vmatpush1.bf16.msra.mxu1 %v8781_v28  ;;  %v8797_v28 = vld [vmem:[#allocation7 + $0x1a0] sm:$0xff]  }
0x2011   :  { %4058 = vmatprep.subr.bf16.mxu1 %v8786_v62  ;;  %8124 = vmatpush3.bf16.msra.mxu0 %v8815_v3  ;;  %v8798_v62 = vld [vmem:[#allocation7 + $0x1a8] sm:$0xff]  }
0x2012   :  { %8125 = vmatprep.subr.bf16.mxu0 %v9243_v1 }
0x2014   :  { %4059 = vmatpush1.bf16.msra.mxu1 %v8784_v17  ;;  %v8799_v17 = vld [vmem:[#allocation7 + $0x1b0] sm:$0xff]  }
0x2015   :  { %4060 = vmatprep.subr.bf16.mxu1 %v8789_v25  ;;  %8126 = vmatpush3.bf16.msra.mxu0 %v8816_v5  ;;  %v8800_v25 = vld [vmem:[#allocation7 + $0x1b8] sm:$0xff]  }
0x2018   :  { %4061 = vmatpush1.bf16.msra.mxu1 %v8787_v18  ;;  %v8801_v18 = vld [vmem:[#allocation4 + $0x608] ss:$12 sps:$4 sm:$0xff]  }
0x2019   :  { %4062 = vmatprep.subr.bf16.mxu1 %v8792_v19 }
0x201c   :  { %4063 = vmatpush1.bf16.msra.mxu1 %v8790_v16  ;;  %v8802_v16 = vld [vmem:[#allocation4 + $0x620] ss:$12 sps:$4 sm:$0xff]  }
0x201d   :  { %8099 = vmatprep.subr.bf16.mxu1 %v9243_v1 }
0x201f   :  { %4081 = vmatmul.mubr.bf16.vlgmr.msra.gmra.mrb[92].mxu1 %v9751_v14 }
0x2020   :  { %8101 = vmatprep.mubr.msk.bf16.mxu1 %vm9244_vm0, %v9243_v1 }
0x20d2   :  { %v9787_v20 = vpop.f32.mrb[88].mxu1 }
0x20d3   :  { %v8077_v21 = vpop.f32.mrb[89].mxu1  ;;  %v3851_v19 = vpack.c.bf16 %v9787_v20, %v9787_v20  ;;  %v8805_v20 = vld [vmem:[#allocation4 + $0x668] ss:$12 sps:$4 sm:$0xff]  }
0x20d4   :  { %v3848_v22 = vpop.f32.mrb[90].mxu1  ;;  %v8803_v21 = vld [vmem:[#allocation4 + $0x638] ss:$12 sps:$4 sm:$0xff]  }
0x20d5   :  { %v8078_v23 = vpop.f32.mrb[91].mxu1  ;;  %v8804_v22 = vld [vmem:[#allocation4 + $0x650] ss:$12 sps:$4 sm:$0xff]  }
0x20d6   :  { %v8806_v23 = vld [vmem:[#allocation4 + $0x680] ss:$12 sps:$4 sm:$0xff]  }
0x20f2   :  { %v4082_v29 = vpop.f32.mrb[92].mxu1 }
0x20f3   :  { %v4084_v33 = vpop.f32.mrb[93].mxu1  ;;  %v4083_v42 = vadd.f32 %v4082_v29, %v3908_v37  ;;  %v8819_v29 = vld [vmem:[#allocation4 + $0x604] ss:$12 sps:$4 sm:$0xff]   ;;  %v8822_v37 = vld [vmem:[#allocation4 + $0x61c] ss:$12 sps:$4 sm:$0xff]  }
0x20f4   :  { %v4085_v34 = vadd.f32 %v4084_v33, %v3912_v26  ;;  %v4086_v36 = vpop.f32.mrb[94].mxu1  ;;  %v8808_v26 = vld [vmem:[#allocation4 + $0x6b0] ss:$12 sps:$4 sm:$0xff]   ;;  %4604 = vmatprep.subr.bf16.mxu0 %v8819_v29  ;;  %v8817_v33 = vld [vmem:[#allocation4 + $0x600] ss:$12 sps:$4 sm:$0xff]  }
0x20f5   :  { %v4087_v38 = vpop.f32.mrb[95].mxu1  ;;  %v4129_v44 = vpack.c.bf16 %v4083_v42, %v4083_v42  ;;  %v8825_v42 = vld [vmem:[#allocation4 + $0x634] ss:$12 sps:$4 sm:$0xff]  }
0x20f6   :  { %v4130_v40 = vpack.c.bf16 %v4085_v34, %v4085_v34 }
0x20f8   :  { %8100 = vmatpush3.bf16.xpose.msra.mxu1 %v4130_v40 }
0x20f9   :  { %8105 = vmatprep.subr.bf16.mxu1 %v9243_v1 }
0x20ff   :  { %8102 = vmatmul.mubr.bf16.vlgmr.msra.gmra.mrb[96].mxu1 %v4129_v44  ;;  %v8828_v44 = vld [vmem:[#allocation4 + $0x64c] ss:$12 sps:$4 sm:$0xff]  }
0x2100   :  { %8106 = vmatpush3.bf16.msra.mxu1 %v4189_v46  ;;  %8107 = vmatprep.mubr.msk.bf16.mxu1 %vm9244_vm0, %v9243_v1  ;;  %v8826_v46 = vld [vmem:[#allocation4 + $0x648] ss:$12 sps:$4 sm:$0xff]  }
0x2101   :  { %8131 = vmatprep.subr.bf16.mxu1 %v9243_v1 }
0x21d2   :  { %v4166_v48 = vpop.f32.mrb[96].mxu1 }
0x21d3   :  { %v4172_v49 = vmul.f32 0.25, %v4166_v48  ;;  %v8103_v31 = vpop.f32.mrb[97].mxu1  ;;  %v8831_v48 = vld [vmem:[#allocation4 + $0x664] ss:$12 sps:$4 sm:$0xff]  }
0x21d4   :  { %v4169_v4 = vpop.f32.mrb[98].mxu1  ;;  %v8834_v31 = vld [vmem:[#allocation4 + $0x67c] ss:$12 sps:$4 sm:$0xff]  }
0x21d5   :  { %v8104_v43 = vpop.f32.mrb[99].mxu1  ;;  %v4173_v51 = vsel %vm430_vm2, %v4172_v49, -inf  ;;  %v8832_v4 = vld [vmem:[#allocation4 + $0x678] ss:$12 sps:$4 sm:$0xff]  }
0x21d6   :  { %4174 = vmax.xlane.f32.xlu0 %v4173_v51  ;;  %v8837_v43 = vld [vmem:[#allocation4 + $0x694] ss:$12 sps:$4 sm:$0xff]   ;;  %v8835_v51 = vld [vmem:[#allocation4 + $0x690] ss:$12 sps:$4 sm:$0xff]  }
0x2263   :  { %v4175_v52 = vpop.xlane.xlu0 %4174 }
0x2264   :  { %v4176_v53 = vsub.f32 %v4172_v49, %v4175_v52  ;;  %v8829_v49 = vld [vmem:[#allocation4 + $0x660] ss:$12 sps:$4 sm:$0xff]  }
0x2265   :  { %v8840_v52 = vld [vmem:[#allocation4 + $0x6ac] ss:$12 sps:$4 sm:$0xff]  }
0x2266   :  { %v4177_v54 = vmul.f32 1.442695, %v4176_v53  ;;  %v8838_v53 = vld [vmem:[#allocation4 + $0x6a8] ss:$12 sps:$4 sm:$0xff]  }
0x2268   :  { %9037 = vpow2.f32 %v4177_v54 }
0x2272   :  { %v9038_v55 = vpop.eup %9037 }
0x2273   :  { %v4179_v56 = vsel %vm430_vm2, %v9038_v55, 0.0 }
0x2274   :  { %4180 = vadd.xlane.f32.xlu1 %v4179_v56 }
0x2301   :  { %v4181_v6 = vpop.xlane.xlu1 %4180 }
0x2302   :  { %9039 = vrcp.f32 %v4181_v6 }
0x230c   :  { %v9040_v7 = vpop.eup %9039 }
0x230d   :  { %v4183_v8 = vmul.f32 %v9040_v7, %v9038_v55 }
0x230f   :  { %v4184_v10 = vpack.c.bf16 %v4183_v8, %v4183_v8 }
0x2311   :  { %8108 = vmatmul.mubr.msk.bf16.vlgmr.msra.gmra.mrb[100].mxu1 %vm430_vm2, %v4184_v10 }
0x2312   :  { %8132 = vmatpush3.bf16.msra.mxu1 %v8793_v9  ;;  %8147 = vmatprep.mubr.msk.bf16.mxu1 %vm9244_vm0, %v9243_v1 }
0x2313   :  { %8133 = vmatprep.subr.bf16.mxu1 %v9243_v1 }
0x2316   :  { %8134 = vmatpush3.bf16.msra.mxu1 %v8794_v11 }
0x2317   :  { %8135 = vmatprep.subr.bf16.mxu1 %v9243_v1 }
0x231a   :  { %8136 = vmatpush3.bf16.msra.mxu1 %v8795_v13  ;;  %v4468_v13 = vrot.slane %v4459_v59, %v9412_v32 }
0x231b   :  { %8137 = vmatprep.subr.bf16.mxu1 %v9243_v1 }
0x231e   :  { %8138 = vmatpush3.bf16.msra.mxu1 %v8796_v15 }
0x231f   :  { %8139 = vmatprep.subr.bf16.mxu1 %v9243_v1 }
0x2322   :  { %8140 = vmatpush3.bf16.msra.mxu1 %v8797_v28 }
0x2323   :  { %8141 = vmatprep.subr.bf16.mxu1 %v9243_v1 }
0x2326   :  { %8142 = vmatpush3.bf16.msra.mxu1 %v8798_v62 }
0x2327   :  { %8143 = vmatprep.subr.bf16.mxu1 %v9243_v1 }
0x232a   :  { %8144 = vmatpush3.bf16.msra.mxu1 %v8799_v17 }
0x232b   :  { %8145 = vmatprep.subr.bf16.mxu1 %v9243_v1 }
0x232e   :  { %8146 = vmatpush3.bf16.msra.mxu1 %v8800_v25  ;;  %v4464_v25 = vrot.slane %v4459_v59, %v9416_v35 }
0x232f   :  { %8151 = vmatprep.subr.bf16.mxu1 %v9243_v1 }
0x2331   :  { %8148 = vmatmul.mubr.bf16.vlgmr.msra.gmra.mrb[104].mxu1 %v3851_v19 }
0x2332   :  { %8152 = vmatpush3.bf16.msra.mxu1 %v8801_v18  ;;  %8167 = vmatprep.mubr.msk.bf16.mxu1 %vm9244_vm0, %v9243_v1 }
0x2333   :  { %8153 = vmatprep.subr.bf16.mxu1 %v9243_v1 }
0x2336   :  { %8154 = vmatpush3.bf16.msra.mxu1 %v8802_v16 }
0x2337   :  { %8155 = vmatprep.subr.bf16.mxu1 %v9243_v1 }
0x233a   :  { %8156 = vmatpush3.bf16.msra.mxu1 %v8803_v21 }
0x233b   :  { %8157 = vmatprep.subr.bf16.mxu1 %v9243_v1 }
0x233e   :  { %8158 = vmatpush3.bf16.msra.mxu1 %v8804_v22 }
0x233f   :  { %8159 = vmatprep.subr.bf16.mxu1 %v9243_v1 }
0x2342   :  { %8160 = vmatpush3.bf16.msra.mxu1 %v8805_v20 }
0x2343   :  { %8161 = vmatprep.subr.bf16.mxu1 %v9243_v1 }
0x2346   :  { %8162 = vmatpush3.bf16.msra.mxu1 %v8806_v23 }
0x2347   :  { %8163 = vmatprep.subr.bf16.mxu1 %v9243_v1 }
0x234a   :  { %8164 = vmatpush3.bf16.msra.mxu1 %v8807_v24 }
0x234b   :  { %8165 = vmatprep.subr.bf16.mxu1 %v9243_v1 }
0x234e   :  { %8166 = vmatpush3.bf16.msra.mxu1 %v8808_v26 }
0x234f   :  { %8177 = vmatprep.subr.bf16.mxu1 %v9243_v1 }
0x2351   :  { %8168 = vmatmul.mubr.bf16.vlgmr.msra.gmra.mrb[108].mxu1 %v9751_v14 }
0x2352   :  { %8179 = vmatprep.mubr.msk.bf16.mxu1 %vm9244_vm0, %v9243_v1 }
0x23e4   :  { %v4225_v30 = vpop.f32.mrb[100].mxu1 }
0x23e5   :  { %v4231_v34 = vpack.c.bf16 %v4225_v30, %v4225_v30  ;;  %v8109_v36 = vpop.f32.mrb[101].mxu1 }
0x23e6   :  { %v4228_v38 = vpop.f32.mrb[102].mxu1 }
0x23e7   :  { %v8110_v40 = vpop.f32.mrb[103].mxu1  ;;  %8128 = vmatmul.mubr.bf16.vlgmr.msra.gmra.mrb[64].mxu0 %v4231_v34  ;;  %v8841_v38 = vld [vmem:[#allocation7 + $0x200] sm:$0xff]  }
0x23e8   :  { %4605 = vmatpush1.bf16.msra.mxu0 %v8817_v33  ;;  %4636 = vmatprep.mubr.bf16.mxu0 %v9242_v0  ;;  %v8842_v40 = vld [vmem:[#allocation7 + $0x208] sm:$0xff]  }
0x23e9   :  { %4606 = vmatprep.subr.bf16.mxu0 %v8822_v37 }
0x23ec   :  { %4607 = vmatpush1.bf16.msra.mxu0 %v8820_v41  ;;  %v8843_v41 = vld [vmem:[#allocation7 + $0x210] sm:$0xff]  }
0x23ed   :  { %4608 = vmatprep.subr.bf16.mxu0 %v8825_v42  ;;  %v8844_v42 = vld [vmem:[#allocation7 + $0x218] sm:$0xff]  }
0x23f0   :  { %4609 = vmatpush1.bf16.msra.mxu0 %v8823_v50  ;;  %v8845_v50 = vld [vmem:[#allocation7 + $0x220] sm:$0xff]  }
0x23f1   :  { %4610 = vmatprep.subr.bf16.mxu0 %v8828_v44  ;;  %v8846_v44 = vld [vmem:[#allocation7 + $0x228] sm:$0xff]  }
0x23f4   :  { %4611 = vmatpush1.bf16.msra.mxu0 %v8826_v46  ;;  %v8847_v46 = vld [vmem:[#allocation7 + $0x230] sm:$0xff]  }
0x23f5   :  { %4612 = vmatprep.subr.bf16.mxu0 %v8831_v48 }
0x23f8   :  { %4613 = vmatpush1.bf16.msra.mxu0 %v8829_v49 }
0x23f9   :  { %4614 = vmatprep.subr.bf16.mxu0 %v8834_v31 }
0x23fc   :  { %4615 = vmatpush1.bf16.msra.mxu0 %v8832_v4 }
0x23fd   :  { %4616 = vmatprep.subr.bf16.mxu0 %v8837_v43  ;;  %v8848_v43 = vld [vmem:[#allocation7 + $0x238] sm:$0xff]  }
0x2400   :  { %4617 = vmatpush1.bf16.msra.mxu0 %v8835_v51 }
0x2401   :  { %4618 = vmatprep.subr.bf16.mxu0 %v8840_v52 }
0x2404   :  { %v4419_v54 = vpop.f32.mrb[104].mxu1  ;;  %4619 = vmatpush1.bf16.msra.mxu0 %v8838_v53 }
0x2405   :  { %v8149_v55 = vpop.f32.mrb[105].mxu1  ;;  %8171 = vmatprep.subr.bf16.mxu0 %v9243_v1 }
0x2406   :  { %v4422_v56 = vpop.f32.mrb[106].mxu1 }
0x2407   :  { %v8150_v58 = vpop.f32.mrb[107].mxu1  ;;  %4637 = vmatmul.mubr.bf16.vlgmr.msra.gmra.mrb[68].mxu0 %v9751_v14  ;;  %v8849_v56 = vld [vmem:[#allocation9 + $0x80] sm:$0xff]  }
0x2408   :  { %8173 = vmatprep.mubr.msk.bf16.mxu0 %vm9244_vm0, %v9243_v1  ;;  %v9864_v58 = vld [vmem:[#allocation12 + $0x10] sm:$0xff] }
0x2409   :  { %v4897_v59 = vrot.slane %v9864_v58, %v9416_v35 }
0x2424   :  { %v4679_v60 = vpop.f32.mrb[108].mxu1 }
0x2425   :  { %v4680_v61 = vadd.f32 %v4679_v60, %v4472_v57  ;;  %v8169_v2 = vpop.f32.mrb[109].mxu1 }
0x2426   :  { %v4682_v3 = vpop.f32.mrb[110].mxu1 }
0x2427   :  { %v4687_v5 = vpack.c.bf16 %v4680_v61, %v4680_v61  ;;  %v8170_v6 = vpop.f32.mrb[111].mxu1 }
0x2429   :  { %v4745_v7 = vsel %vm446_vm1, %v4687_v5, 0 }
0x242a   :  { %8178 = vmatpush3.bf16.msra.mxu1 %v4745_v7 }
0x242b   :  { %8203 = vmatprep.subr.bf16.mxu1 %v9243_v1 }
0x24ba   :  { %v4331_v8 = vpop.f32.mrb[64].mxu0 }
0x24bb   :  { %v9841_v9 = vadd.f32 %v4419_v54, %v4331_v8  ;;  %v8129_v14 = vpop.f32.mrb[65].mxu0  ;;  %v8850_v8 = vld [vmem:[#allocation9 + $0x88] sm:$0xff]  }
0x24bc   :  { %v4334_v10 = vpop.f32.mrb[66].mxu0  ;;  %v8851_v14 = vld [vmem:[#allocation9 + $0x90] sm:$0xff]  }
0x24bd   :  { %v8130_v11 = vpop.f32.mrb[67].mxu0  ;;  %v8852_v10 = vld [vmem:[#allocation9 + $0x98] sm:$0xff]  }
0x24be   :  { %v8854_v11 = vld [vmem:[#allocation9 + $0xa8] sm:$0xff]  }
0x24da   :  { %v4638_v15 = vpop.f32.mrb[68].mxu0 }
0x24db   :  { %v4640_v28 = vpop.f32.mrb[69].mxu0  ;;  %v4639_v16 = vadd.f32 %v4638_v15, %v4464_v25  ;;  %v8857_v15 = vld [vmem:[#allocation10 + $0x80] sm:$0xff]  }
0x24dc   :  { %v4641_v62 = vadd.f32 %v4640_v28, %v4468_v13  ;;  %v4642_v17 = vpop.f32.mrb[70].mxu0  ;;  %v8856_v13 = vld [vmem:[#allocation9 + $0xb8] sm:$0xff]   ;;  %v8858_v28 = vld [vmem:[#allocation10 + $0x88] sm:$0xff]   ;;  %v8861_v25 = vld [vmem:[#allocation10 + $0xa0] sm:$0xff]  }
0x24dd   :  { %v4643_v18 = vpop.f32.mrb[71].mxu0  ;;  %v4685_v21 = vpack.c.bf16 %v4639_v16, %v4639_v16  ;;  %v8860_v17 = vld [vmem:[#allocation10 + $0x98] sm:$0xff]  }
0x24de   :  { %v4686_v19 = vpack.c.bf16 %v4641_v62, %v4641_v62  ;;  %v8859_v62 = vld [vmem:[#allocation10 + $0x90] sm:$0xff]   ;;  %v8862_v18 = vld [vmem:[#allocation10 + $0xa8] sm:$0xff]  }
0x24e0   :  { %8172 = vmatpush3.bf16.xpose.msra.mxu0 %v4686_v19 }
0x24e1   :  { %8183 = vmatprep.subr.bf16.mxu0 %v9243_v1 }
0x24e7   :  { %8174 = vmatmul.mubr.bf16.vlgmr.msra.gmra.mrb[72].mxu0 %v4685_v21 }
0x24e8   :  { %8199 = vmatprep.mubr.msk.bf16.mxu0 %vm9244_vm0, %v9243_v1  ;;  %8184 = vmatpush3.bf16.msra.mxu0 %v8841_v38 }
0x24e9   :  { %8185 = vmatprep.subr.bf16.mxu0 %v9243_v1 }
0x24ec   :  { %8186 = vmatpush3.bf16.msra.mxu0 %v8842_v40  ;;  %v8863_v40 = vld [vmem:[#allocation10 + $0xb0] sm:$0xff]  }
0x24ed   :  { %8187 = vmatprep.subr.bf16.mxu0 %v9243_v1 }
0x24f0   :  { %8188 = vmatpush3.bf16.msra.mxu0 %v8843_v41  ;;  %v8864_v41 = vld [vmem:[#allocation10 + $0xb8] sm:$0xff]  }
0x24f1   :  { %8189 = vmatprep.subr.bf16.mxu0 %v9243_v1 }
0x24f4   :  { %8190 = vmatpush3.bf16.msra.mxu0 %v8844_v42  ;;  %v4944_v42 = vrot.slane %v9864_v58, %v9550_v47 }
0x24f5   :  { %8191 = vmatprep.subr.bf16.mxu0 %v9243_v1 }
0x24f8   :  { %8192 = vmatpush3.bf16.msra.mxu0 %v8845_v50 }
0x24f9   :  { %8193 = vmatprep.subr.bf16.mxu0 %v9243_v1 }
0x24fc   :  { %8194 = vmatpush3.bf16.msra.mxu0 %v8846_v44 }
0x24fd   :  { %8195 = vmatprep.subr.bf16.mxu0 %v9243_v1 }
0x2500   :  { %8196 = vmatpush3.bf16.msra.mxu0 %v8847_v46 }
0x2501   :  { %8197 = vmatprep.subr.bf16.mxu0 %v9243_v1 }
0x2504   :  { %8198 = vmatpush3.bf16.msra.mxu0 %v8848_v43  ;;  %v8865_v43 = vld [vmem:[#allocation4 + $0x6c0] ss:$12 sps:$4 sm:$0xff]  }
0x2505   :  { %8223 = vmatprep.subr.bf16.mxu0 %v9243_v1 }
0x25ba   :  { %v4722_v22 = vpop.f32.mrb[72].mxu0 }
0x25bb   :  { %v4728_v20 = vmul.f32 0.25, %v4722_v22  ;;  %v8175_v23 = vpop.f32.mrb[73].mxu0 }
0x25bc   :  { %v4725_v24 = vpop.f32.mrb[74].mxu0 }
0x25bd   :  { %v8176_v26 = vpop.f32.mrb[75].mxu0  ;;  %v4729_v29 = vsel %vm430_vm2, %v4728_v20, -inf }
0x25be   :  { %4730 = vmax.xlane.f32.xlu0 %v4729_v29  ;;  %v4916_v29 = vrot.slane %v9864_v58, %v9412_v32 }
0x264b   :  { %v4731_v30 = vpop.xlane.xlu0 %4730 }
0x264c   :  { %v4732_v33 = vsub.f32 %v4728_v20, %v4731_v30 }
0x264e   :  { %v4733_v34 = vmul.f32 1.442695, %v4732_v33 }
0x2650   :  { %9041 = vpow2.f32 %v4733_v34  ;;  %v4921_v34 = vrot.slane %v9864_v58, %v9423_v45 }
0x265a   :  { %v9042_v36 = vpop.eup %9041 }
0x265b   :  { %v4735_v37 = vsel %vm430_vm2, %v9042_v36, 0.0 }
0x265c   :  { %4736 = vadd.xlane.f32.xlu1 %v4735_v37 }
0x26e9   :  { %v4737_v48 = vpop.xlane.xlu1 %4736 }
0x26ea   :  { %9043 = vrcp.f32 %v4737_v48 }
0x26f4   :  { %v9044_v49 = vpop.eup %9043 }
0x26f5   :  { %v4739_v31 = vmul.f32 %v9044_v49, %v9042_v36 }
0x26f7   :  { %v4740_v4 = vpack.c.bf16 %v4739_v31, %v4739_v31 }
0x26f9   :  { %8180 = vmatmul.mubr.msk.bf16.vlgmr.msra.gmra.mrb[112].mxu1 %vm430_vm2, %v4740_v4 }
0x26fa   :  { %8219 = vmatprep.mubr.msk.bf16.mxu1 %vm9244_vm0, %v9243_v1  ;;  %8204 = vmatpush3.bf16.msra.mxu1 %v8849_v56  ;;  %v5055_v56 = vrot.slane %v9864_v58, %v9559_v63 }
0x26fb   :  { %8205 = vmatprep.subr.bf16.mxu1 %v9243_v1 }
0x26fe   :  { %8206 = vmatpush3.bf16.msra.mxu1 %v8850_v8  ;;  %v8873_v8 = vld [vmem:[#allocation4 + $0x6f0] ss:$12 sps:$4 sm:$0xff]  }
0x26ff   :  { %8207 = vmatprep.subr.bf16.mxu1 %v9243_v1 }
0x2702   :  { %8208 = vmatpush3.bf16.msra.mxu1 %v8851_v14  ;;  %v8879_v14 = vld [vmem:[#allocation4 + $0x70c] ss:$12 sps:$4 sm:$0xff]  }
0x2703   :  { %8209 = vmatprep.subr.bf16.mxu1 %v9243_v1 }
0x2706   :  { %8210 = vmatpush3.bf16.msra.mxu1 %v8852_v10  ;;  %v8880_v10 = vld [vmem:[#allocation4 + $0x710] ss:$12 sps:$4 sm:$0xff]  }
0x2707   :  { %8211 = vmatprep.subr.bf16.mxu1 %v9243_v1 }
0x27cc   :  { %v4781_v51 = vpop.f32.mrb[112].mxu1 }
0x27cd   :  { %v4787_v52 = vpack.c.bf16 %v4781_v51, %v4781_v51  ;;  %v8181_v53 = vpop.f32.mrb[113].mxu1  ;;  %v8867_v51 = vld [vmem:[#allocation4 + $0x6c4] ss:$12 sps:$4 sm:$0xff]  }
0x27ce   :  { %v4784_v54 = vpop.f32.mrb[114].mxu1  ;;  %v8871_v53 = vld [vmem:[#allocation4 + $0x6dc] ss:$12 sps:$4 sm:$0xff]  }
0x27cf   :  { %v8182_v55 = vpop.f32.mrb[115].mxu1  ;;  %8200 = vmatmul.mubr.bf16.vlgmr.msra.gmra.mrb[76].mxu0 %v4787_v52  ;;  %v8868_v52 = vld [vmem:[#allocation4 + $0x6c8] ss:$12 sps:$4 sm:$0xff]   ;;  %v8872_v54 = vld [vmem:[#allocation4 + $0x6e0] ss:$12 sps:$4 sm:$0xff]  }
0x27d0   :  { %8239 = vmatprep.mubr.msk.bf16.mxu0 %vm9244_vm0, %v9243_v1  ;;  %8224 = vmatpush3.bf16.msra.mxu0 %v8857_v15  ;;  %v8869_v55 = vld [vmem:[#allocation4 + $0x6d8] ss:$12 sps:$4 sm:$0xff]   ;;  %v8887_v15 = vld [vmem:[#allocation4 + $0x73c] ss:$12 sps:$4 sm:$0xff]  }
0x27d1   :  { %8225 = vmatprep.subr.bf16.mxu0 %v9243_v1 }
0x27d4   :  { %8226 = vmatpush3.bf16.msra.mxu0 %v8858_v28  ;;  %v8888_v28 = vld [vmem:[#allocation4 + $0x740] ss:$12 sps:$4 sm:$0xff]  }
0x27d5   :  { %8227 = vmatprep.subr.bf16.mxu0 %v9243_v1 }
0x27d8   :  { %8228 = vmatpush3.bf16.msra.mxu0 %v8859_v62  ;;  %v8885_v62 = vld [vmem:[#allocation4 + $0x738] ss:$12 sps:$4 sm:$0xff]  }
0x27d9   :  { %8229 = vmatprep.subr.bf16.mxu0 %v9243_v1 }
0x27dc   :  { %8230 = vmatpush3.bf16.msra.mxu0 %v8860_v17  ;;  %v8891_v17 = vld [vmem:[#allocation4 + $0x754] ss:$12 sps:$4 sm:$0xff]  }
0x27dd   :  { %8231 = vmatprep.subr.bf16.mxu0 %v9243_v1 }
0x27e0   :  { %8232 = vmatpush3.bf16.msra.mxu0 %v8861_v25  ;;  %v8892_v25 = vld [vmem:[#allocation4 + $0x758] ss:$12 sps:$4 sm:$0xff]  }
0x27e1   :  { %8233 = vmatprep.subr.bf16.mxu0 %v9243_v1 }
0x27e4   :  { %8234 = vmatpush3.bf16.msra.mxu0 %v8862_v18  ;;  %v8889_v18 = vld [vmem:[#allocation4 + $0x750] ss:$12 sps:$4 sm:$0xff]  }
0x27e5   :  { %8235 = vmatprep.subr.bf16.mxu0 %v9243_v1 }
0x27e8   :  { %8236 = vmatpush3.bf16.msra.mxu0 %v8863_v40 }
0x27e9   :  { %8237 = vmatprep.subr.bf16.mxu0 %v9243_v1 }
0x27ec   :  { %8238 = vmatpush3.bf16.msra.mxu0 %v8864_v41 }
0x27ed   :  { %8243 = vmatprep.subr.bf16.mxu0 %v9243_v1 }
0x28a2   :  { %v4887_v57 = vpop.f32.mrb[76].mxu0 }
0x28a3   :  { %v4893_v60 = vadd.f32 %v4887_v57, %v9841_v9  ;;  %v8201_v61 = vpop.f32.mrb[77].mxu0  ;;  %v8853_v9 = vld [vmem:[#allocation9 + $0xa0] sm:$0xff]  }
0x28a4   :  { %v4890_v2 = vpop.f32.mrb[78].mxu0  ;;  %8212 = vmatpush3.bf16.msra.mxu1 %v8853_v9  ;;  %v8877_v9 = vld [vmem:[#allocation4 + $0x708] ss:$12 sps:$4 sm:$0xff]  }
0x28a5   :  { %v4898_v3 = vadd.f32 %v4897_v59, %v4893_v60  ;;  %v8202_v5 = vpop.f32.mrb[79].mxu0  ;;  %8213 = vmatprep.subr.bf16.mxu1 %v9243_v1 }
0x28a7   :  { %v4899_v6 = vadd.f32 %v4898_v3, %v9747_v12  ;;  %v8855_v12 = vld [vmem:[#allocation9 + $0xb0] sm:$0xff]  }
0x28a8   :  { %8214 = vmatpush3.bf16.msra.mxu1 %v8854_v11  ;;  %v8883_v11 = vld [vmem:[#allocation4 + $0x724] ss:$12 sps:$4 sm:$0xff]  }
0x28a9   :  { %4900 = vadd.xlane.f32.xlu0 %v4899_v6  ;;  %v4903_v7 = vmul.f32 %v4899_v6, %v4899_v6  ;;  %8215 = vmatprep.subr.bf16.mxu1 %v9243_v1 }
0x28ab   :  { %4904 = vadd.xlane.f32.xlu1 %v4903_v7  ;;  %v8876_v7 = vld [vmem:[#allocation4 + $0x6f8] ss:$12 sps:$4 sm:$0xff]  }
0x28ac   :  { %8216 = vmatpush3.bf16.msra.mxu1 %v8855_v12  ;;  %v8884_v12 = vld [vmem:[#allocation4 + $0x728] ss:$12 sps:$4 sm:$0xff]  }
0x28ad   :  { %8217 = vmatprep.subr.bf16.mxu1 %v9243_v1 }
0x28b0   :  { %8218 = vmatpush3.bf16.msra.mxu1 %v8856_v13  ;;  %v8881_v13 = vld [vmem:[#allocation4 + $0x720] ss:$12 sps:$4 sm:$0xff]  }
0x28b1   :  { %5350 = vmatprep.subr.bf16.mxu1 %v8867_v51 }
0x2936   :  { %v4901_v19 = vpop.xlane.xlu0 %4900 }
0x2937   :  { %v4902_v16 = vmul.f32 0.020833334, %v4901_v19  ;;  %v8895_v19 = vld [vmem:[#allocation4 + $0x76c] ss:$12 sps:$4 sm:$0xff]  }
0x2938   :  { %v4905_v21 = vpop.xlane.xlu1 %4904 }
0x2939   :  { %v4907_v22 = vmul.f32 %v4902_v16, %v4902_v16  ;;  %v4906_v20 = vmul.f32 0.020833334, %v4905_v21  ;;  %v4909_v26 = vsub.f32 %v4899_v6, %v4902_v16  ;;  %v8875_v6 = vld [vmem:[#allocation4 + $0x6f4] ss:$12 sps:$4 sm:$0xff]   ;;  %v8896_v16 = vld [vmem:[#allocation4 + $0x770] ss:$12 sps:$4 sm:$0xff]  }
0x293a   :  { %v8893_v21 = vld [vmem:[#allocation4 + $0x768] ss:$12 sps:$4 sm:$0xff]  }
0x293b   :  { %v4908_v23 = vsub.f32 %v4906_v20, %v4907_v22 }
0x293d   :  { %v4910_v24 = vadd.f32 1e-05, %v4908_v23 }
0x293f   :  { %9045 = vrsqrt.f32 %v4910_v24 }
0x2949   :  { %v9046_v30 = vpop.eup %9045 }
0x294a   :  { %v4912_v33 = vmul.f32 %v9046_v30, %v4909_v26 }
0x294c   :  { %v4917_v36 = vmul.f32 %v4916_v29, %v4912_v33 }
0x294e   :  { %v4922_v37 = vadd.f32 %v4921_v34, %v4917_v36  ;;  %v5161_v34 = vrot.slane %v9864_v58, %v9576_v27 }
0x2950   :  { %v4923_v38 = vpack.c.bf16 %v4922_v37, %v4922_v37 }
0x2952   :  { %8220 = vmatmul.mubr.bf16.vlgmr.msra.gmra.mrb[116].mxu1 %v4923_v38 }
0x2953   :  { %5382 = vmatprep.mubr.bf16.mxu1 %v9242_v0  ;;  %5351 = vmatpush1.bf16.msra.mxu1 %v8865_v43  ;;  %v5205_v43 = vld [vmem:[#allocation6 + $0x1b] sm:$0x7] }
0x2954   :  { %5352 = vmatprep.subr.bf16.mxu1 %v8871_v53  ;;  %v5214_v51 = vrot.slane %v5205_v43, %v9412_v32 }
0x2957   :  { %5353 = vmatpush1.bf16.msra.mxu1 %v8869_v55 }
0x2958   :  { %5354 = vmatprep.subr.bf16.mxu1 %v8875_v6 }
0x295b   :  { %5355 = vmatpush1.bf16.msra.mxu1 %v8873_v8 }
0x295c   :  { %5356 = vmatprep.subr.bf16.mxu1 %v8879_v14 }
0x295f   :  { %5357 = vmatpush1.bf16.msra.mxu1 %v8877_v9 }
0x2960   :  { %5358 = vmatprep.subr.bf16.mxu1 %v8883_v11 }
0x2963   :  { %5359 = vmatpush1.bf16.msra.mxu1 %v8881_v13 }
0x2964   :  { %5360 = vmatprep.subr.bf16.mxu1 %v8887_v15 }
0x2967   :  { %5361 = vmatpush1.bf16.msra.mxu1 %v8885_v62 }
0x2968   :  { %5362 = vmatprep.subr.bf16.mxu1 %v8891_v17 }
0x296b   :  { %5363 = vmatpush1.bf16.msra.mxu1 %v8889_v18 }
0x296c   :  { %5364 = vmatprep.subr.bf16.mxu1 %v8895_v19 }
0x296f   :  { %5365 = vmatpush1.bf16.msra.mxu1 %v8893_v21 }
0x2970   :  { %8263 = vmatprep.subr.bf16.mxu1 %v9243_v1 }
0x2a25   :  { %v5027_v50 = vpop.f32.mrb[116].mxu1 }
0x2a26   :  { %v5028_v44 = vadd.f32 %v5027_v50, %v4944_v42  ;;  %v8221_v46 = vpop.f32.mrb[117].mxu1  ;;  %v8897_v42 = vld [vmem:[#allocation4 + $0x788] ss:$12 sps:$4 sm:$0xff]  }
0x2a27   :  { %v5030_v48 = vpop.f32.mrb[118].mxu1  ;;  %v8900_v46 = vld [vmem:[#allocation4 + $0x7d0] ss:$12 sps:$4 sm:$0xff]  }
0x2a28   :  { %v5033_v49 = vmax.f32 %v5028_v44, 0.0  ;;  %v8222_v31 = vpop.f32.mrb[119].mxu1  ;;  %v8898_v44 = vld [vmem:[#allocation4 + $0x7a0] ss:$12 sps:$4 sm:$0xff]   ;;  %v8901_v48 = vld [vmem:[#allocation4 + $0x7e8] ss:$12 sps:$4 sm:$0xff]  }
0x2a29   :  { %v8903_v31 = vld [vmem:[#allocation4 + $0x818] ss:$12 sps:$4 sm:$0xff]  }
0x2a2a   :  { %v5034_v4 = vpack.c.bf16 %v5033_v49, %v5033_v49  ;;  %v8902_v49 = vld [vmem:[#allocation4 + $0x800] ss:$12 sps:$4 sm:$0xff]  }
0x2a2c   :  { %8240 = vmatmul.mubr.bf16.vlgmr.msra.gmra.mrb[80].mxu0 %v5034_v4  ;;  %v8904_v4 = vld [vmem:[#allocation4 + $0x830] ss:$12 sps:$4 sm:$0xff]  }
0x2a2d   :  { %8259 = vmatprep.mubr.msk.bf16.mxu0 %vm9244_vm0, %v9243_v1  ;;  %8244 = vmatpush3.bf16.msra.mxu0 %v8868_v52 }
0x2a2e   :  { %8245 = vmatprep.subr.bf16.mxu0 %v9243_v1 }
0x2a31   :  { %8246 = vmatpush3.bf16.msra.mxu0 %v8872_v54  ;;  %v5218_v54 = vrot.slane %v5205_v43, %v9423_v45 }
0x2a32   :  { %8247 = vmatprep.subr.bf16.mxu0 %v9243_v1 }
0x2a35   :  { %8248 = vmatpush3.bf16.msra.mxu0 %v8876_v7 }
0x2a36   :  { %8249 = vmatprep.subr.bf16.mxu0 %v9243_v1 }
0x2a39   :  { %8250 = vmatpush3.bf16.msra.mxu0 %v8880_v10 }
0x2a3a   :  { %8251 = vmatprep.subr.bf16.mxu0 %v9243_v1 }
0x2a3d   :  { %8252 = vmatpush3.bf16.msra.mxu0 %v8884_v12 }
0x2a3e   :  { %8253 = vmatprep.subr.bf16.mxu0 %v9243_v1 }
0x2a41   :  { %8254 = vmatpush3.bf16.msra.mxu0 %v8888_v28 }
0x2a42   :  { %8255 = vmatprep.subr.bf16.mxu0 %v9243_v1 }
0x2a45   :  { %8256 = vmatpush3.bf16.msra.mxu0 %v8892_v25 }
0x2a46   :  { %8257 = vmatprep.subr.bf16.mxu0 %v9243_v1 }
0x2a49   :  { %8258 = vmatpush3.bf16.msra.mxu0 %v8896_v16 }
0x2a4a   :  { %8275 = vmatprep.subr.bf16.mxu0 %v9243_v1 }
0x2aff   :  { %v5138_v59 = vpop.f32.mrb[80].mxu0 }
0x2b00   :  { %v5139_v57 = vadd.f32 %v5138_v59, %v5055_v56  ;;  %v8241_v60 = vpop.f32.mrb[81].mxu0 }
0x2b01   :  { %v5141_v61 = vpop.f32.mrb[82].mxu0 }
0x2b02   :  { %v5144_v2 = vadd.f32 %v5139_v57, %v4922_v37  ;;  %v8242_v3 = vpop.f32.mrb[83].mxu0  ;;  %v5166_v37 = vrot.slane %v9864_v58, %v9579_v39  ;;  %v8899_v58 = vld [vmem:[#allocation4 + $0x7b8] ss:$12 sps:$4 sm:$0xff]   ;;  %v5210_v61 = vrot.slane %v5205_v43, %v9416_v35  ;;  %v8926_v43 = vld [vmem:[#allocation4 + $0x828] ss:$12 sps:$4 sm:$0xff]  }
0x2b04   :  { %5145 = vadd.xlane.f32.xlu0 %v5144_v2  ;;  %v5148_v5 = vmul.f32 %v5144_v2, %v5144_v2 }
0x2b06   :  { %5149 = vadd.xlane.f32.xlu1 %v5148_v5 }
0x2b91   :  { %v5146_v22 = vpop.xlane.xlu0 %5145 }
0x2b92   :  { %v5147_v20 = vmul.f32 0.020833334, %v5146_v22 }
0x2b93   :  { %v5150_v23 = vpop.xlane.xlu1 %5149 }
0x2b94   :  { %v5152_v24 = vmul.f32 %v5147_v20, %v5147_v20  ;;  %v5151_v26 = vmul.f32 0.020833334, %v5150_v23  ;;  %v5154_v33 = vsub.f32 %v5144_v2, %v5147_v20  ;;  %v8907_v23 = vld [vmem:[#allocation4 + $0x784] ss:$12 sps:$4 sm:$0xff]  }
0x2b96   :  { %v5153_v29 = vsub.f32 %v5151_v26, %v5152_v24 }
0x2b98   :  { %v5155_v30 = vadd.f32 1e-05, %v5153_v29 }
0x2b9a   :  { %9047 = vrsqrt.f32 %v5155_v30  ;;  %v8905_v30 = vld [vmem:[#allocation4 + $0x780] ss:$12 sps:$4 sm:$0xff]  }
0x2ba4   :  { %v9048_v36 = vpop.eup %9047 }
0x2ba5   :  { %v5157_v38 = vmul.f32 %v9048_v36, %v5154_v33  ;;  %v8908_v36 = vld [vmem:[#allocation4 + $0x798] ss:$12 sps:$4 sm:$0xff]  }
0x2ba7   :  { %v5162_v40 = vmul.f32 %v5161_v34, %v5157_v38  ;;  %v8910_v34 = vld [vmem:[#allocation4 + $0x79c] ss:$12 sps:$4 sm:$0xff]  }
0x2ba8   :  { %v8911_v38 = vld [vmem:[#allocation4 + $0x7b0] ss:$12 sps:$4 sm:$0xff]  }
0x2ba9   :  { %v9908_v41 = vadd.f32 %v5166_v37, %v5162_v40  ;;  %v8913_v37 = vld [vmem:[#allocation4 + $0x7b4] ss:$12 sps:$4 sm:$0xff]   ;;  %v8916_v40 = vld [vmem:[#allocation4 + $0x7cc] ss:$12 sps:$4 sm:$0xff]  }
0x2bab   :  { %v9912_v50 = vpack.c.bf16 %v9908_v41, %v9908_v41 }
0x2bad   :  { %5383 = vmatmul.mubr.bf16.vlgmr.msra.gmra.mrb[120].mxu1 %v9912_v50  ;;  %8260 = vmatmul.mubr.bf16.vlgmr.msra.gmra.mrb[84].mxu0 %v9912_v50 }
0x2bae   :  { %8276 = vmatpush3.bf16.msra.mxu0 %v8897_v42  ;;  %8291 = vmatprep.mubr.msk.bf16.mxu0 %vm9244_vm0, %v9243_v1  ;;  %v8914_v42 = vld [vmem:[#allocation4 + $0x7c8] ss:$12 sps:$4 sm:$0xff]  }
0x2baf   :  { %8277 = vmatprep.subr.bf16.mxu0 %v9243_v1  ;;  %8265 = vmatprep.mubr.msk.bf16.mxu1 %vm9244_vm0, %v9243_v1 }
0x2bb2   :  { %8278 = vmatpush3.bf16.msra.mxu0 %v8898_v44  ;;  %v8919_v44 = vld [vmem:[#allocation4 + $0x7e4] ss:$12 sps:$4 sm:$0xff]  }
0x2bb3   :  { %8279 = vmatprep.subr.bf16.mxu0 %v9243_v1 }
0x2bb6   :  { %8280 = vmatpush3.bf16.msra.mxu0 %v8899_v58  ;;  %v8917_v58 = vld [vmem:[#allocation4 + $0x7e0] ss:$12 sps:$4 sm:$0xff]  }
0x2bb7   :  { %8281 = vmatprep.subr.bf16.mxu0 %v9243_v1 }
0x2bba   :  { %8282 = vmatpush3.bf16.msra.mxu0 %v8900_v46  ;;  %v8922_v46 = vld [vmem:[#allocation4 + $0x7fc] ss:$12 sps:$4 sm:$0xff]  }
0x2bbb   :  { %8283 = vmatprep.subr.bf16.mxu0 %v9243_v1 }
0x2bbe   :  { %8284 = vmatpush3.bf16.msra.mxu0 %v8901_v48  ;;  %v8920_v48 = vld [vmem:[#allocation4 + $0x7f8] ss:$12 sps:$4 sm:$0xff]  }
0x2bbf   :  { %8285 = vmatprep.subr.bf16.mxu0 %v9243_v1 }
0x2bc2   :  { %8286 = vmatpush3.bf16.msra.mxu0 %v8902_v49  ;;  %v8925_v49 = vld [vmem:[#allocation4 + $0x814] ss:$12 sps:$4 sm:$0xff]  }
0x2bc3   :  { %8287 = vmatprep.subr.bf16.mxu0 %v9243_v1 }
0x2bc6   :  { %8288 = vmatpush3.bf16.msra.mxu0 %v8903_v31  ;;  %v8923_v31 = vld [vmem:[#allocation4 + $0x810] ss:$12 sps:$4 sm:$0xff]  }
0x2bc7   :  { %8289 = vmatprep.subr.bf16.mxu0 %v9243_v1 }
0x2bca   :  { %8290 = vmatpush3.bf16.msra.mxu0 %v8904_v4  ;;  %v8928_v4 = vld [vmem:[#allocation4 + $0x82c] ss:$12 sps:$4 sm:$0xff]  }
0x2bcb   :  { %8307 = vmatprep.subr.bf16.mxu0 %v9243_v1 }
0x2bcd   :  { %8292 = vmatmul.mubr.bf16.vlgmr.msra.gmra.mrb[88].mxu0 %v9912_v50 }
0x2bce   :  { %8323 = vmatprep.mubr.msk.bf16.mxu0 %vm9244_vm0, %v9243_v1 }
0x2c80   :  { %v5384_v52 = vpop.f32.mrb[120].mxu1  ;;  %v5425_v53 = vpop.f32.mrb[84].mxu0 }
0x2c81   :  { %v5386_v55 = vpop.f32.mrb[121].mxu1  ;;  %v8261_v56 = vpop.f32.mrb[85].mxu0  ;;  %v5426_v6 = vadd.f32 %v5425_v53, %v5218_v54  ;;  %v5385_v7 = vadd.f32 %v5384_v52, %v5210_v61 }
0x2c82   :  { %v5387_v59 = vadd.f32 %v5386_v55, %v5214_v51  ;;  %v5388_v57 = vpop.f32.mrb[122].mxu1  ;;  %v5428_v60 = vpop.f32.mrb[86].mxu0  ;;  %v5585_v55 = vld [vmem:[#allocation6 + $0x1e] sm:$0x7] }
0x2c83   :  { %v5389_v2 = vpop.f32.mrb[123].mxu1  ;;  %v8262_v3 = vpop.f32.mrb[87].mxu0  ;;  %v5433_v8 = vpack.c.bf16 %v5426_v6, %v5426_v6  ;;  %v5431_v14 = vpack.c.bf16 %v5385_v7, %v5385_v7  ;;  %v5594_v56 = vrot.slane %v5585_v55, %v9412_v32  ;;  %v5598_v57 = vrot.slane %v5585_v55, %v9423_v45 }
0x2c84   :  { %v5432_v5 = vpack.c.bf16 %v5387_v59, %v5387_v59  ;;  %v5590_v3 = vrot.slane %v5585_v55, %v9416_v35  ;;  %v8943_v55 = vld [vmem:[#allocation4 + $0x8d8] ss:$12 sps:$4 sm:$0xff]  }
0x2c85   :  { %v5491_v10 = vsel %vm446_vm1, %v5433_v8, 0 }
0x2c86   :  { %8264 = vmatpush3.bf16.xpose.msra.mxu1 %v5432_v5 }
0x2c87   :  { %8269 = vmatprep.subr.bf16.mxu1 %v9243_v1 }
0x2c8d   :  { %8266 = vmatmul.mubr.bf16.vlgmr.msra.gmra.mrb[124].mxu1 %v5431_v14 }
0x2c8e   :  { %8270 = vmatpush3.bf16.msra.mxu1 %v5491_v10  ;;  %8271 = vmatprep.mubr.msk.bf16.mxu1 %vm9244_vm0, %v9243_v1 }
0x2c8f   :  { %5730 = vmatprep.subr.bf16.mxu1 %v8907_v23  ;;  %v8948_v23 = vld [vmem:[#allocation7 + $0x298] sm:$0xff]  }
0x2ca0   :  { %v9938_v9 = vpop.f32.mrb[88].mxu0 }
0x2ca1   :  { %v8293_v11 = vpop.f32.mrb[89].mxu0  ;;  %v5806_v7 = vadd.f32 %v9938_v9, %v5598_v57 }
0x2ca2   :  { %v5808_v12 = vpop.f32.mrb[90].mxu0 }
0x2ca3   :  { %v8294_v13 = vpop.f32.mrb[91].mxu0  ;;  %v5813_v14 = vpack.c.bf16 %v5806_v7, %v5806_v7  ;;  %v8956_v7 = vld [vmem:[#allocation4 + $0x858] ss:$12 sps:$4 sm:$0xff]  }
0x2ca5   :  { %v5871_v11 = vsel %vm446_vm1, %v5813_v14, 0  ;;  %v8959_v14 = vld [vmem:[#allocation4 + $0x870] ss:$12 sps:$4 sm:$0xff]  }
0x2d60   :  { %v5468_v15 = vpop.f32.mrb[124].mxu1 }
0x2d61   :  { %v5474_v28 = vmul.f32 0.25, %v5468_v15  ;;  %v8267_v62 = vpop.f32.mrb[125].mxu1 }
0x2d62   :  { %v5471_v17 = vpop.f32.mrb[126].mxu1 }
0x2d63   :  { %v8268_v25 = vpop.f32.mrb[127].mxu1  ;;  %v5475_v18 = vsel %vm430_vm2, %v5474_v28, -inf }
0x2d64   :  { %5476 = vmax.xlane.f32.xlu0 %v5475_v18 }
0x2df1   :  { %v5477_v19 = vpop.xlane.xlu0 %5476 }
0x2df2   :  { %v5478_v16 = vsub.f32 %v5474_v28, %v5477_v19 }
0x2df4   :  { %v5479_v21 = vmul.f32 1.442695, %v5478_v16 }
0x2df6   :  { %9049 = vpow2.f32 %v5479_v21  ;;  %v8945_v21 = vld [vmem:[#allocation7 + $0x280] sm:$0xff]  }
0x2df7   :  { %8308 = vmatpush3.bf16.msra.mxu0 %v8945_v21  ;;  %v6141_v21 = vld [vmem:[#allocation6 + $0x21] sm:$0x7] }
0x2df8   :  { %8309 = vmatprep.subr.bf16.mxu0 %v9243_v1 }
0x2e00   :  { %v9050_v22 = vpop.eup %9049 }
0x2e01   :  { %v5481_v20 = vsel %vm430_vm2, %v9050_v22, 0.0 }
0x2e02   :  { %5482 = vadd.xlane.f32.xlu1 %v5481_v20  ;;  %v8947_v20 = vld [vmem:[#allocation7 + $0x290] sm:$0xff]  }
0x2e8f   :  { %v5483_v24 = vpop.xlane.xlu1 %5482 }
0x2e90   :  { %9051 = vrcp.f32 %v5483_v24  ;;  %v8949_v24 = vld [vmem:[#allocation7 + $0x2a0] sm:$0xff]  }
0x2e9a   :  { %v9052_v26 = vpop.eup %9051 }
0x2e9b   :  { %v5485_v29 = vmul.f32 %v9052_v26, %v9050_v22  ;;  %v8946_v22 = vld [vmem:[#allocation7 + $0x288] sm:$0xff]  }
0x2e9c   :  { %8310 = vmatpush3.bf16.msra.mxu0 %v8946_v22  ;;  %v8950_v26 = vld [vmem:[#allocation7 + $0x2a8] sm:$0xff]   ;;  %v6154_v22 = vrot.slane %v6141_v21, %v9423_v45 }
0x2e9d   :  { %v5486_v33 = vpack.c.bf16 %v5485_v29, %v5485_v29  ;;  %8311 = vmatprep.subr.bf16.mxu0 %v9243_v1  ;;  %v8951_v29 = vld [vmem:[#allocation7 + $0x2b0] sm:$0xff]  }
0x2e9f   :  { %8272 = vmatmul.mubr.msk.bf16.vlgmr.msra.gmra.mrb[128].mxu1 %vm430_vm2, %v5486_v33 }
0x2ea0   :  { %5731 = vmatpush1.bf16.msra.mxu1 %v8905_v30  ;;  %5762 = vmatprep.mubr.bf16.mxu1 %v9242_v0  ;;  %v8952_v30 = vld [vmem:[#allocation7 + $0x2b8] sm:$0xff]  }
0x2ea1   :  { %5732 = vmatprep.subr.bf16.mxu1 %v8910_v34  ;;  %8312 = vmatpush3.bf16.msra.mxu0 %v8947_v20 }
0x2ea2   :  { %8313 = vmatprep.subr.bf16.mxu0 %v9243_v1 }
0x2ea4   :  { %5733 = vmatpush1.bf16.msra.mxu1 %v8908_v36 }
0x2ea5   :  { %5734 = vmatprep.subr.bf16.mxu1 %v8913_v37  ;;  %8314 = vmatpush3.bf16.msra.mxu0 %v8948_v23  ;;  %v8929_v37 = vld [vmem:[#allocation7 + $0x240] sm:$0xff]  }
0x2ea6   :  { %8315 = vmatprep.subr.bf16.mxu0 %v9243_v1 }
0x2ea8   :  { %5735 = vmatpush1.bf16.msra.mxu1 %v8911_v38 }
0x2ea9   :  { %5736 = vmatprep.subr.bf16.mxu1 %v8916_v40  ;;  %8316 = vmatpush3.bf16.msra.mxu0 %v8949_v24  ;;  %v8930_v40 = vld [vmem:[#allocation7 + $0x248] sm:$0xff]  }
0x2eaa   :  { %8317 = vmatprep.subr.bf16.mxu0 %v9243_v1 }
0x2eac   :  { %5737 = vmatpush1.bf16.msra.mxu1 %v8914_v42  ;;  %v8931_v42 = vld [vmem:[#allocation7 + $0x250] sm:$0xff]  }
0x2ead   :  { %5738 = vmatprep.subr.bf16.mxu1 %v8919_v44  ;;  %8318 = vmatpush3.bf16.msra.mxu0 %v8950_v26  ;;  %v8932_v44 = vld [vmem:[#allocation7 + $0x258] sm:$0xff]  }
0x2eae   :  { %8319 = vmatprep.subr.bf16.mxu0 %v9243_v1 }
0x2eb0   :  { %5739 = vmatpush1.bf16.msra.mxu1 %v8917_v58  ;;  %v8933_v58 = vld [vmem:[#allocation7 + $0x260] sm:$0xff]  }
0x2eb1   :  { %5740 = vmatprep.subr.bf16.mxu1 %v8922_v46  ;;  %8320 = vmatpush3.bf16.msra.mxu0 %v8951_v29  ;;  %v8934_v46 = vld [vmem:[#allocation7 + $0x268] sm:$0xff]  }
0x2eb2   :  { %8321 = vmatprep.subr.bf16.mxu0 %v9243_v1 }
0x2eb4   :  { %5741 = vmatpush1.bf16.msra.mxu1 %v8920_v48  ;;  %v8935_v48 = vld [vmem:[#allocation7 + $0x270] sm:$0xff]  }
0x2eb5   :  { %5742 = vmatprep.subr.bf16.mxu1 %v8925_v49  ;;  %8322 = vmatpush3.bf16.msra.mxu0 %v8952_v30  ;;  %v8936_v49 = vld [vmem:[#allocation7 + $0x278] sm:$0xff]  }
0x2eb8   :  { %5743 = vmatpush1.bf16.msra.mxu1 %v8923_v31  ;;  %v8937_v31 = vld [vmem:[#allocation4 + $0x848] ss:$12 sps:$4 sm:$0xff]  }
0x2eb9   :  { %5744 = vmatprep.subr.bf16.mxu1 %v8928_v4 }
0x2ebc   :  { %5745 = vmatpush1.bf16.msra.mxu1 %v8926_v43  ;;  %v8938_v43 = vld [vmem:[#allocation4 + $0x860] ss:$12 sps:$4 sm:$0xff]  }
0x2ebd   :  { %8295 = vmatprep.subr.bf16.mxu1 %v9243_v1 }
0x2ebf   :  { %5763 = vmatmul.mubr.bf16.vlgmr.msra.gmra.mrb[132].mxu1 %v9912_v50 }
0x2ec0   :  { %8297 = vmatprep.mubr.msk.bf16.mxu1 %vm9244_vm0, %v9243_v1 }
0x2f72   :  { %v9948_v51 = vpop.f32.mrb[128].mxu1 }
0x2f73   :  { %v8273_v52 = vpop.f32.mrb[129].mxu1  ;;  %v5533_v4 = vpack.c.bf16 %v9948_v51, %v9948_v51  ;;  %v8941_v51 = vld [vmem:[#allocation4 + $0x8a8] ss:$12 sps:$4 sm:$0xff]  }
0x2f74   :  { %v5530_v53 = vpop.f32.mrb[130].mxu1  ;;  %v8939_v52 = vld [vmem:[#allocation4 + $0x878] ss:$12 sps:$4 sm:$0xff]  }
0x2f75   :  { %v8274_v54 = vpop.f32.mrb[131].mxu1  ;;  %v8940_v53 = vld [vmem:[#allocation4 + $0x890] ss:$12 sps:$4 sm:$0xff]  }
0x2f76   :  { %v8942_v54 = vld [vmem:[#allocation4 + $0x8c0] ss:$12 sps:$4 sm:$0xff]  }
0x2f92   :  { %v5764_v59 = vpop.f32.mrb[132].mxu1 }
0x2f93   :  { %v5766_v60 = vpop.f32.mrb[133].mxu1  ;;  %v5765_v8 = vadd.f32 %v5764_v59, %v5590_v3  ;;  %v8955_v59 = vld [vmem:[#allocation4 + $0x844] ss:$12 sps:$4 sm:$0xff]   ;;  %v8958_v3 = vld [vmem:[#allocation4 + $0x85c] ss:$12 sps:$4 sm:$0xff]  }
0x2f94   :  { %v5767_v61 = vadd.f32 %v5766_v60, %v5594_v56  ;;  %v5768_v2 = vpop.f32.mrb[134].mxu1  ;;  %v8944_v56 = vld [vmem:[#allocation4 + $0x8f0] ss:$12 sps:$4 sm:$0xff]   ;;  %6286 = vmatprep.subr.bf16.mxu0 %v8955_v59  ;;  %v8953_v60 = vld [vmem:[#allocation4 + $0x840] ss:$12 sps:$4 sm:$0xff]  }
0x2f95   :  { %v5769_v5 = vpop.f32.mrb[135].mxu1  ;;  %v5811_v10 = vpack.c.bf16 %v5765_v8, %v5765_v8  ;;  %v8961_v8 = vld [vmem:[#allocation4 + $0x874] ss:$12 sps:$4 sm:$0xff]  }
0x2f96   :  { %v5812_v6 = vpack.c.bf16 %v5767_v61, %v5767_v61 }
0x2f98   :  { %8296 = vmatpush3.bf16.xpose.msra.mxu1 %v5812_v6 }
0x2f99   :  { %8301 = vmatprep.subr.bf16.mxu1 %v9243_v1 }
0x2f9f   :  { %8298 = vmatmul.mubr.bf16.vlgmr.msra.gmra.mrb[136].mxu1 %v5811_v10  ;;  %v8964_v10 = vld [vmem:[#allocation4 + $0x88c] ss:$12 sps:$4 sm:$0xff]  }
0x2fa0   :  { %8302 = vmatpush3.bf16.msra.mxu1 %v5871_v11  ;;  %8303 = vmatprep.mubr.msk.bf16.mxu1 %vm9244_vm0, %v9243_v1  ;;  %v8962_v11 = vld [vmem:[#allocation4 + $0x888] ss:$12 sps:$4 sm:$0xff]  }
0x2fa1   :  { %8327 = vmatprep.subr.bf16.mxu1 %v9243_v1 }
0x3072   :  { %v5848_v12 = vpop.f32.mrb[136].mxu1 }
0x3073   :  { %v5854_v13 = vmul.f32 0.25, %v5848_v12  ;;  %v8299_v15 = vpop.f32.mrb[137].mxu1  ;;  %v8967_v12 = vld [vmem:[#allocation4 + $0x8a4] ss:$12 sps:$4 sm:$0xff]  }
0x3074   :  { %v5851_v28 = vpop.f32.mrb[138].mxu1  ;;  %v8970_v15 = vld [vmem:[#allocation4 + $0x8bc] ss:$12 sps:$4 sm:$0xff]  }
0x3075   :  { %v8300_v9 = vpop.f32.mrb[139].mxu1  ;;  %v5855_v62 = vsel %vm430_vm2, %v5854_v13, -inf  ;;  %v8968_v28 = vld [vmem:[#allocation4 + $0x8b8] ss:$12 sps:$4 sm:$0xff]  }
0x3076   :  { %5856 = vmax.xlane.f32.xlu0 %v5855_v62  ;;  %v8973_v9 = vld [vmem:[#allocation4 + $0x8d4] ss:$12 sps:$4 sm:$0xff]   ;;  %v8976_v62 = vld [vmem:[#allocation4 + $0x8ec] ss:$12 sps:$4 sm:$0xff]  }
0x3103   :  { %v5857_v17 = vpop.xlane.xlu0 %5856 }
0x3104   :  { %v5858_v25 = vsub.f32 %v5854_v13, %v5857_v17  ;;  %v8965_v13 = vld [vmem:[#allocation4 + $0x8a0] ss:$12 sps:$4 sm:$0xff]   ;;  %v8974_v17 = vld [vmem:[#allocation4 + $0x8e8] ss:$12 sps:$4 sm:$0xff]  }
0x3106   :  { %v5859_v18 = vmul.f32 1.442695, %v5858_v25 }
0x3108   :  { %9053 = vpow2.f32 %v5859_v18 }
0x3112   :  { %v9054_v19 = vpop.eup %9053 }
0x3113   :  { %v5861_v16 = vsel %vm430_vm2, %v9054_v19, 0.0 }
0x3114   :  { %5862 = vadd.xlane.f32.xlu1 %v5861_v16 }
0x31a1   :  { %v5863_v33 = vpop.xlane.xlu1 %5862 }
0x31a2   :  { %9055 = vrcp.f32 %v5863_v33 }
0x31ac   :  { %v9056_v34 = vpop.eup %9055 }
0x31ad   :  { %v5865_v36 = vmul.f32 %v9056_v34, %v9054_v19 }
0x31af   :  { %v5866_v38 = vpack.c.bf16 %v5865_v36, %v5865_v36 }
0x31b1   :  { %8304 = vmatmul.mubr.msk.bf16.vlgmr.msra.gmra.mrb[140].mxu1 %vm430_vm2, %v5866_v38 }
0x31b2   :  { %8328 = vmatpush3.bf16.msra.mxu1 %v8929_v37  ;;  %8343 = vmatprep.mubr.msk.bf16.mxu1 %vm9244_vm0, %v9243_v1 }
0x31b3   :  { %8329 = vmatprep.subr.bf16.mxu1 %v9243_v1 }
0x31b6   :  { %8330 = vmatpush3.bf16.msra.mxu1 %v8930_v40  ;;  %v6150_v40 = vrot.slane %v6141_v21, %v9412_v32 }
0x31b7   :  { %8331 = vmatprep.subr.bf16.mxu1 %v9243_v1 }
0x31ba   :  { %8332 = vmatpush3.bf16.msra.mxu1 %v8931_v42 }
0x31bb   :  { %8333 = vmatprep.subr.bf16.mxu1 %v9243_v1 }
0x31be   :  { %8334 = vmatpush3.bf16.msra.mxu1 %v8932_v44 }
0x31bf   :  { %8335 = vmatprep.subr.bf16.mxu1 %v9243_v1 }
0x31c2   :  { %8336 = vmatpush3.bf16.msra.mxu1 %v8933_v58 }
0x31c3   :  { %8337 = vmatprep.subr.bf16.mxu1 %v9243_v1 }
0x31c6   :  { %8338 = vmatpush3.bf16.msra.mxu1 %v8934_v46 }
0x31c7   :  { %8339 = vmatprep.subr.bf16.mxu1 %v9243_v1 }
0x31ca   :  { %8340 = vmatpush3.bf16.msra.mxu1 %v8935_v48  ;;  %v6146_v48 = vrot.slane %v6141_v21, %v9416_v35 }
0x31cb   :  { %8341 = vmatprep.subr.bf16.mxu1 %v9243_v1 }
0x31ce   :  { %8342 = vmatpush3.bf16.msra.mxu1 %v8936_v49 }
0x31cf   :  { %8347 = vmatprep.subr.bf16.mxu1 %v9243_v1 }
0x31d1   :  { %8344 = vmatmul.mubr.bf16.vlgmr.msra.gmra.mrb[144].mxu1 %v5533_v4 }
0x31d2   :  { %8348 = vmatpush3.bf16.msra.mxu1 %v8937_v31  ;;  %8363 = vmatprep.mubr.msk.bf16.mxu1 %vm9244_vm0, %v9243_v1 }
0x31d3   :  { %8349 = vmatprep.subr.bf16.mxu1 %v9243_v1 }
0x31d6   :  { %8350 = vmatpush3.bf16.msra.mxu1 %v8938_v43 }
0x31d7   :  { %8351 = vmatprep.subr.bf16.mxu1 %v9243_v1 }
0x31da   :  { %8352 = vmatpush3.bf16.msra.mxu1 %v8939_v52 }
0x31db   :  { %8353 = vmatprep.subr.bf16.mxu1 %v9243_v1 }
0x31de   :  { %8354 = vmatpush3.bf16.msra.mxu1 %v8940_v53 }
0x31df   :  { %8355 = vmatprep.subr.bf16.mxu1 %v9243_v1 }
0x31e2   :  { %8356 = vmatpush3.bf16.msra.mxu1 %v8941_v51 }
0x31e3   :  { %8357 = vmatprep.subr.bf16.mxu1 %v9243_v1 }
0x31e6   :  { %8358 = vmatpush3.bf16.msra.mxu1 %v8942_v54 }
0x31e7   :  { %8359 = vmatprep.subr.bf16.mxu1 %v9243_v1 }
0x31ea   :  { %8360 = vmatpush3.bf16.msra.mxu1 %v8943_v55 }
0x31eb   :  { %8361 = vmatprep.subr.bf16.mxu1 %v9243_v1 }
0x31ee   :  { %8362 = vmatpush3.bf16.msra.mxu1 %v8944_v56 }
0x31ef   :  { %8373 = vmatprep.subr.bf16.mxu1 %v9243_v1 }
0x31f1   :  { %8364 = vmatmul.mubr.bf16.vlgmr.msra.gmra.mrb[148].mxu1 %v9912_v50 }
0x31f2   :  { %8375 = vmatprep.mubr.msk.bf16.mxu1 %vm9244_vm0, %v9243_v1 }
0x3284   :  { %v5907_v57 = vpop.f32.mrb[140].mxu1 }
0x3285   :  { %v5913_v61 = vpack.c.bf16 %v5907_v57, %v5907_v57  ;;  %v8305_v2 = vpop.f32.mrb[141].mxu1 }
0x3286   :  { %v5910_v5 = vpop.f32.mrb[142].mxu1 }
0x3287   :  { %v8306_v6 = vpop.f32.mrb[143].mxu1  ;;  %8324 = vmatmul.mubr.bf16.vlgmr.msra.gmra.mrb[92].mxu0 %v5913_v61  ;;  %v8978_v5 = vld [vmem:[#allocation7 + $0x2c8] sm:$0xff]  }
0x3288   :  { %6287 = vmatpush1.bf16.msra.mxu0 %v8953_v60  ;;  %6318 = vmatprep.mubr.bf16.mxu0 %v9242_v0  ;;  %v8971_v0 = vld [vmem:[#allocation4 + $0x8d0] ss:$12 sps:$4 sm:$0xff]   ;;  %v8979_v6 = vld [vmem:[#allocation7 + $0x2d0] sm:$0xff]  }
0x3289   :  { %6288 = vmatprep.subr.bf16.mxu0 %v8958_v3  ;;  %v8977_v3 = vld [vmem:[#allocation7 + $0x2c0] sm:$0xff]  }
0x328c   :  { %6289 = vmatpush1.bf16.msra.mxu0 %v8956_v7  ;;  %v8980_v7 = vld [vmem:[#allocation7 + $0x2d8] sm:$0xff]  }
0x328d   :  { %6290 = vmatprep.subr.bf16.mxu0 %v8961_v8  ;;  %v8981_v8 = vld [vmem:[#allocation7 + $0x2e0] sm:$0xff]  }
0x3290   :  { %6291 = vmatpush1.bf16.msra.mxu0 %v8959_v14  ;;  %v8982_v14 = vld [vmem:[#allocation7 + $0x2e8] sm:$0xff]  }
0x3291   :  { %6292 = vmatprep.subr.bf16.mxu0 %v8964_v10  ;;  %v8983_v10 = vld [vmem:[#allocation7 + $0x2f0] sm:$0xff]  }
0x3294   :  { %6293 = vmatpush1.bf16.msra.mxu0 %v8962_v11 }
0x3295   :  { %6294 = vmatprep.subr.bf16.mxu0 %v8967_v12 }
0x3298   :  { %6295 = vmatpush1.bf16.msra.mxu0 %v8965_v13 }
0x3299   :  { %6296 = vmatprep.subr.bf16.mxu0 %v8970_v15 }
0x329c   :  { %6297 = vmatpush1.bf16.msra.mxu0 %v8968_v28  ;;  %v8984_v28 = vld [vmem:[#allocation7 + $0x2f8] sm:$0xff]  }
0x329d   :  { %6298 = vmatprep.subr.bf16.mxu0 %v8973_v9 }
0x32a0   :  { %6299 = vmatpush1.bf16.msra.mxu0 %v8971_v0 }
0x32a1   :  { %6300 = vmatprep.subr.bf16.mxu0 %v8976_v62 }
0x32a4   :  { %v6101_v25 = vpop.f32.mrb[144].mxu1  ;;  %6301 = vmatpush1.bf16.msra.mxu0 %v8974_v17 }
0x32a5   :  { %v8345_v18 = vpop.f32.mrb[145].mxu1  ;;  %8367 = vmatprep.subr.bf16.mxu0 %v9243_v1 }
0x32a6   :  { %v6104_v19 = vpop.f32.mrb[146].mxu1  ;;  %v8985_v18 = vld [vmem:[#allocation9 + $0xc0] sm:$0xff]  }
0x32a7   :  { %v8346_v16 = vpop.f32.mrb[147].mxu1  ;;  %6319 = vmatmul.mubr.bf16.vlgmr.msra.gmra.mrb[96].mxu0 %v9912_v50  ;;  %v10025_v19 = vld [vmem:[#allocation12 + $0x18] sm:$0xff] }
0x32a8   :  { %8369 = vmatprep.mubr.msk.bf16.mxu0 %vm9244_vm0, %v9243_v1  ;;  %v6579_v16 = vrot.slane %v10025_v19, %v9416_v35  ;;  %v8988_v35 = vld [vmem:[#allocation9 + $0xd8] sm:$0xff]  }
0x32c4   :  { %v6361_v20 = vpop.f32.mrb[148].mxu1 }
0x32c5   :  { %v6362_v23 = vadd.f32 %v6361_v20, %v6154_v22  ;;  %v8365_v24 = vpop.f32.mrb[149].mxu1 }
0x32c6   :  { %v6364_v26 = vpop.f32.mrb[150].mxu1 }
0x32c7   :  { %v6369_v29 = vpack.c.bf16 %v6362_v23, %v6362_v23  ;;  %v8366_v30 = vpop.f32.mrb[151].mxu1 }
0x32c9   :  { %v6427_v33 = vsel %vm446_vm1, %v6369_v29, 0 }
0x32ca   :  { %8374 = vmatpush3.bf16.msra.mxu1 %v6427_v33  ;;  %v8986_v33 = vld [vmem:[#allocation9 + $0xc8] sm:$0xff]  }
0x32cb   :  { %8399 = vmatprep.subr.bf16.mxu1 %v9243_v1 }
0x335a   :  { %v6013_v34 = vpop.f32.mrb[92].mxu0 }
0x335b   :  { %v10002_v36 = vadd.f32 %v6101_v25, %v6013_v34  ;;  %v8325_v50 = vpop.f32.mrb[93].mxu0  ;;  %v8987_v34 = vld [vmem:[#allocation9 + $0xd0] sm:$0xff]  }
0x335c   :  { %v6016_v37 = vpop.f32.mrb[94].mxu0  ;;  %v8990_v50 = vld [vmem:[#allocation9 + $0xe8] sm:$0xff]  }
0x335d   :  { %v8326_v38 = vpop.f32.mrb[95].mxu0  ;;  %v8992_v37 = vld [vmem:[#allocation9 + $0xf8] sm:$0xff]  }
0x335e   :  { %v8993_v38 = vld [vmem:[#allocation10 + $0xc0] sm:$0xff]  }
0x337a   :  { %v6320_v42 = vpop.f32.mrb[96].mxu0 }
0x337b   :  { %v6322_v44 = vpop.f32.mrb[97].mxu0  ;;  %v6321_v4 = vadd.f32 %v6320_v42, %v6146_v48  ;;  %v8995_v42 = vld [vmem:[#allocation10 + $0xd0] sm:$0xff]  }
0x337c   :  { %v6323_v58 = vadd.f32 %v6322_v44, %v6150_v40  ;;  %v6324_v46 = vpop.f32.mrb[98].mxu0  ;;  %v8994_v40 = vld [vmem:[#allocation10 + $0xc8] sm:$0xff]   ;;  %v8996_v44 = vld [vmem:[#allocation10 + $0xd8] sm:$0xff]  }
0x337d   :  { %v6325_v49 = vpop.f32.mrb[99].mxu0  ;;  %v6367_v43 = vpack.c.bf16 %v6321_v4, %v6321_v4  ;;  %v8998_v46 = vld [vmem:[#allocation10 + $0xe8] sm:$0xff]  }
0x337e   :  { %v6368_v31 = vpack.c.bf16 %v6323_v58, %v6323_v58  ;;  %v8997_v58 = vld [vmem:[#allocation10 + $0xe0] sm:$0xff]  }
0x3380   :  { %8368 = vmatpush3.bf16.xpose.msra.mxu0 %v6368_v31 }
0x3381   :  { %8379 = vmatprep.subr.bf16.mxu0 %v9243_v1 }
0x3387   :  { %8370 = vmatmul.mubr.bf16.vlgmr.msra.gmra.mrb[100].mxu0 %v6367_v43 }
0x3388   :  { %8395 = vmatprep.mubr.msk.bf16.mxu0 %vm9244_vm0, %v9243_v1  ;;  %8380 = vmatpush3.bf16.msra.mxu0 %v8977_v3  ;;  %v9000_v3 = vld [vmem:[#allocation10 + $0xf8] sm:$0xff]  }
0x3389   :  { %8381 = vmatprep.subr.bf16.mxu0 %v9243_v1 }
0x338c   :  { %8382 = vmatpush3.bf16.msra.mxu0 %v8978_v5  ;;  %v6626_v5 = vrot.slane %v10025_v19, %v9550_v47 }
0x338d   :  { %8383 = vmatprep.subr.bf16.mxu0 %v9243_v1 }
0x3390   :  { %8384 = vmatpush3.bf16.msra.mxu0 %v8979_v6 }
0x3391   :  { %8385 = vmatprep.subr.bf16.mxu0 %v9243_v1 }
0x3394   :  { %8386 = vmatpush3.bf16.msra.mxu0 %v8980_v7 }
0x3395   :  { %8387 = vmatprep.subr.bf16.mxu0 %v9243_v1 }
0x3398   :  { %8388 = vmatpush3.bf16.msra.mxu0 %v8981_v8 }
0x3399   :  { %8389 = vmatprep.subr.bf16.mxu0 %v9243_v1 }
0x339c   :  { %8390 = vmatpush3.bf16.msra.mxu0 %v8982_v14 }
0x339d   :  { %8391 = vmatprep.subr.bf16.mxu0 %v9243_v1 }
0x33a0   :  { %8392 = vmatpush3.bf16.msra.mxu0 %v8983_v10 }
0x33a1   :  { %8393 = vmatprep.subr.bf16.mxu0 %v9243_v1 }
0x33a4   :  { %8394 = vmatpush3.bf16.msra.mxu0 %v8984_v28 }
0x33a5   :  { %8419 = vmatprep.subr.bf16.mxu0 %v9243_v1 }
0x345a   :  { %v6404_v52 = vpop.f32.mrb[100].mxu0 }
0x345b   :  { %v6410_v53 = vmul.f32 0.25, %v6404_v52  ;;  %v8371_v51 = vpop.f32.mrb[101].mxu0 }
0x345c   :  { %v6407_v54 = vpop.f32.mrb[102].mxu0 }
0x345d   :  { %v8372_v55 = vpop.f32.mrb[103].mxu0  ;;  %v6411_v56 = vsel %vm430_vm2, %v6410_v53, -inf  ;;  %v6598_v54 = vrot.slane %v10025_v19, %v9412_v32 }
0x345e   :  { %6412 = vmax.xlane.f32.xlu0 %v6411_v56 }
0x34eb   :  { %v6413_v59 = vpop.xlane.xlu0 %6412 }
0x34ec   :  { %v6414_v57 = vsub.f32 %v6410_v53, %v6413_v59  ;;  %v6603_v59 = vrot.slane %v10025_v19, %v9423_v45 }
0x34ee   :  { %v6415_v60 = vmul.f32 1.442695, %v6414_v57 }
0x34f0   :  { %9057 = vpow2.f32 %v6415_v60 }
0x34fa   :  { %v9058_v61 = vpop.eup %9057 }
0x34fb   :  { %v6417_v2 = vsel %vm430_vm2, %v9058_v61, 0.0 }
0x34fc   :  { %6418 = vadd.xlane.f32.xlu1 %v6417_v2  ;;  %v8999_v2 = vld [vmem:[#allocation10 + $0xf0] sm:$0xff]  }
0x3589   :  { %v6419_v11 = vpop.xlane.xlu1 %6418 }
0x358a   :  { %9059 = vrcp.f32 %v6419_v11  ;;  %v6737_v11 = vrot.slane %v10025_v19, %v9559_v63  ;;  %v6843_v63 = vrot.slane %v10025_v19, %v9576_v27 }
0x3594   :  { %v9060_v12 = vpop.eup %9059 }
0x3595   :  { %v6421_v13 = vmul.f32 %v9060_v12, %v9058_v61 }
0x3597   :  { %v6422_v15 = vpack.c.bf16 %v6421_v13, %v6421_v13 }
0x3599   :  { %8376 = vmatmul.mubr.msk.bf16.vlgmr.msra.gmra.mrb[152].mxu1 %vm430_vm2, %v6422_v15 }
0x359a   :  { %8415 = vmatprep.mubr.msk.bf16.mxu1 %vm9244_vm0, %v9243_v1  ;;  %8400 = vmatpush3.bf16.msra.mxu1 %v8985_v18 }
0x359b   :  { %8401 = vmatprep.subr.bf16.mxu1 %v9243_v1 }
0x359e   :  { %8402 = vmatpush3.bf16.msra.mxu1 %v8986_v33 }
0x359f   :  { %8403 = vmatprep.subr.bf16.mxu1 %v9243_v1 }
0x35a2   :  { %8404 = vmatpush3.bf16.msra.mxu1 %v8987_v34 }
0x35a3   :  { %8405 = vmatprep.subr.bf16.mxu1 %v9243_v1 }
0x35a6   :  { %8406 = vmatpush3.bf16.msra.mxu1 %v8988_v35 }
0x35a7   :  { %8407 = vmatprep.subr.bf16.mxu1 %v9243_v1 }
0x366c   :  { %v6463_v9 = vpop.f32.mrb[152].mxu1 }
0x366d   :  { %v6469_v0 = vpack.c.bf16 %v6463_v9, %v6463_v9  ;;  %v8377_v62 = vpop.f32.mrb[153].mxu1 }
0x366e   :  { %v6466_v17 = vpop.f32.mrb[154].mxu1 }
0x366f   :  { %v8378_v25 = vpop.f32.mrb[155].mxu1  ;;  %8396 = vmatmul.mubr.bf16.vlgmr.msra.gmra.mrb[104].mxu0 %v6469_v0 }
0x3670   :  { %8435 = vmatprep.mubr.msk.bf16.mxu0 %vm9244_vm0, %v9243_v1  ;;  %8420 = vmatpush3.bf16.msra.mxu0 %v8993_v38 }
0x3671   :  { %8421 = vmatprep.subr.bf16.mxu0 %v9243_v1 }
0x3674   :  { %8422 = vmatpush3.bf16.msra.mxu0 %v8994_v40 }
0x3675   :  { %8423 = vmatprep.subr.bf16.mxu0 %v9243_v1 }
0x3678   :  { %8424 = vmatpush3.bf16.msra.mxu0 %v8995_v42 }
0x3679   :  { %8425 = vmatprep.subr.bf16.mxu0 %v9243_v1 }
0x367c   :  { %8426 = vmatpush3.bf16.msra.mxu0 %v8996_v44 }
0x367d   :  { %8427 = vmatprep.subr.bf16.mxu0 %v9243_v1 }
0x3680   :  { %8428 = vmatpush3.bf16.msra.mxu0 %v8997_v58 }
0x3681   :  { %8429 = vmatprep.subr.bf16.mxu0 %v9243_v1 }
0x3684   :  { %8430 = vmatpush3.bf16.msra.mxu0 %v8998_v46 }
0x3685   :  { %8431 = vmatprep.subr.bf16.mxu0 %v9243_v1 }
0x3688   :  { %8432 = vmatpush3.bf16.msra.mxu0 %v8999_v2 }
0x3689   :  { %8433 = vmatprep.subr.bf16.mxu0 %v9243_v1 }
0x368c   :  { %8434 = vmatpush3.bf16.msra.mxu0 %v9000_v3 }
0x3742   :  { %v6569_v21 = vpop.f32.mrb[104].mxu0 }
0x3743   :  { %v6575_v22 = vadd.f32 %v6569_v21, %v10002_v36  ;;  %v8397_v20 = vpop.f32.mrb[105].mxu0  ;;  %v8989_v36 = vld [vmem:[#allocation9 + $0xe0] sm:$0xff]  }
0x3744   :  { %v6572_v23 = vpop.f32.mrb[106].mxu0  ;;  %8408 = vmatpush3.bf16.msra.mxu1 %v8989_v36 }
0x3745   :  { %v6580_v24 = vadd.f32 %v6579_v16, %v6575_v22  ;;  %v8398_v26 = vpop.f32.mrb[107].mxu0  ;;  %8409 = vmatprep.subr.bf16.mxu1 %v9243_v1  ;;  %v6848_v23 = vrot.slane %v10025_v19, %v9579_v39 }
0x3747   :  { %v6581_v29 = vadd.f32 %v6580_v24, %v9908_v41  ;;  %v8991_v41 = vld [vmem:[#allocation9 + $0xf0] sm:$0xff]  }
0x3748   :  { %8410 = vmatpush3.bf16.msra.mxu1 %v8990_v50 }
0x3749   :  { %6582 = vadd.xlane.f32.xlu0 %v6581_v29  ;;  %v6585_v30 = vmul.f32 %v6581_v29, %v6581_v29  ;;  %8411 = vmatprep.subr.bf16.mxu1 %v9243_v1 }
0x374b   :  { %6586 = vadd.xlane.f32.xlu1 %v6585_v30 }
0x374c   :  { %8412 = vmatpush3.bf16.msra.mxu1 %v8991_v41 }
0x374d   :  { %8413 = vmatprep.subr.bf16.mxu1 %v9243_v1 }
0x3750   :  { %8414 = vmatpush3.bf16.msra.mxu1 %v8992_v37 }
0x37d6   :  { %v6583_v48 = vpop.xlane.xlu0 %6582 }
0x37d7   :  { %v6584_v49 = vmul.f32 0.020833334, %v6583_v48 }
0x37d8   :  { %v6587_v31 = vpop.xlane.xlu1 %6586 }
0x37d9   :  { %v6589_v4 = vmul.f32 %v6584_v49, %v6584_v49  ;;  %v6588_v43 = vmul.f32 0.020833334, %v6587_v31  ;;  %v6591_v51 = vsub.f32 %v6581_v29, %v6584_v49 }
0x37db   :  { %v6590_v52 = vsub.f32 %v6588_v43, %v6589_v4 }
0x37dd   :  { %v6592_v53 = vadd.f32 1e-05, %v6590_v52 }
0x37df   :  { %9061 = vrsqrt.f32 %v6592_v53 }
0x37e9   :  { %v9062_v55 = vpop.eup %9061 }
0x37ea   :  { %v6594_v56 = vmul.f32 %v9062_v55, %v6591_v51 }
0x37ec   :  { %v6599_v57 = vmul.f32 %v6598_v54, %v6594_v56 }
0x37ee   :  { %v6604_v60 = vadd.f32 %v6603_v59, %v6599_v57 }
0x37f0   :  { %v6605_v61 = vpack.c.bf16 %v6604_v60, %v6604_v60 }
0x37f2   :  { %8416 = vmatmul.mubr.bf16.vlgmr.msra.gmra.mrb[156].mxu1 %v6605_v61 }
0x38c5   :  { %v6709_v6 = vpop.f32.mrb[156].mxu1 }
0x38c6   :  { %v6710_v32 = vadd.f32 %v6709_v6, %v6626_v5  ;;  %v8417_v7 = vpop.f32.mrb[157].mxu1 }
0x38c7   :  { %v6712_v8 = vpop.f32.mrb[158].mxu1 }
0x38c8   :  { %v6715_v14 = vmax.f32 %v6710_v32, 0.0  ;;  %v8418_v10 = vpop.f32.mrb[159].mxu1 }
0x38ca   :  { %v6716_v45 = vpack.c.bf16 %v6715_v14, %v6715_v14 }
0x38cc   :  { %8436 = vmatmul.mubr.bf16.vlgmr.msra.gmra.mrb[108].mxu0 %v6716_v45 }
0x399f   :  { %v6820_v12 = vpop.f32.mrb[108].mxu0 }
0x39a0   :  { %v6821_v13 = vadd.f32 %v6820_v12, %v6737_v11  ;;  %v8437_v15 = vpop.f32.mrb[109].mxu0 }
0x39a1   :  { %v6823_v1 = vpop.f32.mrb[110].mxu0 }
0x39a2   :  { %v6826_v28 = vadd.f32 %v6821_v13, %v6604_v60  ;;  %v8438_v9 = vpop.f32.mrb[111].mxu0 }
0x39a4   :  { %6827 = vadd.xlane.f32.xlu0 %v6826_v28  ;;  %v6830_v0 = vmul.f32 %v6826_v28, %v6826_v28 }
0x39a6   :  { %6831 = vadd.xlane.f32.xlu1 %v6830_v0 }
0x3a31   :  { %v6828_v47 = vpop.xlane.xlu0 %6827 }
0x3a32   :  { %v6829_v62 = vmul.f32 0.020833334, %v6828_v47 }
0x3a33   :  { %v6832_v17 = vpop.xlane.xlu1 %6831 }
0x3a34   :  { %v6834_v25 = vmul.f32 %v6829_v62, %v6829_v62  ;;  %v6833_v18 = vmul.f32 0.020833334, %v6832_v17  ;;  %v6836_v22 = vsub.f32 %v6826_v28, %v6829_v62 }
0x3a36   :  { %v6835_v16 = vsub.f32 %v6833_v18, %v6834_v25 }
0x3a38   :  { %v6837_v21 = vadd.f32 1e-05, %v6835_v16 }
0x3a3a   :  { %9063 = vrsqrt.f32 %v6837_v21 }
0x3a44   :  { %v9064_v20 = vpop.eup %9063 }
0x3a45   :  { %v6839_v24 = vmul.f32 %v9064_v20, %v6836_v22 }
0x3a47   :  { %v6844_v26 = vmul.f32 %v6843_v63, %v6839_v24 }
0x3a49   :  { %v6849_v29 = vadd.f32 %v6848_v23, %v6844_v26 }
0x3a4b   :  { %6850 = vst [vmem:[%s10067_s8] sm:$0xff] %v6849_v29 }
0x3a4c   :  { %6855 = vsyncpa [#allocation3], 1 }
0x3a4d   :  { %6856 = vsyncpa [#allocation5], 1 }
0x3a4e   :  { %6857 = vsyncpa [#allocation8], 1 }
0x3a4f   :  { %6858 = vsyncpa [#allocation11], 1 }

</bundles_post_ra>
